<compile_context>
chip_gen: v6e
topology: v6e:2x2x1
jax: 0.10.0
libtpu: 0.0.40
codegen_flags: <defaults>
</compile_context>

<pallas_src>
import functools
import math

import jax
import jax.numpy as jnp
from jax.experimental import pallas as pl
from jax.experimental.pallas import tpu as pltpu


def _round_up(x, m):
    return ((x + m - 1) // m) * m


def _cdiv(a, b):
    return -(-a // b)


def _recon_kernel(n_dim,
                  x_ref, tgt_ref,
                  w1_ref, b1_ref,
                  w2_ref, b2_ref,
                  w3_ref, b3_ref,
                  o_ref):
    # x_ref:  (TB, n_classes*n_dim) bf16
    # tgt_ref:(TB, 1) i32
    # w*_ref: bf16 weights (resident), b*_ref: f32 biases (resident)
    TB, F = x_ref.shape

    # scatter_(1, target, 1.0) one-hot mask broadcast over the n_dim capsule dims:
    # feature column j belongs to class c iff c*n_dim <= j < (c+1)*n_dim
    # (pure VALU range test, no integer divide).
    col = jax.lax.broadcasted_iota(jnp.int32, (TB, F), 1)
    lo = tgt_ref[...] * n_dim                                   # (TB, 1)
    mask = jnp.logical_and(col >= lo, col < lo + n_dim)         # (TB, F)

    h0 = jnp.where(mask, x_ref[...], jnp.bfloat16(0.0))         # bf16 select

    # fc1 + ReLU   (bf16 operands, f32 MXU accumulation)
    h1 = jnp.dot(h0, w1_ref[...], preferred_element_type=jnp.float32) + b1_ref[...]
    h1 = jnp.maximum(h1, 0.0).astype(jnp.bfloat16)

    # fc2 + ReLU
    h2 = jnp.dot(h1, w2_ref[...], preferred_element_type=jnp.float32) + b2_ref[...]
    h2 = jnp.maximum(h2, 0.0).astype(jnp.bfloat16)

    # fc3 + sigmoid. True 784-wide output: only the trailing 16-lane vreg store
    # is masked; this avoids a full pad+slice round-trip through HBM.
    h3 = jnp.dot(h2, w3_ref[...], preferred_element_type=jnp.float32) + b3_ref[...]
    o_ref[...] = jax.nn.sigmoid(h3).astype(o_ref.dtype)


def prepare_params(params):
    """One-time weight prep (hoisted out of the per-call path): bf16 weights, f32 biases."""
    w1, b1, w2, b2, w3, b3 = params
    return (w1.astype(jnp.bfloat16), b1.astype(jnp.float32),
            w2.astype(jnp.bfloat16), b2.astype(jnp.float32),
            w3.astype(jnp.bfloat16), b3.astype(jnp.float32))


def _pick_batch_tile(B):
    """Batch tile: ~512 rows per step for large batches (amortizes per-step
    pipeline overhead), always >=2 grid steps when the batch allows it so v7x
    megacore shards work across both TensorCores, and tile count chosen to
    minimize batch padding."""
    Bp8 = _round_up(B, 8)
    if Bp8 < 16:
        return Bp8                      # tiny batch: single exact tile
    n_tiles = max(2, _cdiv(Bp8, 512))
    return _round_up(_cdiv(Bp8, n_tiles), 8)


def reconstruction_net_forward(x, target, prepared_params, *, n_dim, n_classes,
                               out_dtype=jnp.float32):
    """x: (B, n_classes, n_dim), target: (B,) int -> (B, 784).

    `prepared_params` should come from prepare_params() (bf16 weights / f32
    biases), called once outside the hot path. `out_dtype=jnp.bfloat16` halves
    the output HBM traffic on v6e/v7x if downstream tolerates it."""
    B = x.shape[0]
    F = n_classes * n_dim
    w1, b1, w2, b2, w3, b3 = prepared_params
    h1_dim = w1.shape[1]
    h2_dim = w2.shape[1]
    out_dim = w3.shape[1]               # 784

    TB = _pick_batch_tile(B)
    Bp = _round_up(B, TB)

    # Class-major flatten matches torch .view(-1, n_dim*n_classes); bf16 halves x DMA.
    x_flat = x.reshape(B, F).astype(jnp.bfloat16)
    tgt = target.reshape(B, 1).astype(jnp.int32)
    if Bp != B:
        x_flat = jnp.pad(x_flat, ((0, Bp - B), (0, 0)))
        tgt = jnp.pad(tgt, ((0, Bp - B), (0, 0)))

    resident = lambda i: (0, 0)   # constant index_map -> fetched once, stays in VMEM

    out_bytes = jnp.dtype(out_dtype).itemsize
    flops = 2 * Bp * (F * h1_dim + h1_dim * h2_dim + h2_dim * out_dim)
    bytes_accessed = (x_flat.size * 2 + tgt.size * 4 + Bp * out_dim * out_bytes
                      + (w1.size + w2.size + w3.size) * 2
                      + (b1.size + b2.size + b3.size) * 4)

    # VMEM request sized from the footprint (double-buffered I/O + resident
    # weights + f32/bf16 temps), with 2x margin; tight enough for v7x's 64 MiB.
    vmem_est = (
        2 * (w1.size + w2.size + w3.size) * 2
        + 2 * (b1.size + b2.size + b3.size) * 4
        + 2 * (TB * F * 2 + TB * 4 + TB * out_dim * out_bytes)
        + TB * (F + h1_dim + h2_dim + out_dim) * 4
        + TB * (h1_dim + h2_dim) * 2
    )
    vmem_limit = min(max(2 * vmem_est, 24 * 1024 * 1024), 100 * 1024 * 1024)

    out = pl.pallas_call(
        functools.partial(_recon_kernel, n_dim),
        out_shape=jax.ShapeDtypeStruct((Bp, out_dim), out_dtype),
        grid=(Bp // TB,),
        in_specs=[
            pl.BlockSpec((TB, F), lambda i: (i, 0)),          # x tile (bf16)
            pl.BlockSpec((TB, 1), lambda i: (i, 0)),          # target tile
            pl.BlockSpec((F, h1_dim), resident),              # w1
            pl.BlockSpec((1, h1_dim), resident),              # b1
            pl.BlockSpec((h1_dim, h2_dim), resident),         # w2
            pl.BlockSpec((1, h2_dim), resident),              # b2
            pl.BlockSpec((h2_dim, out_dim), resident),        # w3
            pl.BlockSpec((1, out_dim), resident),             # b3
        ],
        out_specs=pl.BlockSpec((TB, out_dim), lambda i: (i, 0)),
        compiler_params=pltpu.CompilerParams(
            dimension_semantics=("parallel",),                # megacore sharding on v7x
            vmem_limit_bytes=vmem_limit,
        ),
        cost_estimate=pl.CostEstimate(
            flops=flops,
            transcendentals=2 * Bp * out_dim,                 # sigmoid ~ exp + reciprocal
            bytes_accessed=bytes_accessed,
        ),
    )(x_flat, tgt, w1, b1, w2, b2, w3, b3)

    return out if Bp == B else out[:B]


def init_params(key, n_dim, n_classes):
    """Deterministic init mimicking torch.nn.Linear (uniform +-1/sqrt(fan_in))."""
    dims = [(n_dim * n_classes, 512), (512, 1024), (1024, 784)]
    params = []
    for (fan_in, fan_out) in dims:
        key, kw, kb = jax.random.split(key, 3)
        bound = 1.0 / math.sqrt(fan_in)
        w = jax.random.uniform(kw, (fan_in, fan_out), jnp.float32, -bound, bound)
        b = jax.random.uniform(kb, (1, fan_out), jnp.float32, -bound, bound)
        params += [w, b]
    return params


def _reference_f32(x, target, params, *, n_dim, n_classes):
    """Pure-f32 JAX reference mirroring the PyTorch module."""
    w1, b1, w2, b2, w3, b3 = params
    B = x.shape[0]
    mask = jax.nn.one_hot(target, n_classes, dtype=x.dtype)[:, :, None]  # (B, C, 1)
    h = (x * mask).reshape(B, n_classes * n_dim)
    h = jax.nn.relu(h @ w1 + b1)
    h = jax.nn.relu(h @ w2 + b2)
    return jax.nn.sigmoid(h @ w3 + b3)


if __name__ == "__main__":
    n_dim, n_classes = 16, 10
    B = 8

    key = jax.random.PRNGKey(0)
    kx, kt, kp = jax.random.split(key, 3)

    x = jax.random.normal(kx, (B, n_classes, n_dim), jnp.float32)
    target = jax.random.randint(kt, (B,), 0, n_classes, jnp.int32)
    params = init_params(kp, n_dim, n_classes)
    prepared = prepare_params(params)          # one-time weight prep (hoisted out of forward)

    fwd = jax.jit(functools.partial(reconstruction_net_forward,
                                    n_dim=n_dim, n_classes=n_classes))
    out = jax.block_until_ready(fwd(x, target, prepared))

    ref = _reference_f32(x, target, params, n_dim=n_dim, n_classes=n_classes)
    assert out.shape == (B, 784)
    # bf16 matmul operands (f32 accumulation) vs pure-f32 reference -> loosened tolerance.
    assert jnp.allclose(out, ref, atol=2e-2, rtol=1e-2), "mismatch vs reference"

    print("KERNEL_OK")
</pallas_src>

<mosaic_0001>
module attributes {stable_mosaic.version = 11 : i64} {
  func.func @_recon_kernel(%arg0: i32, %arg1: memref<8x160xbf16, #tpu.memory_space<vmem>>, %arg2: memref<8x1xi32, #tpu.memory_space<vmem>>, %arg3: memref<160x512xbf16, #tpu.memory_space<vmem>>, %arg4: memref<1x512xf32, #tpu.memory_space<vmem>>, %arg5: memref<512x1024xbf16, #tpu.memory_space<vmem>>, %arg6: memref<1x1024xf32, #tpu.memory_space<vmem>>, %arg7: memref<1024x784xbf16, #tpu.memory_space<vmem>>, %arg8: memref<1x784xf32, #tpu.memory_space<vmem>>, %arg9: memref<8x784xf32, #tpu.memory_space<vmem>>) attributes {dimension_semantics = [#tpu.dimension_semantics<parallel>], iteration_bounds = array<i64: 1>, scalar_prefetch = 0 : i64, scratch_operands = 0 : i64, tpu.core_type = #tpu.core_type<tc>, window_params = [{transform_indices = @transform_0, window_bounds = array<i64: 8, 160>}, {transform_indices = @transform_1, window_bounds = array<i64: 8, 1>}, {pipeline_mode = #tpu.pipeline_mode<synchronous>, transform_indices = @transform_2, window_bounds = array<i64: 160, 512>}, {pipeline_mode = #tpu.pipeline_mode<synchronous>, transform_indices = @transform_3, window_bounds = array<i64: 1, 512>}, {pipeline_mode = #tpu.pipeline_mode<synchronous>, transform_indices = @transform_4, window_bounds = array<i64: 512, 1024>}, {pipeline_mode = #tpu.pipeline_mode<synchronous>, transform_indices = @transform_5, window_bounds = array<i64: 1, 1024>}, {pipeline_mode = #tpu.pipeline_mode<synchronous>, transform_indices = @transform_6, window_bounds = array<i64: 1024, 784>}, {pipeline_mode = #tpu.pipeline_mode<synchronous>, transform_indices = @transform_7, window_bounds = array<i64: 1, 784>}, {transform_indices = @transform_8, window_bounds = array<i64: 8, 784>}]} {
    %0 = tpu.iota {dimensions = array<i32: 1>} : vector<8x160xi32>
    %c0 = arith.constant 0 : index
    %c0_0 = arith.constant 0 : index
    %1 = vector.load %arg2[%c0, %c0_0] : memref<8x1xi32, #tpu.memory_space<vmem>>, vector<8x1xi32>
    %c16_i32 = arith.constant 16 : i32
    %2 = vector.broadcast %c16_i32 : i32 to vector<8x1xi32>
    %3 = arith.muli %1, %2 : vector<8x1xi32>
    %4 = vector.broadcast %3 : vector<8x1xi32> to vector<8x160xi32>
    %5 = arith.cmpi sge, %0, %4 : vector<8x160xi32>
    %c16_i32_1 = arith.constant 16 : i32
    %6 = vector.broadcast %c16_i32_1 : i32 to vector<8x1xi32>
    %7 = arith.addi %3, %6 : vector<8x1xi32>
    %8 = vector.broadcast %7 : vector<8x1xi32> to vector<8x160xi32>
    %9 = arith.cmpi slt, %0, %8 : vector<8x160xi32>
    %10 = arith.andi %5, %9 : vector<8x160xi1>
    %c0_2 = arith.constant 0 : index
    %c0_3 = arith.constant 0 : index
    %11 = vector.load %arg1[%c0_2, %c0_3] : memref<8x160xbf16, #tpu.memory_space<vmem>>, vector<8x160xbf16>
    %cst = arith.constant 0.000000e+00 : bf16
    %12 = vector.broadcast %cst : bf16 to vector<8x160xbf16>
    %13 = arith.select %10, %11, %12 : vector<8x160xi1>, vector<8x160xbf16>
    %c0_4 = arith.constant 0 : index
    %c0_5 = arith.constant 0 : index
    %14 = vector.load %arg3[%c0_4, %c0_5] : memref<160x512xbf16, #tpu.memory_space<vmem>>, vector<160x512xbf16>
    %cst_6 = arith.constant dense<0.000000e+00> : vector<8x512xf32>
    %15 = tpu.matmul %13, %14, %cst_6 {dimension_numbers = #tpu.dot_dimension_numbers<[1], [0], [0], [1], [0, 0, 1, 1], [], []>} : vector<8x160xbf16>, vector<160x512xbf16>, vector<8x512xf32> -> vector<8x512xf32>
    %c0_7 = arith.constant 0 : index
    %c0_8 = arith.constant 0 : index
    %16 = vector.load %arg4[%c0_7, %c0_8] : memref<1x512xf32, #tpu.memory_space<vmem>>, vector<1x512xf32>
    %17 = vector.broadcast %16 : vector<1x512xf32> to vector<8x512xf32>
    %18 = arith.addf %15, %17 : vector<8x512xf32>
    %cst_9 = arith.constant 0.000000e+00 : f32
    %19 = vector.broadcast %cst_9 : f32 to vector<8x512xf32>
    %20 = arith.maximumf %18, %19 : vector<8x512xf32>
    %21 = arith.truncf %20 : vector<8x512xf32> to vector<8x512xbf16>
    %c0_10 = arith.constant 0 : index
    %c0_11 = arith.constant 0 : index
    %22 = vector.load %arg5[%c0_10, %c0_11] : memref<512x1024xbf16, #tpu.memory_space<vmem>>, vector<512x1024xbf16>
    %cst_12 = arith.constant dense<0.000000e+00> : vector<8x1024xf32>
    %23 = tpu.matmul %21, %22, %cst_12 {dimension_numbers = #tpu.dot_dimension_numbers<[1], [0], [0], [1], [0, 0, 1, 1], [], []>} : vector<8x512xbf16>, vector<512x1024xbf16>, vector<8x1024xf32> -> vector<8x1024xf32>
    %c0_13 = arith.constant 0 : index
    %c0_14 = arith.constant 0 : index
    %24 = vector.load %arg6[%c0_13, %c0_14] : memref<1x1024xf32, #tpu.memory_space<vmem>>, vector<1x1024xf32>
    %25 = vector.broadcast %24 : vector<1x1024xf32> to vector<8x1024xf32>
    %26 = arith.addf %23, %25 : vector<8x1024xf32>
    %cst_15 = arith.constant 0.000000e+00 : f32
    %27 = vector.broadcast %cst_15 : f32 to vector<8x1024xf32>
    %28 = arith.maximumf %26, %27 : vector<8x1024xf32>
    %29 = arith.truncf %28 : vector<8x1024xf32> to vector<8x1024xbf16>
    %c0_16 = arith.constant 0 : index
    %c0_17 = arith.constant 0 : index
    %30 = vector.load %arg7[%c0_16, %c0_17] : memref<1024x784xbf16, #tpu.memory_space<vmem>>, vector<1024x784xbf16>
    %cst_18 = arith.constant dense<0.000000e+00> : vector<8x784xf32>
    %31 = tpu.matmul %29, %30, %cst_18 {dimension_numbers = #tpu.dot_dimension_numbers<[1], [0], [0], [1], [0, 0, 1, 1], [], []>} : vector<8x1024xbf16>, vector<1024x784xbf16>, vector<8x784xf32> -> vector<8x784xf32>
    %c0_19 = arith.constant 0 : index
    %c0_20 = arith.constant 0 : index
    %32 = vector.load %arg8[%c0_19, %c0_20] : memref<1x784xf32, #tpu.memory_space<vmem>>, vector<1x784xf32>
    %33 = vector.broadcast %32 : vector<1x784xf32> to vector<8x784xf32>
    %34 = arith.addf %31, %33 : vector<8x784xf32>
    %35 = arith.negf %34 : vector<8x784xf32>
    %36 = math.exp %35 : vector<8x784xf32>
    %cst_21 = arith.constant 1.000000e+00 : f32
    %37 = vector.broadcast %cst_21 : f32 to vector<8x784xf32>
    %38 = arith.addf %37, %36 : vector<8x784xf32>
    %39 = arith.divf %37, %38 : vector<8x784xf32>
    %c0_22 = arith.constant 0 : index
    %c0_23 = arith.constant 0 : index
    %40 = vector.load %arg9[%c0_22, %c0_23] : memref<8x784xf32, #tpu.memory_space<vmem>>, vector<8x784xf32>
    tpu.vector_store %arg9[%c0_22, %c0_23], %39 {strides = array<i32>} : memref<8x784xf32, #tpu.memory_space<vmem>>, vector<8x784xf32>,
    return
  }
  func.func @transform_0(%arg0: i32) -> (i32, i32) {
    %c0_i32 = arith.constant 0 : i32
    %c0_i32_0 = arith.constant 0 : i32
    return %arg0, %c0_i32 : i32, i32
  }
  func.func @transform_1(%arg0: i32) -> (i32, i32) {
    %c0_i32 = arith.constant 0 : i32
    %c0_i32_0 = arith.constant 0 : i32
    return %arg0, %c0_i32 : i32, i32
  }
  func.func @transform_2(%arg0: i32) -> (i32, i32) {
    %c0_i32 = arith.constant 0 : i32
    %c0_i32_0 = arith.constant 0 : i32
    %c0_i32_1 = arith.constant 0 : i32
    return %c0_i32, %c0_i32_0 : i32, i32
  }
  func.func @transform_3(%arg0: i32) -> (i32, i32) {
    %c0_i32 = arith.constant 0 : i32
    %c0_i32_0 = arith.constant 0 : i32
    %c0_i32_1 = arith.constant 0 : i32
    return %c0_i32, %c0_i32_0 : i32, i32
  }
  func.func @transform_4(%arg0: i32) -> (i32, i32) {
    %c0_i32 = arith.constant 0 : i32
    %c0_i32_0 = arith.constant 0 : i32
    %c0_i32_1 = arith.constant 0 : i32
    return %c0_i32, %c0_i32_0 : i32, i32
  }
  func.func @transform_5(%arg0: i32) -> (i32, i32) {
    %c0_i32 = arith.constant 0 : i32
    %c0_i32_0 = arith.constant 0 : i32
    %c0_i32_1 = arith.constant 0 : i32
    return %c0_i32, %c0_i32_0 : i32, i32
  }
  func.func @transform_6(%arg0: i32) -> (i32, i32) {
    %c0_i32 = arith.constant 0 : i32
    %c0_i32_0 = arith.constant 0 : i32
    %c0_i32_1 = arith.constant 0 : i32
    return %c0_i32, %c0_i32_0 : i32, i32
  }
  func.func @transform_7(%arg0: i32) -> (i32, i32) {
    %c0_i32 = arith.constant 0 : i32
    %c0_i32_0 = arith.constant 0 : i32
    %c0_i32_1 = arith.constant 0 : i32
    return %c0_i32, %c0_i32_0 : i32, i32
  }
  func.func @transform_8(%arg0: i32) -> (i32, i32) {
    %c0_i32 = arith.constant 0 : i32
    %c0_i32_0 = arith.constant 0 : i32
    return %arg0, %c0_i32 : i32, i32
  }
}

</mosaic_0001>

<bundles_post_ra>
// kernel: reconstruction_net_forward.1
= control target key start
LH: loop header
LB: loop body
LE: loop exit
PB: predicated region body
PF: predicated region fallthrough
CT: control target
= control target key end

     0   :  { %v7502_v1 = vmov 0   ;;  %v31_v52 = vlaneseq  ;;  %vm320_vm7 = vcmask 261120   ;;  %s9979_s0 = inlined_call_operand.vmem [shape: bf16[8,160], index: 0, kind: input, shape index: {}]   ;;  %s9980_s1 = inlined_call_operand.vmem [shape: s32[8,1], index: 1, kind: input, shape index: {}]   ;;  %s9981_s2 = inlined_call_operand.vmem [shape: bf16[160,512], index: 2, kind: input, shape index: {}]   ;;  %s9982_s3 = inlined_call_operand.vmem [shape: f32[1,512], index: 3, kind: input, shape index: {}]   ;;  %s9983_s4 = inlined_call_operand.vmem [shape: bf16[512,1024], index: 4, kind: input, shape index: {}]   ;;  %s9984_s5 = inlined_call_operand.vmem [shape: f32[1,1024], index: 5, kind: input, shape index: {}]   ;;  %s9985_s6 = inlined_call_operand.vmem [shape: bf16[1024,784], index: 6, kind: input, shape index: {}]   ;;  %s9986_s7 = inlined_call_operand.vmem [shape: f32[1,784], index: 7, kind: input, shape index: {}]   ;;  %s9987_s8 = inlined_call_operand.hbm [shape: f32[8,784], index: 8, kind: output, shape index: {}]  }
   0x1   :  { %v34_v0 = vld [vmem:[%s9980_s1] sm:$0xff]  ;;  %6750 = vset.pattern.permute.xlu0 %v7502_v1  ;;  %v6753_v4 = vld [vmem:[%s9981_s2 + $0xec] ss:$16 sps:$4 sm:$0xff]   ;;  %v6756_v6 = vld [vmem:[%s9981_s2 + $0xe8] ss:$16 sps:$4 sm:$0xff]  }
   0x2   :  { %v35_v2 = vmul.u32 16, %v34_v0  ;;  %v6751_v3 = vld [vmem:[%s9981_s2 + $0xe4] ss:$16 sps:$4 sm:$0xff]   ;;  %v6755_v5 = vld [vmem:[%s9981_s2 + $0xe0] ss:$16 sps:$4 sm:$0xff]   ;;  %365 = vmatprep.subr.bf16.mxu1 %v6753_v4  ;;  %v32_v53 = vand.u32 127, %v31_v52 }
   0x3   :  { %324 = vmatprep.subr.bf16.mxu0 %v6751_v3  ;;  %v6757_v8 = vld [vmem:[%s9981_s2 + $0xc4] ss:$16 sps:$4 sm:$0xff]   ;;  %v6759_v9 = vld [vmem:[%s9981_s2 + $0xcc] ss:$16 sps:$4 sm:$0xff]   ;;  %366 = vmatpush1.bf16.msra.mxu1 %v6756_v6  ;;  %v6761_v10 = vld [vmem:[%s9981_s2 + $0xc0] ss:$16 sps:$4 sm:$0xff]  }
   0x4   :  { %37 = vperm.xlu0 %6750, %v35_v2   ;;  %v41_v7 = vadd.s32 16, %v35_v2  ;;  %325 = vmatpush1.bf16.msra.mxu0 %v6755_v5  ;;  %v6762_v11 = vld [vmem:[%s9981_s2 + $0xc8] ss:$16 sps:$4 sm:$0xff]   ;;  %v6763_v12 = vld [vmem:[%s9981_s2 + $0xa4] ss:$16 sps:$4 sm:$0xff]   ;;  %v33_v55 = vadd.s32 128, %v32_v53 }
   0x5   :  { %326 = vmatprep.subr.bf16.mxu0 %v6757_v8  ;;  %367 = vmatprep.subr.bf16.mxu1 %v6759_v9  ;;  %v6765_v13 = vld [vmem:[%s9981_s2 + $0xac] ss:$16 sps:$4 sm:$0xff]   ;;  %v6767_v14 = vld [vmem:[%s9981_s2 + $0xa0] ss:$16 sps:$4 sm:$0xff]   ;;  %v6768_v15 = vld [vmem:[%s9981_s2 + $0xa8] ss:$16 sps:$4 sm:$0xff]  }
   0x6   :  { %v6769_v16 = vld [vmem:[%s9981_s2 + $0x84] ss:$16 sps:$4 sm:$0xff]   ;;  %v6771_v17 = vld [vmem:[%s9981_s2 + $0x8c] ss:$16 sps:$4 sm:$0xff]   ;;  %v6773_v18 = vld [vmem:[%s9981_s2 + $0x80] ss:$16 sps:$4 sm:$0xff]  }
   0x7   :  { %368 = vmatpush1.bf16.msra.mxu1 %v6762_v11  ;;  %v6774_v19 = vld [vmem:[%s9981_s2 + $0x88] ss:$16 sps:$4 sm:$0xff]   ;;  %v6775_v20 = vld [vmem:[%s9981_s2 + $0x64] ss:$16 sps:$4 sm:$0xff]   ;;  %v6777_v21 = vld [vmem:[%s9981_s2 + $0x6c] ss:$16 sps:$4 sm:$0xff]  }
   0x8   :  { %43 = vperm.xlu0 %6750, %v41_v7   ;;  %327 = vmatpush1.bf16.msra.mxu0 %v6761_v10  ;;  %v6779_v22 = vld [vmem:[%s9981_s2 + $0x60] ss:$16 sps:$4 sm:$0xff]   ;;  %v6780_v23 = vld [vmem:[%s9981_s2 + $0x68] ss:$16 sps:$4 sm:$0xff]   ;;  %v6781_v24 = vld [vmem:[%s9981_s2 + $0x44] ss:$16 sps:$4 sm:$0xff]  }
   0x9   :  { %328 = vmatprep.subr.bf16.mxu0 %v6763_v12  ;;  %369 = vmatprep.subr.bf16.mxu1 %v6765_v13  ;;  %v6783_v25 = vld [vmem:[%s9981_s2 + $0x4c] ss:$16 sps:$4 sm:$0xff]   ;;  %v6785_v26 = vld [vmem:[%s9981_s2 + $0x40] ss:$16 sps:$4 sm:$0xff]   ;;  %v6786_v27 = vld [vmem:[%s9981_s2 + $0x48] ss:$16 sps:$4 sm:$0xff]  }
   0xa   :  { %v6787_v28 = vld [vmem:[%s9981_s2 + $0x24] ss:$16 sps:$4 sm:$0xff]   ;;  %v6789_v29 = vld [vmem:[%s9981_s2 + $0x2c] ss:$16 sps:$4 sm:$0xff]   ;;  %v6791_v30 = vld [vmem:[%s9981_s2 + $0x20] ss:$16 sps:$4 sm:$0xff]  }
   0xb   :  { %370 = vmatpush1.bf16.msra.mxu1 %v6768_v15  ;;  %v6792_v31 = vld [vmem:[%s9981_s2 + $0x28] ss:$16 sps:$4 sm:$0xff]   ;;  %v6793_v32 = vld [vmem:[%s9981_s2 + $0x4] ss:$16 sps:$4 sm:$0xff]   ;;  %v6795_v33 = vld [vmem:[%s9981_s2 + $0xc] ss:$16 sps:$4 sm:$0xff]  }
   0xc   :  { %329 = vmatpush1.bf16.msra.mxu0 %v6767_v14  ;;  %371 = vmatprep.subr.bf16.mxu1 %v6771_v17  ;;  %v7645_v34 = vld [vmem:[%s9983_s4 + $0x1c0] sm:$0xff]  ;;  %v6798_v40 = vld [vmem:[%s9981_s2 + $0x8] ss:$16 sps:$4 sm:$0xff]   ;;  %v6801_v43 = vld [vmem:[%s9981_s2 + $0x12c] ss:$16 sps:$4 sm:$0xff]  }
   0xd   :  { %330 = vmatprep.subr.bf16.mxu0 %v6769_v16  ;;  %v7650_v35 = vld [vmem:[%s9983_s4 + $0x1e0] sm:$0xff]  ;;  %v6804_v45 = vld [vmem:[%s9981_s2 + $0x128] ss:$16 sps:$4 sm:$0xff]   ;;  %v6807_v47 = vld [vmem:[%s9981_s2 + $0x10c] ss:$16 sps:$4 sm:$0xff]  }
   0xe   :  { %v6797_v36 = vld [vmem:[%s9981_s2] ss:$16 sps:$4 sm:$0xff]   ;;  %v6005_v37 = vcombine.low %v7645_v34, %v7650_v35  ;;  %v6799_v41 = vld [vmem:[%s9981_s2 + $0x124] ss:$16 sps:$4 sm:$0xff]   ;;  %v6810_v49 = vld [vmem:[%s9981_s2 + $0x108] ss:$16 sps:$4 sm:$0xff]   ;;  %v6006_v50 = vcombine.high %v7645_v34, %v7650_v35 }
   0xf   :  { %372 = vmatpush1.bf16.msra.mxu1 %v6774_v19  ;;  %v598_v38 = vld [vmem:[%s9983_s4 + $0x5c0] sm:$0xff] }
  0x10   :  { %331 = vmatpush1.bf16.msra.mxu0 %v6773_v18  ;;  %373 = vmatprep.subr.bf16.mxu1 %v6777_v21  ;;  %v602_v39 = vld [vmem:[%s9983_s4 + $0x5e0] sm:$0xff] }
  0x11   :  { %332 = vmatprep.subr.bf16.mxu0 %v6775_v20  ;;  %v6133_v42 = vcombine.low %v598_v38, %v602_v39  ;;  %v6803_v44 = vld [vmem:[%s9981_s2 + $0x120] ss:$16 sps:$4 sm:$0xff]   ;;  %v6805_v46 = vld [vmem:[%s9981_s2 + $0x104] ss:$16 sps:$4 sm:$0xff]   ;;  %v6134_v51 = vcombine.high %v598_v38, %v602_v39 }
  0x12   :  { %v6809_v48 = vld [vmem:[%s9981_s2 + $0x100] ss:$16 sps:$4 sm:$0xff]  }
  0x13   :  { %374 = vmatpush1.bf16.msra.mxu1 %v6780_v23  ;;  %v49_v57 = vld [vmem:[%s9979_s0] sm:$0xff] }
  0x14   :  { %333 = vmatpush1.bf16.msra.mxu0 %v6779_v22  ;;  %375 = vmatprep.subr.bf16.mxu1 %v6783_v25  ;;  %v462_v58 = vld [vmem:[%s9983_s4 + $0x180] sm:$0xff] }
  0x15   :  { %334 = vmatprep.subr.bf16.mxu0 %v6781_v24  ;;  %v466_v59 = vld [vmem:[%s9983_s4 + $0x1a0] sm:$0xff] }
  0x16   :  { %v590_v60 = vld [vmem:[%s9983_s4 + $0x580] sm:$0xff]  ;;  %v5998_v5 = vcombine.high %v462_v58, %v466_v59  ;;  %v5997_v7 = vcombine.low %v462_v58, %v466_v59 }
  0x17   :  { %376 = vmatpush1.bf16.msra.mxu1 %v6786_v27  ;;  %v594_v61 = vld [vmem:[%s9983_s4 + $0x5a0] sm:$0xff] }
  0x18   :  { %335 = vmatpush1.bf16.msra.mxu0 %v6785_v26  ;;  %377 = vmatprep.subr.bf16.mxu1 %v6789_v29  ;;  %v454_v1 = vld [vmem:[%s9983_s4 + $0x140] sm:$0xff]  ;;  %v6126_v6 = vcombine.high %v590_v60, %v594_v61  ;;  %v6125_v8 = vcombine.low %v590_v60, %v594_v61 }
  0x19   :  { %336 = vmatprep.subr.bf16.mxu0 %v6787_v28  ;;  %v458_v2 = vld [vmem:[%s9983_s4 + $0x160] sm:$0xff] }
  0x1a   :  { %v582_v3 = vld [vmem:[%s9983_s4 + $0x540] sm:$0xff]  ;;  %v5990_v13 = vcombine.high %v454_v1, %v458_v2  ;;  %v5989_v15 = vcombine.low %v454_v1, %v458_v2 }
  0x1b   :  { %378 = vmatpush1.bf16.msra.mxu1 %v6792_v31  ;;  %v586_v4 = vld [vmem:[%s9983_s4 + $0x560] sm:$0xff] }
  0x1c   :  { %337 = vmatpush1.bf16.msra.mxu0 %v6791_v30  ;;  %379 = vmatprep.subr.bf16.mxu1 %v6795_v33  ;;  %v446_v9 = vld [vmem:[%s9983_s4 + $0x100] sm:$0xff]  ;;  %v6118_v14 = vcombine.high %v582_v3, %v586_v4  ;;  %v6117_v16 = vcombine.low %v582_v3, %v586_v4 }
  0x1d   :  { %338 = vmatprep.subr.bf16.mxu0 %v6793_v32  ;;  %v450_v10 = vld [vmem:[%s9983_s4 + $0x120] sm:$0xff] }
  0x1e   :  { %v574_v11 = vld [vmem:[%s9983_s4 + $0x500] sm:$0xff]  ;;  %v5982_v21 = vcombine.high %v446_v9, %v450_v10  ;;  %v5981_v23 = vcombine.low %v446_v9, %v450_v10 }
  0x1f   :  { %380 = vmatpush1.bf16.msra.mxu1 %v6798_v40  ;;  %v578_v12 = vld [vmem:[%s9983_s4 + $0x520] sm:$0xff] }
  0x20   :  { %339 = vmatpush1.bf16.msra.mxu0 %v6797_v36  ;;  %393 = vmatprep.subr.bf16.mxu1 %v6801_v43  ;;  %v438_v17 = vld [vmem:[%s9983_s4 + $0xc0] sm:$0xff]  ;;  %v6110_v22 = vcombine.high %v574_v11, %v578_v12  ;;  %v6109_v24 = vcombine.low %v574_v11, %v578_v12 }
  0x21   :  { %352 = vmatprep.subr.bf16.mxu0 %v6799_v41  ;;  %v442_v18 = vld [vmem:[%s9983_s4 + $0xe0] sm:$0xff] }
  0x22   :  { %v566_v19 = vld [vmem:[%s9983_s4 + $0x4c0] sm:$0xff]  ;;  %v5974_v29 = vcombine.high %v438_v17, %v442_v18  ;;  %v5973_v31 = vcombine.low %v438_v17, %v442_v18 }
  0x23   :  { %394 = vmatpush2.bf16.msra.mxu1 %v6804_v45  ;;  %v570_v20 = vld [vmem:[%s9983_s4 + $0x4e0] sm:$0xff] }
  0x24   :  { %353 = vmatpush2.bf16.msra.mxu0 %v6803_v44  ;;  %395 = vmatprep.subr.bf16.mxu1 %v6807_v47  ;;  %v430_v25 = vld [vmem:[%s9983_s4 + $0x80] sm:$0xff]  ;;  %v6102_v30 = vcombine.high %v566_v19, %v570_v20  ;;  %v6101_v32 = vcombine.low %v566_v19, %v570_v20 }
  0x25   :  { %354 = vmatprep.subr.bf16.mxu0 %v6805_v46  ;;  %v434_v26 = vld [vmem:[%s9983_s4 + $0xa0] sm:$0xff] }
  0x26   :  { %v558_v27 = vld [vmem:[%s9983_s4 + $0x480] sm:$0xff]  ;;  %v5965_v39 = vcombine.low %v430_v25, %v434_v26 }
  0x27   :  { %396 = vmatpush2.bf16.msra.mxu1 %v6810_v49  ;;  %v562_v28 = vld [vmem:[%s9983_s4 + $0x4a0] sm:$0xff] }
  0x28   :  { %355 = vmatpush2.bf16.msra.mxu0 %v6809_v48  ;;  %2033 = vmatprep.subr.bf16.mxu1 %v6134_v51  ;;  %v422_v33 = vld [vmem:[%s9983_s4 + $0x40] sm:$0xff]  ;;  %v6094_v38 = vcombine.high %v558_v27, %v562_v28  ;;  %v6093_v40 = vcombine.low %v558_v27, %v562_v28 }
  0x29   :  { %1992 = vmatprep.subr.bf16.mxu0 %v6006_v50  ;;  %v426_v34 = vld [vmem:[%s9983_s4 + $0x60] sm:$0xff] }
  0x2a   :  { %v550_v35 = vld [vmem:[%s9983_s4 + $0x440] sm:$0xff]  ;;  %v5958_v45 = vcombine.high %v422_v33, %v426_v34  ;;  %v5957_v47 = vcombine.low %v422_v33, %v426_v34 }
  0x2b   :  { %v554_v36 = vld [vmem:[%s9983_s4 + $0x460] sm:$0xff] }
  0x2c   :  { %v414_v41 = vld [vmem:[%s9983_s4] sm:$0xff]  ;;  %v6086_v46 = vcombine.high %v550_v35, %v554_v36  ;;  %v6085_v48 = vcombine.low %v550_v35, %v554_v36 }
  0x2d   :  { %v542_v43 = vld [vmem:[%s9983_s4 + $0x400] sm:$0xff] }
  0x2e   :  { %v546_v44 = vld [vmem:[%s9983_s4 + $0x420] sm:$0xff] }
  0x2f   :  { %v534_v49 = vld [vmem:[%s9983_s4 + $0x3c0] sm:$0xff] }
  0x30   :  { %v538_v50 = vld [vmem:[%s9983_s4 + $0x3e0] sm:$0xff] }
  0x31   :  { %v662_v51 = vld [vmem:[%s9983_s4 + $0x7c0] sm:$0xff] }
  0x32   :  { %v526_v58 = vld [vmem:[%s9983_s4 + $0x380] sm:$0xff] }
  0x33   :  { %v530_v59 = vld [vmem:[%s9983_s4 + $0x3a0] sm:$0xff] }
  0x34   :  { %v654_v60 = vld [vmem:[%s9983_s4 + $0x780] sm:$0xff] }
  0x35   :  { %v658_v61 = vld [vmem:[%s9983_s4 + $0x7a0] sm:$0xff] }
  0x36   :  { %v518_v2 = vld [vmem:[%s9983_s4 + $0x340] sm:$0xff]  ;;  %v6189_v9 = vcombine.low %v654_v60, %v658_v61 }
  0x37   :  { %v522_v3 = vld [vmem:[%s9983_s4 + $0x360] sm:$0xff] }
  0x38   :  { %v646_v4 = vld [vmem:[%s9983_s4 + $0x740] sm:$0xff] }
  0x39   :  { %v510_v10 = vld [vmem:[%s9983_s4 + $0x300] sm:$0xff] }
  0x3a   :  { %v514_v11 = vld [vmem:[%s9983_s4 + $0x320] sm:$0xff] }
  0x3b   :  { %v638_v12 = vld [vmem:[%s9983_s4 + $0x700] sm:$0xff] }
  0x3c   :  { %v502_v18 = vld [vmem:[%s9983_s4 + $0x2c0] sm:$0xff] }
  0x3d   :  { %v506_v19 = vld [vmem:[%s9983_s4 + $0x2e0] sm:$0xff] }
  0x3e   :  { %v630_v20 = vld [vmem:[%s9983_s4 + $0x6c0] sm:$0xff] }
  0x3f   :  { %v498_v27 = vld [vmem:[%s9983_s4 + $0x2a0] sm:$0xff] }
  0x40   :  { %v622_v28 = vld [vmem:[%s9983_s4 + $0x680] sm:$0xff] }
  0x7f   :  { %v38_v54 = vpop.permute.xlu0 %37 }
  0x80   :  { %vm39_vm0 = vcmp.ge.s32.totalorder %v32_v53, %v38_v54  ;;  %vm40_vm3 = vcmp.ge.s32.totalorder %v33_v55, %v38_v54 }
  0x83   :  { %v44_v56 = vpop.permute.xlu0 %43 }
  0x84   :  { %vm45_vm1 = vcmp.lt.s32.totalorder %v32_v53, %v44_v56  ;;  %vm46_vm2 = vcmp.lt.s32.totalorder %v33_v55, %v44_v56  ;;  %v666_v53 = vld [vmem:[%s9983_s4 + $0x7e0] sm:$0xff]  ;;  %v6078_v55 = vcombine.high %v542_v43, %v546_v44 }
  0x85   :  { %vm47_vm4 = vmand %vm39_vm0, %vm45_vm1  ;;  %v6197_v1 = vcombine.low %v662_v51, %v666_v53 }
  0x86   :  { %vm48_vm5 = vmand %vm40_vm3, %vm46_vm2 }
  0x87   :  { %vm50_vm6 = vmpackc.low %vm48_vm5, %vm47_vm4 }
  0x88   :  { %v51_v62 = vsel %vm50_vm6, %v49_v57, 0  ;;  %v6077_v57 = vcombine.low %v542_v43, %v546_v44 }
  0x89   :  { %v5905_v63 = vcombine.low %v51_v62, %v51_v62  ;;  %v5906_v0 = vcombine.high %v51_v62, %v51_v62  ;;  %v6070_v62 = vcombine.high %v534_v49, %v538_v50 }
  0x8b   :  { %5947 = vmatprep.mubr.msk.bf16.mxu0 %vm320_vm7, %v5906_v0  ;;  %5948 = vmatprep.mubr.msk.bf16.mxu1 %vm320_vm7, %v5906_v0  ;;  %v6069_v0 = vcombine.low %v534_v49, %v538_v50  ;;  %v610_v50 = vld [vmem:[%s9983_s4 + $0x620] sm:$0xff] }
  0x8c   :  { %357 = vmatmul.mubr.bf16.vlgmr.msra.gmra.mxu0 %v5905_v63  ;;  %398 = vmatmul.mubr.bf16.vlgmr.msra.gmra.mxu1 %v5905_v63  ;;  %v6198_v63 = vcombine.high %v662_v51, %v666_v53 }
  0x8d   :  { %1993 = vmatpush1.bf16.msra.mxu0 %v6005_v37  ;;  %2034 = vmatpush1.bf16.msra.mxu1 %v6133_v42  ;;  %v5966_v37 = vcombine.high %v430_v25, %v434_v26  ;;  %v418_v42 = vld [vmem:[%s9983_s4 + $0x20] sm:$0xff] }
  0x8e   :  { %1994 = vmatprep.subr.bf16.mxu0 %v5998_v5  ;;  %2035 = vmatprep.subr.bf16.mxu1 %v6126_v6  ;;  %v5950_v54 = vcombine.high %v414_v41, %v418_v42  ;;  %v5949_v56 = vcombine.low %v414_v41, %v418_v42  ;;  %v650_v5 = vld [vmem:[%s9983_s4 + $0x760] sm:$0xff]  ;;  %v6062_v6 = vcombine.high %v526_v58, %v530_v59 }
  0x8f   :  { %v6181_v17 = vcombine.low %v646_v4, %v650_v5  ;;  %v494_v26 = vld [vmem:[%s9983_s4 + $0x280] sm:$0xff] }
  0x90   :  { %v6030_v34 = vcombine.high %v494_v26, %v498_v27  ;;  %v6029_v36 = vcombine.low %v494_v26, %v498_v27  ;;  %v618_v42 = vld [vmem:[%s9983_s4 + $0x660] sm:$0xff] }
  0x91   :  { %1995 = vmatpush1.bf16.msra.mxu0 %v5997_v7  ;;  %2036 = vmatpush1.bf16.msra.mxu1 %v6125_v8  ;;  %v6190_v7 = vcombine.high %v654_v60, %v658_v61  ;;  %v6061_v8 = vcombine.low %v526_v58, %v530_v59  ;;  %v603_v59 = vld [vmem:[%s9983_s4 + $0x5e8] sm:$0xff] }
  0x92   :  { %1996 = vmatprep.subr.bf16.mxu0 %v5990_v13  ;;  %2037 = vmatprep.subr.bf16.mxu1 %v6118_v14  ;;  %v642_v13 = vld [vmem:[%s9983_s4 + $0x720] sm:$0xff]  ;;  %v6054_v14 = vcombine.high %v518_v2, %v522_v3 }
  0x93   :  { %v6173_v25 = vcombine.low %v638_v12, %v642_v13 }
  0x95   :  { %1997 = vmatpush1.bf16.msra.mxu0 %v5989_v15  ;;  %2038 = vmatpush1.bf16.msra.mxu1 %v6117_v16  ;;  %v6182_v15 = vcombine.high %v646_v4, %v650_v5  ;;  %v6053_v16 = vcombine.low %v518_v2, %v522_v3 }
  0x96   :  { %1998 = vmatprep.subr.bf16.mxu0 %v5982_v21  ;;  %2039 = vmatprep.subr.bf16.mxu1 %v6110_v22  ;;  %v634_v21 = vld [vmem:[%s9983_s4 + $0x6e0] sm:$0xff]  ;;  %v6046_v22 = vcombine.high %v510_v10, %v514_v11 }
  0x97   :  { %v6165_v33 = vcombine.low %v630_v20, %v634_v21 }
  0x99   :  { %1999 = vmatpush1.bf16.msra.mxu0 %v5981_v23  ;;  %2040 = vmatpush1.bf16.msra.mxu1 %v6109_v24  ;;  %v6174_v23 = vcombine.high %v638_v12, %v642_v13  ;;  %v6045_v24 = vcombine.low %v510_v10, %v514_v11 }
  0x9a   :  { %2000 = vmatprep.subr.bf16.mxu0 %v5974_v29  ;;  %2041 = vmatprep.subr.bf16.mxu1 %v6102_v30  ;;  %v626_v29 = vld [vmem:[%s9983_s4 + $0x6a0] sm:$0xff]  ;;  %v6038_v30 = vcombine.high %v502_v18, %v506_v19 }
  0x9b   :  { %v6158_v35 = vcombine.high %v622_v28, %v626_v29 }
  0x9d   :  { %2001 = vmatpush1.bf16.msra.mxu0 %v5973_v31  ;;  %2042 = vmatpush1.bf16.msra.mxu1 %v6101_v32  ;;  %v6166_v31 = vcombine.high %v630_v20, %v634_v21  ;;  %v6037_v32 = vcombine.low %v502_v18, %v506_v19 }
  0x9e   :  { %2002 = vmatprep.subr.bf16.mxu0 %v5966_v37  ;;  %2043 = vmatprep.subr.bf16.mxu1 %v6094_v38  ;;  %v6157_v37 = vcombine.low %v622_v28, %v626_v29  ;;  %v486_v38 = vld [vmem:[%s9983_s4 + $0x240] sm:$0xff] }
  0xa1   :  { %2003 = vmatpush1.bf16.msra.mxu0 %v5965_v39  ;;  %2044 = vmatpush1.bf16.msra.mxu1 %v6093_v40  ;;  %v490_v39 = vld [vmem:[%s9983_s4 + $0x260] sm:$0xff] }
  0xa2   :  { %2004 = vmatprep.subr.bf16.mxu0 %v5958_v45  ;;  %2045 = vmatprep.subr.bf16.mxu1 %v6086_v46  ;;  %v614_v40 = vld [vmem:[%s9983_s4 + $0x640] sm:$0xff]  ;;  %v6022_v41 = vcombine.high %v486_v38, %v490_v39  ;;  %v6021_v43 = vcombine.low %v486_v38, %v490_v39 }
  0xa3   :  { %v6149_v44 = vcombine.low %v614_v40, %v618_v42  ;;  %v6150_v45 = vcombine.high %v614_v40, %v618_v42  ;;  %v478_v46 = vld [vmem:[%s9983_s4 + $0x200] sm:$0xff] }
  0xa5   :  { %2005 = vmatpush1.bf16.msra.mxu0 %v5957_v47  ;;  %2046 = vmatpush1.bf16.msra.mxu1 %v6085_v48  ;;  %v482_v47 = vld [vmem:[%s9983_s4 + $0x220] sm:$0xff] }
  0xa6   :  { %2006 = vmatprep.subr.bf16.mxu0 %v5950_v54  ;;  %2047 = vmatprep.subr.bf16.mxu1 %v6078_v55  ;;  %v606_v48 = vld [vmem:[%s9983_s4 + $0x600] sm:$0xff]  ;;  %v6014_v49 = vcombine.high %v478_v46, %v482_v47  ;;  %v6013_v51 = vcombine.low %v478_v46, %v482_v47  ;;  %v471_v55 = vld [vmem:[%s9983_s4 + $0x1c8] sm:$0xff] }
  0xa7   :  { %v6141_v53 = vcombine.low %v606_v48, %v610_v50  ;;  %v6142_v54 = vcombine.high %v606_v48, %v610_v50 }
  0xa9   :  { %2007 = vmatpush1.bf16.msra.mxu0 %v5949_v56  ;;  %2048 = vmatpush1.bf16.msra.mxu1 %v6077_v57  ;;  %v475_v56 = vld [vmem:[%s9983_s4 + $0x1e8] sm:$0xff] }
  0xaa   :  { %2008 = vmatprep.subr.bf16.mxu0 %v6070_v62  ;;  %2049 = vmatprep.subr.bf16.mxu1 %v6198_v63  ;;  %v599_v57 = vld [vmem:[%s9983_s4 + $0x5c8] sm:$0xff]  ;;  %v6008_v58 = vcombine.high %v471_v55, %v475_v56  ;;  %v6007_v60 = vcombine.low %v471_v55, %v475_v56 }
  0xab   :  { %v6135_v61 = vcombine.low %v599_v57, %v603_v59  ;;  %v6136_v62 = vcombine.high %v599_v57, %v603_v59 }
  0xad   :  { %2009 = vmatpush2.bf16.msra.mxu0 %v6069_v0  ;;  %2050 = vmatpush2.bf16.msra.mxu1 %v6197_v1 }
  0xae   :  { %2010 = vmatprep.subr.bf16.mxu0 %v6062_v6  ;;  %2051 = vmatprep.subr.bf16.mxu1 %v6190_v7 }
  0xb1   :  { %2011 = vmatpush2.bf16.msra.mxu0 %v6061_v8  ;;  %2052 = vmatpush2.bf16.msra.mxu1 %v6189_v9 }
  0xb2   :  { %2012 = vmatprep.subr.bf16.mxu0 %v6054_v14  ;;  %2053 = vmatprep.subr.bf16.mxu1 %v6182_v15 }
  0xb5   :  { %2013 = vmatpush2.bf16.msra.mxu0 %v6053_v16  ;;  %2054 = vmatpush2.bf16.msra.mxu1 %v6181_v17 }
  0xb6   :  { %2014 = vmatprep.subr.bf16.mxu0 %v6046_v22  ;;  %2055 = vmatprep.subr.bf16.mxu1 %v6174_v23 }
  0xb9   :  { %2015 = vmatpush2.bf16.msra.mxu0 %v6045_v24  ;;  %2056 = vmatpush2.bf16.msra.mxu1 %v6173_v25 }
  0xba   :  { %2016 = vmatprep.subr.bf16.mxu0 %v6038_v30  ;;  %2057 = vmatprep.subr.bf16.mxu1 %v6166_v31 }
  0xbd   :  { %2017 = vmatpush2.bf16.msra.mxu0 %v6037_v32  ;;  %2058 = vmatpush2.bf16.msra.mxu1 %v6165_v33 }
  0xbe   :  { %2018 = vmatprep.subr.bf16.mxu0 %v6030_v34  ;;  %2059 = vmatprep.subr.bf16.mxu1 %v6158_v35 }
  0xc1   :  { %2019 = vmatpush2.bf16.msra.mxu0 %v6029_v36  ;;  %2060 = vmatpush2.bf16.msra.mxu1 %v6157_v37 }
  0xc2   :  { %2020 = vmatprep.subr.bf16.mxu0 %v6022_v41  ;;  %2061 = vmatprep.subr.bf16.mxu1 %v6150_v45 }
  0xc5   :  { %2021 = vmatpush2.bf16.msra.mxu0 %v6021_v43  ;;  %2062 = vmatpush2.bf16.msra.mxu1 %v6149_v44 }
  0xc6   :  { %2022 = vmatprep.subr.bf16.mxu0 %v6014_v49  ;;  %2063 = vmatprep.subr.bf16.mxu1 %v6142_v54 }
  0xc9   :  { %2023 = vmatpush2.bf16.msra.mxu0 %v6013_v51  ;;  %2064 = vmatpush2.bf16.msra.mxu1 %v6141_v53 }
  0xca   :  { %2074 = vmatprep.subr.bf16.mxu0 %v6008_v58  ;;  %2115 = vmatprep.subr.bf16.mxu1 %v6136_v62 }
  0xcb   :  { %13 = vsyncpa [#allocation3], 0  ;;  %v7889_v63 = vshrl.u32 %v31_v52, 7  ;;  %v92_v2 = vld [vmem:[%s9982_s3] sm:$0xf]  ;;  %v463_v22 = vld [vmem:[%s9983_s4 + $0x188] sm:$0xff] }
  0xcc   :  { %v467_v25 = vld [vmem:[%s9983_s4 + $0x1a8] sm:$0xff]  ;;  %vm5889_vm8 = vcmask 130048  }
  0xcd   :  { %v7892_v0 = vsub.s32 0, %v7889_v63  ;;  %v7895_v1 = vsub.s32 2, %v7889_v63  ;;  %v7901_v3 = vsub.s32 1, %v7889_v63  ;;  %v7904_v4 = vsub.s32 3, %v7889_v63  ;;  %v591_v26 = vld [vmem:[%s9983_s4 + $0x588] sm:$0xff] }
  0xce   :  { %v595_v27 = vld [vmem:[%s9983_s4 + $0x5a8] sm:$0xff]  ;;  %v6000_v33 = vcombine.high %v463_v22, %v467_v25  ;;  %v5999_v38 = vcombine.low %v463_v22, %v467_v25 }
  0xcf   :  { %v97_v5 = vrot.slane %v92_v2, %v7892_v0  ;;  %v105_v52 = vrot.slane %v92_v2, %v7895_v1  ;;  %v101_v6 = vrot.slane %v92_v2, %v7901_v3  ;;  %v109_v7 = vrot.slane %v92_v2, %v7904_v4  ;;  %v455_v32 = vld [vmem:[%s9983_s4 + $0x148] sm:$0xff] }
  0xd0   :  { %v6128_v34 = vcombine.high %v591_v26, %v595_v27  ;;  %v459_v35 = vld [vmem:[%s9983_s4 + $0x168] sm:$0xff]  ;;  %v6127_v39 = vcombine.low %v591_v26, %v595_v27 }
  0xd1   :  { %v583_v36 = vld [vmem:[%s9983_s4 + $0x548] sm:$0xff]  ;;  %v5992_v40 = vcombine.high %v455_v32, %v459_v35  ;;  %v5991_v46 = vcombine.low %v455_v32, %v459_v35 }
  0xd2   :  { %v587_v37 = vld [vmem:[%s9983_s4 + $0x568] sm:$0xff] }
  0xd3   :  { %v6120_v41 = vcombine.high %v583_v36, %v587_v37  ;;  %v447_v42 = vld [vmem:[%s9983_s4 + $0x108] sm:$0xff]  ;;  %v6119_v47 = vcombine.low %v583_v36, %v587_v37 }
  0xd4   :  { %v451_v43 = vld [vmem:[%s9983_s4 + $0x128] sm:$0xff] }
  0xd5   :  { %v575_v44 = vld [vmem:[%s9983_s4 + $0x508] sm:$0xff]  ;;  %v5984_v48 = vcombine.high %v447_v42, %v451_v43  ;;  %v5983_v55 = vcombine.low %v447_v42, %v451_v43 }
  0xd6   :  { %v579_v45 = vld [vmem:[%s9983_s4 + $0x528] sm:$0xff] }
  0xd7   :  { %v6112_v49 = vcombine.high %v575_v44, %v579_v45  ;;  %v439_v50 = vld [vmem:[%s9983_s4 + $0xc8] sm:$0xff]  ;;  %v6111_v56 = vcombine.low %v575_v44, %v579_v45 }
  0xd8   :  { %v443_v51 = vld [vmem:[%s9983_s4 + $0xe8] sm:$0xff] }
  0xd9   :  { %v567_v53 = vld [vmem:[%s9983_s4 + $0x4c8] sm:$0xff]  ;;  %v5976_v57 = vcombine.high %v439_v50, %v443_v51  ;;  %v5975_v2 = vcombine.low %v439_v50, %v443_v51 }
  0xda   :  { %v571_v54 = vld [vmem:[%s9983_s4 + $0x4e8] sm:$0xff] }
  0xdb   :  { %v6104_v58 = vcombine.high %v567_v53, %v571_v54  ;;  %v431_v59 = vld [vmem:[%s9983_s4 + $0x88] sm:$0xff] }
  0xdc   :  { %v563_v62 = vld [vmem:[%s9983_s4 + $0x4a8] sm:$0xff] }
  0xdd   :  { %v663_v25 = vld [vmem:[%s9983_s4 + $0x7c8] sm:$0xff] }
  0xde   :  { %v667_v26 = vld [vmem:[%s9983_s4 + $0x7e8] sm:$0xff] }
  0xdf   :  { %v527_v35 = vld [vmem:[%s9983_s4 + $0x388] sm:$0xff] }
  0xe0   :  { %v531_v36 = vld [vmem:[%s9983_s4 + $0x3a8] sm:$0xff] }
  0xe1   :  { %v655_v37 = vld [vmem:[%s9983_s4 + $0x788] sm:$0xff] }
  0xe2   :  { %v519_v43 = vld [vmem:[%s9983_s4 + $0x348] sm:$0xff] }
  0xe3   :  { %v523_v44 = vld [vmem:[%s9983_s4 + $0x368] sm:$0xff] }
  0xe4   :  { %v647_v45 = vld [vmem:[%s9983_s4 + $0x748] sm:$0xff] }
  0xe5   :  { %v511_v51 = vld [vmem:[%s9983_s4 + $0x308] sm:$0xff] }
 0x14c   :  { %v358_v8 = vpop.f32.mrf.mxu0  ;;  %v399_v9 = vpop.f32.mrf.mxu1 }
 0x14d   :  { %v359_v10 = vadd.f32 %v358_v8, %v97_v5  ;;  %v400_v11 = vadd.f32 %v399_v9, %v105_v52  ;;  %v6103_v5 = vcombine.low %v567_v53, %v571_v54  ;;  %v427_v8 = vld [vmem:[%s9983_s4 + $0x68] sm:$0xff] }
 0x14e   :  { %v360_v12 = vpop.f32.mrf.mxu0  ;;  %v401_v13 = vpop.f32.mrf.mxu1  ;;  %v551_v9 = vld [vmem:[%s9983_s4 + $0x448] sm:$0xff] }
 0x14f   :  { %v361_v14 = vadd.f32 %v360_v12, %v101_v6  ;;  %v402_v15 = vadd.f32 %v401_v13, %v109_v7  ;;  %v406_v16 = vmax.f32 %v359_v10, 0.0  ;;  %v408_v17 = vmax.f32 %v400_v11, 0.0  ;;  %v423_v7 = vld [vmem:[%s9983_s4 + $0x48] sm:$0xff] }
 0x150   :  { %v362_v18 = vpop.f32.mrf.mxu0  ;;  %v403_v19 = vpop.f32.mrf.mxu1  ;;  %v555_v10 = vld [vmem:[%s9983_s4 + $0x468] sm:$0xff]  ;;  %v5960_v13 = vcombine.high %v423_v7, %v427_v8 }
 0x151   :  { %v407_v20 = vmax.f32 %v361_v14, 0.0  ;;  %v409_v21 = vmax.f32 %v402_v15, 0.0  ;;  %v7926_v30 = vpack.c.bf16 %v406_v16, %v406_v16  ;;  %v7928_v31 = vpack.c.bf16 %v408_v17, %v408_v17  ;;  %v415_v15 = vld [vmem:[%s9983_s4 + $0x8] sm:$0xff] }
 0x152   :  { %v363_v23 = vpop.f32.mrf.mxu0  ;;  %v404_v24 = vpop.f32.mrf.mxu1  ;;  %v6088_v14 = vcombine.high %v551_v9, %v555_v10  ;;  %v419_v16 = vld [vmem:[%s9983_s4 + $0x28] sm:$0xff]  ;;  %v5959_v19 = vcombine.low %v423_v7, %v427_v8 }
 0x153   :  { %v7922_v28 = vpack.c.bf16 %v407_v20, %v407_v20  ;;  %v7924_v29 = vpack.c.bf16 %v409_v21, %v409_v21  ;;  %v543_v17 = vld [vmem:[%s9983_s4 + $0x408] sm:$0xff]  ;;  %v6087_v20 = vcombine.low %v551_v9, %v555_v10  ;;  %v5952_v21 = vcombine.high %v415_v15, %v419_v16 }
 0x154   :  { %v547_v18 = vld [vmem:[%s9983_s4 + $0x428] sm:$0xff]  ;;  %v5951_v27 = vcombine.low %v415_v15, %v419_v16 }
 0x155   :  { %2024 = vmatprep.mubr.bf16.mxu0 %v7922_v28  ;;  %2065 = vmatprep.mubr.bf16.mxu1 %v7924_v29  ;;  %v6080_v22 = vcombine.high %v543_v17, %v547_v18  ;;  %v535_v23 = vld [vmem:[%s9983_s4 + $0x3c8] sm:$0xff]  ;;  %v6079_v32 = vcombine.low %v543_v17, %v547_v18 }
 0x156   :  { %2025 = vmatmul.mubr.bf16.vlgmr.msra.gmra.mxu0 %v7926_v30  ;;  %2066 = vmatmul.mubr.bf16.vlgmr.msra.gmra.mxu1 %v7928_v31  ;;  %v539_v24 = vld [vmem:[%s9983_s4 + $0x3e8] sm:$0xff] }
 0x157   :  { %2075 = vmatpush1.bf16.msra.mxu0 %v6007_v60  ;;  %2116 = vmatpush1.bf16.msra.mxu1 %v6135_v61  ;;  %v435_v60 = vld [vmem:[%s9983_s4 + $0xa8] sm:$0xff] }
 0x158   :  { %2106 = vmatprep.mubr.bf16.mxu0 %v7922_v28  ;;  %2147 = vmatprep.mubr.bf16.mxu1 %v7924_v29  ;;  %v559_v61 = vld [vmem:[%s9983_s4 + $0x488] sm:$0xff]  ;;  %v5968_v52 = vcombine.high %v431_v59, %v435_v60  ;;  %v5967_v11 = vcombine.low %v431_v59, %v435_v60 }
 0x159   :  { %2076 = vmatprep.subr.bf16.mxu0 %v6000_v33  ;;  %2117 = vmatprep.subr.bf16.mxu1 %v6128_v34  ;;  %v6096_v6 = vcombine.high %v559_v61, %v563_v62  ;;  %v6095_v12 = vcombine.low %v559_v61, %v563_v62  ;;  %v6072_v33 = vcombine.high %v535_v23, %v539_v24  ;;  %v515_v53 = vld [vmem:[%s9983_s4 + $0x328] sm:$0xff] }
 0x15a   :  { %v6200_v34 = vcombine.high %v663_v25, %v667_v26  ;;  %v639_v54 = vld [vmem:[%s9983_s4 + $0x708] sm:$0xff] }
 0x15b   :  { %2077 = vmatpush1.bf16.msra.mxu0 %v5999_v38  ;;  %2118 = vmatpush1.bf16.msra.mxu1 %v6127_v39  ;;  %v659_v38 = vld [vmem:[%s9983_s4 + $0x7a8] sm:$0xff]  ;;  %v6071_v39 = vcombine.low %v535_v23, %v539_v24 }
 0x15c   :  { %2078 = vmatprep.subr.bf16.mxu0 %v5992_v40  ;;  %2119 = vmatprep.subr.bf16.mxu1 %v6120_v41  ;;  %v6199_v40 = vcombine.low %v663_v25, %v667_v26  ;;  %v6064_v41 = vcombine.high %v527_v35, %v531_v36  ;;  %v6192_v42 = vcombine.high %v655_v37, %v659_v38  ;;  %v503_v60 = vld [vmem:[%s9983_s4 + $0x2c8] sm:$0xff] }
 0x15d   :  { %v507_v61 = vld [vmem:[%s9983_s4 + $0x2e8] sm:$0xff] }
 0x15e   :  { %v631_v62 = vld [vmem:[%s9983_s4 + $0x6c8] sm:$0xff] }
 0x15f   :  { %2079 = vmatpush1.bf16.msra.mxu0 %v5991_v46  ;;  %2120 = vmatpush1.bf16.msra.mxu1 %v6119_v47  ;;  %v651_v46 = vld [vmem:[%s9983_s4 + $0x768] sm:$0xff]  ;;  %v6063_v47 = vcombine.low %v527_v35, %v531_v36  ;;  %v472_v36 = vld [vmem:[%s9983_s4 + $0x1d0] sm:$0xff] }
 0x160   :  { %2080 = vmatprep.subr.bf16.mxu0 %v5984_v48  ;;  %2121 = vmatprep.subr.bf16.mxu1 %v6112_v49  ;;  %v6191_v48 = vcombine.low %v655_v37, %v659_v38  ;;  %v6056_v49 = vcombine.high %v519_v43, %v523_v44  ;;  %v6184_v50 = vcombine.high %v647_v45, %v651_v46  ;;  %v495_v8 = vld [vmem:[%s9983_s4 + $0x288] sm:$0xff]  ;;  %v476_v37 = vld [vmem:[%s9983_s4 + $0x1f0] sm:$0xff] }
 0x161   :  { %v499_v9 = vld [vmem:[%s9983_s4 + $0x2a8] sm:$0xff]  ;;  %v600_v38 = vld [vmem:[%s9983_s4 + $0x5d0] sm:$0xff] }
 0x162   :  { %v623_v10 = vld [vmem:[%s9983_s4 + $0x688] sm:$0xff] }
 0x163   :  { %2081 = vmatpush1.bf16.msra.mxu0 %v5983_v55  ;;  %2122 = vmatpush1.bf16.msra.mxu1 %v6111_v56  ;;  %v643_v55 = vld [vmem:[%s9983_s4 + $0x728] sm:$0xff]  ;;  %v6055_v56 = vcombine.low %v519_v43, %v523_v44  ;;  %v464_v44 = vld [vmem:[%s9983_s4 + $0x190] sm:$0xff] }
 0x164   :  { %2082 = vmatprep.subr.bf16.mxu0 %v5976_v57  ;;  %2123 = vmatprep.subr.bf16.mxu1 %v6104_v58  ;;  %v6183_v57 = vcombine.low %v647_v45, %v651_v46  ;;  %v6048_v58 = vcombine.high %v511_v51, %v515_v53  ;;  %v6176_v59 = vcombine.high %v639_v54, %v643_v55  ;;  %v487_v16 = vld [vmem:[%s9983_s4 + $0x248] sm:$0xff]  ;;  %v468_v45 = vld [vmem:[%s9983_s4 + $0x1b0] sm:$0xff] }
 0x165   :  { %v491_v17 = vld [vmem:[%s9983_s4 + $0x268] sm:$0xff]  ;;  %v592_v46 = vld [vmem:[%s9983_s4 + $0x590] sm:$0xff] }
 0x166   :  { %v615_v18 = vld [vmem:[%s9983_s4 + $0x648] sm:$0xff] }
 0x167   :  { %2083 = vmatpush1.bf16.msra.mxu0 %v5975_v2  ;;  %2124 = vmatpush1.bf16.msra.mxu1 %v6103_v5  ;;  %v635_v2 = vld [vmem:[%s9983_s4 + $0x6e8] sm:$0xff]  ;;  %v6047_v5 = vcombine.low %v511_v51, %v515_v53  ;;  %v456_v53 = vld [vmem:[%s9983_s4 + $0x150] sm:$0xff] }
 0x168   :  { %2084 = vmatprep.subr.bf16.mxu0 %v5968_v52  ;;  %2125 = vmatprep.subr.bf16.mxu1 %v6096_v6  ;;  %v6175_v52 = vcombine.low %v639_v54, %v643_v55  ;;  %v6040_v6 = vcombine.high %v503_v60, %v507_v61  ;;  %v6168_v7 = vcombine.high %v631_v62, %v635_v2  ;;  %v479_v24 = vld [vmem:[%s9983_s4 + $0x208] sm:$0xff]  ;;  %v460_v54 = vld [vmem:[%s9983_s4 + $0x170] sm:$0xff] }
 0x169   :  { %v483_v25 = vld [vmem:[%s9983_s4 + $0x228] sm:$0xff]  ;;  %v584_v55 = vld [vmem:[%s9983_s4 + $0x550] sm:$0xff] }
 0x16a   :  { %v607_v26 = vld [vmem:[%s9983_s4 + $0x608] sm:$0xff] }
 0x16b   :  { %2085 = vmatpush1.bf16.msra.mxu0 %v5967_v11  ;;  %2126 = vmatpush1.bf16.msra.mxu1 %v6095_v12  ;;  %v627_v11 = vld [vmem:[%s9983_s4 + $0x6a8] sm:$0xff]  ;;  %v6039_v12 = vcombine.low %v503_v60, %v507_v61  ;;  %v448_v61 = vld [vmem:[%s9983_s4 + $0x110] sm:$0xff] }
 0x16c   :  { %2086 = vmatprep.subr.bf16.mxu0 %v5960_v13  ;;  %2127 = vmatprep.subr.bf16.mxu1 %v6088_v14  ;;  %v6167_v13 = vcombine.low %v631_v62, %v635_v2  ;;  %v6032_v14 = vcombine.high %v495_v8, %v499_v9  ;;  %v6160_v15 = vcombine.high %v623_v10, %v627_v11  ;;  %v452_v62 = vld [vmem:[%s9983_s4 + $0x130] sm:$0xff] }
 0x16d   :  { %v576_v2 = vld [vmem:[%s9983_s4 + $0x510] sm:$0xff] }
 0x16f   :  { %2087 = vmatpush1.bf16.msra.mxu0 %v5959_v19  ;;  %2128 = vmatpush1.bf16.msra.mxu1 %v6087_v20  ;;  %v619_v19 = vld [vmem:[%s9983_s4 + $0x668] sm:$0xff]  ;;  %v6031_v20 = vcombine.low %v495_v8, %v499_v9  ;;  %v440_v9 = vld [vmem:[%s9983_s4 + $0xd0] sm:$0xff] }
 0x170   :  { %2088 = vmatprep.subr.bf16.mxu0 %v5952_v21  ;;  %2129 = vmatprep.subr.bf16.mxu1 %v6080_v22  ;;  %v6159_v21 = vcombine.low %v623_v10, %v627_v11  ;;  %v6024_v22 = vcombine.high %v487_v16, %v491_v17  ;;  %v6152_v23 = vcombine.high %v615_v18, %v619_v19  ;;  %v444_v10 = vld [vmem:[%s9983_s4 + $0xf0] sm:$0xff] }
 0x171   :  { %v568_v11 = vld [vmem:[%s9983_s4 + $0x4d0] sm:$0xff] }
 0x173   :  { %2089 = vmatpush1.bf16.msra.mxu0 %v5951_v27  ;;  %2130 = vmatpush1.bf16.msra.mxu1 %v6079_v32  ;;  %v611_v27 = vld [vmem:[%s9983_s4 + $0x628] sm:$0xff]  ;;  %v6023_v32 = vcombine.low %v487_v16, %v491_v17  ;;  %v432_v17 = vld [vmem:[%s9983_s4 + $0x90] sm:$0xff] }
 0x174   :  { %2090 = vmatprep.subr.bf16.mxu0 %v6072_v33  ;;  %2131 = vmatprep.subr.bf16.mxu1 %v6200_v34  ;;  %v6151_v33 = vcombine.low %v615_v18, %v619_v19  ;;  %v6016_v34 = vcombine.high %v479_v24, %v483_v25  ;;  %v6144_v35 = vcombine.high %v607_v26, %v611_v27  ;;  %v436_v18 = vld [vmem:[%s9983_s4 + $0xb0] sm:$0xff] }
 0x175   :  { %v560_v19 = vld [vmem:[%s9983_s4 + $0x490] sm:$0xff] }
 0x177   :  { %2091 = vmatpush2.bf16.msra.mxu0 %v6071_v39  ;;  %2132 = vmatpush2.bf16.msra.mxu1 %v6199_v40  ;;  %v604_v39 = vld [vmem:[%s9983_s4 + $0x5f0] sm:$0xff]  ;;  %v6015_v40 = vcombine.low %v479_v24, %v483_v25 }
 0x178   :  { %2092 = vmatprep.subr.bf16.mxu0 %v6064_v41  ;;  %2133 = vmatprep.subr.bf16.mxu1 %v6192_v42  ;;  %v6143_v41 = vcombine.low %v607_v26, %v611_v27  ;;  %v6010_v42 = vcombine.high %v472_v36, %v476_v37  ;;  %v6138_v43 = vcombine.high %v600_v38, %v604_v39  ;;  %v424_v25 = vld [vmem:[%s9983_s4 + $0x50] sm:$0xff] }
 0x179   :  { %v428_v26 = vld [vmem:[%s9983_s4 + $0x70] sm:$0xff] }
 0x17a   :  { %v552_v27 = vld [vmem:[%s9983_s4 + $0x450] sm:$0xff] }
 0x17b   :  { %2093 = vmatpush2.bf16.msra.mxu0 %v6063_v47  ;;  %2134 = vmatpush2.bf16.msra.mxu1 %v6191_v48  ;;  %v596_v47 = vld [vmem:[%s9983_s4 + $0x5b0] sm:$0xff]  ;;  %v6009_v48 = vcombine.low %v472_v36, %v476_v37 }
 0x17c   :  { %2094 = vmatprep.subr.bf16.mxu0 %v6056_v49  ;;  %2135 = vmatprep.subr.bf16.mxu1 %v6184_v50  ;;  %v6137_v49 = vcombine.low %v600_v38, %v604_v39  ;;  %v6002_v50 = vcombine.high %v464_v44, %v468_v45  ;;  %v6130_v51 = vcombine.high %v592_v46, %v596_v47  ;;  %v416_v37 = vld [vmem:[%s9983_s4 + $0x10] sm:$0xff] }
 0x17d   :  { %v420_v38 = vld [vmem:[%s9983_s4 + $0x30] sm:$0xff] }
 0x17e   :  { %v544_v39 = vld [vmem:[%s9983_s4 + $0x410] sm:$0xff] }
 0x17f   :  { %2095 = vmatpush2.bf16.msra.mxu0 %v6055_v56  ;;  %2136 = vmatpush2.bf16.msra.mxu1 %v6183_v57  ;;  %v588_v56 = vld [vmem:[%s9983_s4 + $0x570] sm:$0xff]  ;;  %v6001_v57 = vcombine.low %v464_v44, %v468_v45 }
 0x180   :  { %2096 = vmatprep.subr.bf16.mxu0 %v6048_v58  ;;  %2137 = vmatprep.subr.bf16.mxu1 %v6176_v59  ;;  %v6129_v58 = vcombine.low %v592_v46, %v596_v47  ;;  %v5994_v59 = vcombine.high %v456_v53, %v460_v54  ;;  %v6122_v60 = vcombine.high %v584_v55, %v588_v56  ;;  %v536_v45 = vld [vmem:[%s9983_s4 + $0x3d0] sm:$0xff] }
 0x181   :  { %v540_v46 = vld [vmem:[%s9983_s4 + $0x3f0] sm:$0xff] }
 0x182   :  { %v664_v47 = vld [vmem:[%s9983_s4 + $0x7d0] sm:$0xff] }
 0x183   :  { %2097 = vmatpush2.bf16.msra.mxu0 %v6047_v5  ;;  %2138 = vmatpush2.bf16.msra.mxu1 %v6175_v52  ;;  %v580_v5 = vld [vmem:[%s9983_s4 + $0x530] sm:$0xff]  ;;  %v5993_v52 = vcombine.low %v456_v53, %v460_v54 }
 0x184   :  { %2098 = vmatprep.subr.bf16.mxu0 %v6040_v6  ;;  %2139 = vmatprep.subr.bf16.mxu1 %v6168_v7  ;;  %v6121_v6 = vcombine.low %v584_v55, %v588_v56  ;;  %v5986_v7 = vcombine.high %v448_v61, %v452_v62  ;;  %v6114_v8 = vcombine.high %v576_v2, %v580_v5  ;;  %v528_v54 = vld [vmem:[%s9983_s4 + $0x390] sm:$0xff] }
 0x185   :  { %v532_v55 = vld [vmem:[%s9983_s4 + $0x3b0] sm:$0xff] }
 0x186   :  { %v656_v56 = vld [vmem:[%s9983_s4 + $0x790] sm:$0xff] }
 0x187   :  { %2099 = vmatpush2.bf16.msra.mxu0 %v6039_v12  ;;  %2140 = vmatpush2.bf16.msra.mxu1 %v6167_v13  ;;  %v572_v12 = vld [vmem:[%s9983_s4 + $0x4f0] sm:$0xff]  ;;  %v5985_v13 = vcombine.low %v448_v61, %v452_v62 }
 0x188   :  { %2100 = vmatprep.subr.bf16.mxu0 %v6032_v14  ;;  %2141 = vmatprep.subr.bf16.mxu1 %v6160_v15  ;;  %v6113_v14 = vcombine.low %v576_v2, %v580_v5  ;;  %v5978_v15 = vcombine.high %v440_v9, %v444_v10  ;;  %v6106_v16 = vcombine.high %v568_v11, %v572_v12  ;;  %v520_v62 = vld [vmem:[%s9983_s4 + $0x350] sm:$0xff] }
 0x189   :  { %v524_v2 = vld [vmem:[%s9983_s4 + $0x370] sm:$0xff] }
 0x18a   :  { %v648_v5 = vld [vmem:[%s9983_s4 + $0x750] sm:$0xff] }
 0x18b   :  { %2101 = vmatpush2.bf16.msra.mxu0 %v6031_v20  ;;  %2142 = vmatpush2.bf16.msra.mxu1 %v6159_v21  ;;  %v564_v20 = vld [vmem:[%s9983_s4 + $0x4b0] sm:$0xff]  ;;  %v5977_v21 = vcombine.low %v440_v9, %v444_v10 }
 0x18c   :  { %2102 = vmatprep.subr.bf16.mxu0 %v6024_v22  ;;  %2143 = vmatprep.subr.bf16.mxu1 %v6152_v23  ;;  %v6105_v22 = vcombine.low %v568_v11, %v572_v12  ;;  %v5970_v23 = vcombine.high %v432_v17, %v436_v18  ;;  %v6098_v24 = vcombine.high %v560_v19, %v564_v20  ;;  %v512_v10 = vld [vmem:[%s9983_s4 + $0x310] sm:$0xff] }
 0x18d   :  { %v516_v11 = vld [vmem:[%s9983_s4 + $0x330] sm:$0xff] }
 0x18e   :  { %v640_v12 = vld [vmem:[%s9983_s4 + $0x710] sm:$0xff] }
 0x18f   :  { %2103 = vmatpush2.bf16.msra.mxu0 %v6023_v32  ;;  %2144 = vmatpush2.bf16.msra.mxu1 %v6151_v33  ;;  %v556_v32 = vld [vmem:[%s9983_s4 + $0x470] sm:$0xff]  ;;  %v5969_v33 = vcombine.low %v432_v17, %v436_v18 }
 0x190   :  { %2104 = vmatprep.subr.bf16.mxu0 %v6016_v34  ;;  %2145 = vmatprep.subr.bf16.mxu1 %v6144_v35  ;;  %v6097_v34 = vcombine.low %v560_v19, %v564_v20  ;;  %v5962_v35 = vcombine.high %v424_v25, %v428_v26  ;;  %v6090_v36 = vcombine.high %v552_v27, %v556_v32  ;;  %v504_v18 = vld [vmem:[%s9983_s4 + $0x2d0] sm:$0xff] }
 0x191   :  { %v508_v19 = vld [vmem:[%s9983_s4 + $0x2f0] sm:$0xff] }
 0x192   :  { %v632_v20 = vld [vmem:[%s9983_s4 + $0x6d0] sm:$0xff] }
 0x193   :  { %2105 = vmatpush2.bf16.msra.mxu0 %v6015_v40  ;;  %2146 = vmatpush2.bf16.msra.mxu1 %v6143_v41  ;;  %v548_v40 = vld [vmem:[%s9983_s4 + $0x430] sm:$0xff]  ;;  %v5961_v41 = vcombine.low %v424_v25, %v428_v26 }
 0x194   :  { %2156 = vmatprep.subr.bf16.mxu0 %v6010_v42  ;;  %2197 = vmatprep.subr.bf16.mxu1 %v6138_v43  ;;  %v6089_v42 = vcombine.low %v552_v27, %v556_v32  ;;  %v5954_v43 = vcombine.high %v416_v37, %v420_v38  ;;  %v6082_v44 = vcombine.high %v544_v39, %v548_v40  ;;  %v496_v26 = vld [vmem:[%s9983_s4 + $0x290] sm:$0xff] }
 0x195   :  { %v500_v27 = vld [vmem:[%s9983_s4 + $0x2b0] sm:$0xff] }
 0x196   :  { %2107 = vmatmul.mubr.bf16.vlgmr.msra.gmra.mxu0 %v7926_v30  ;;  %2148 = vmatmul.mubr.bf16.vlgmr.msra.gmra.mxu1 %v7928_v31  ;;  %v624_v32 = vld [vmem:[%s9983_s4 + $0x690] sm:$0xff] }
 0x197   :  { %2157 = vmatpush1.bf16.msra.mxu0 %v6009_v48  ;;  %2188 = vmatprep.mubr.bf16.mxu0 %v7922_v28  ;;  %v668_v48 = vld [vmem:[%s9983_s4 + $0x7f0] sm:$0xff] }
 0x198   :  { %2198 = vmatpush1.bf16.msra.mxu1 %v6137_v49  ;;  %2229 = vmatprep.mubr.bf16.mxu1 %v7924_v29  ;;  %v5953_v49 = vcombine.low %v416_v37, %v420_v38  ;;  %v6202_v53 = vcombine.high %v664_v47, %v668_v48  ;;  %v488_v38 = vld [vmem:[%s9983_s4 + $0x250] sm:$0xff] }
 0x199   :  { %2158 = vmatprep.subr.bf16.mxu0 %v6002_v50  ;;  %2199 = vmatprep.subr.bf16.mxu1 %v6130_v51  ;;  %v6081_v50 = vcombine.low %v544_v39, %v548_v40  ;;  %v6074_v51 = vcombine.high %v536_v45, %v540_v46  ;;  %v492_v39 = vld [vmem:[%s9983_s4 + $0x270] sm:$0xff] }
 0x19a   :  { %v616_v40 = vld [vmem:[%s9983_s4 + $0x650] sm:$0xff] }
 0x19b   :  { %2159 = vmatpush1.bf16.msra.mxu0 %v6001_v57  ;;  %v660_v57 = vld [vmem:[%s9983_s4 + $0x7b0] sm:$0xff] }
 0x19c   :  { %2200 = vmatpush1.bf16.msra.mxu1 %v6129_v58  ;;  %2160 = vmatprep.subr.bf16.mxu0 %v5994_v59  ;;  %v6073_v58 = vcombine.low %v536_v45, %v540_v46  ;;  %v6201_v59 = vcombine.low %v664_v47, %v668_v48  ;;  %v6194_v61 = vcombine.high %v656_v56, %v660_v57  ;;  %v480_v46 = vld [vmem:[%s9983_s4 + $0x210] sm:$0xff] }
 0x19d   :  { %2201 = vmatprep.subr.bf16.mxu1 %v6122_v60  ;;  %v6066_v60 = vcombine.high %v528_v54, %v532_v55  ;;  %v484_v47 = vld [vmem:[%s9983_s4 + $0x230] sm:$0xff] }
 0x19e   :  { %v608_v48 = vld [vmem:[%s9983_s4 + $0x610] sm:$0xff] }
 0x19f   :  { %2161 = vmatpush1.bf16.msra.mxu0 %v5993_v52  ;;  %v652_v52 = vld [vmem:[%s9983_s4 + $0x770] sm:$0xff] }
 0x1a0   :  { %2202 = vmatpush1.bf16.msra.mxu1 %v6121_v6  ;;  %2162 = vmatprep.subr.bf16.mxu0 %v5986_v7  ;;  %v6065_v6 = vcombine.low %v528_v54, %v532_v55  ;;  %v6193_v7 = vcombine.low %v656_v56, %v660_v57  ;;  %v6186_v9 = vcombine.high %v648_v5, %v652_v52  ;;  %v473_v55 = vld [vmem:[%s9983_s4 + $0x1d8] sm:$0xff] }
 0x1a1   :  { %2203 = vmatprep.subr.bf16.mxu1 %v6114_v8  ;;  %v6058_v8 = vcombine.high %v520_v62, %v524_v2  ;;  %v477_v56 = vld [vmem:[%s9983_s4 + $0x1f8] sm:$0xff] }
 0x1a2   :  { %v601_v57 = vld [vmem:[%s9983_s4 + $0x5d8] sm:$0xff] }
 0x1a3   :  { %2163 = vmatpush1.bf16.msra.mxu0 %v5985_v13  ;;  %v644_v13 = vld [vmem:[%s9983_s4 + $0x730] sm:$0xff] }
 0x1a4   :  { %2204 = vmatpush1.bf16.msra.mxu1 %v6113_v14  ;;  %2164 = vmatprep.subr.bf16.mxu0 %v5978_v15  ;;  %v6057_v14 = vcombine.low %v520_v62, %v524_v2  ;;  %v6185_v15 = vcombine.low %v648_v5, %v652_v52  ;;  %v6178_v17 = vcombine.high %v640_v12, %v644_v13  ;;  %v465_v2 = vld [vmem:[%s9983_s4 + $0x198] sm:$0xff] }
 0x1a5   :  { %2205 = vmatprep.subr.bf16.mxu1 %v6106_v16  ;;  %v6050_v16 = vcombine.high %v512_v10, %v516_v11  ;;  %v469_v5 = vld [vmem:[%s9983_s4 + $0x1b8] sm:$0xff]  ;;  %v6011_v52 = vcombine.low %v473_v55, %v477_v56 }
 0x1a7   :  { %2165 = vmatpush1.bf16.msra.mxu0 %v5977_v21  ;;  %v636_v21 = vld [vmem:[%s9983_s4 + $0x6f0] sm:$0xff] }
 0x1a8   :  { %2206 = vmatpush1.bf16.msra.mxu1 %v6105_v22  ;;  %2166 = vmatprep.subr.bf16.mxu0 %v5970_v23  ;;  %v6049_v22 = vcombine.low %v512_v10, %v516_v11  ;;  %v6177_v23 = vcombine.low %v640_v12, %v644_v13  ;;  %v6170_v25 = vcombine.high %v632_v20, %v636_v21  ;;  %v457_v10 = vld [vmem:[%s9983_s4 + $0x158] sm:$0xff] }
 0x1a9   :  { %2207 = vmatprep.subr.bf16.mxu1 %v6098_v24  ;;  %v6042_v24 = vcombine.high %v504_v18, %v508_v19  ;;  %v461_v11 = vld [vmem:[%s9983_s4 + $0x178] sm:$0xff] }
 0x1aa   :  { %v585_v13 = vld [vmem:[%s9983_s4 + $0x558] sm:$0xff] }
 0x1ab   :  { %2167 = vmatpush1.bf16.msra.mxu0 %v5969_v33  ;;  %v628_v33 = vld [vmem:[%s9983_s4 + $0x6b0] sm:$0xff] }
 0x1ac   :  { %2208 = vmatpush1.bf16.msra.mxu1 %v6097_v34  ;;  %2168 = vmatprep.subr.bf16.mxu0 %v5962_v35  ;;  %v6041_v34 = vcombine.low %v504_v18, %v508_v19  ;;  %v6169_v35 = vcombine.low %v632_v20, %v636_v21  ;;  %v6162_v37 = vcombine.high %v624_v32, %v628_v33  ;;  %v449_v19 = vld [vmem:[%s9983_s4 + $0x118] sm:$0xff] }
 0x1ad   :  { %2209 = vmatprep.subr.bf16.mxu1 %v6090_v36  ;;  %v6034_v36 = vcombine.high %v496_v26, %v500_v27  ;;  %v453_v20 = vld [vmem:[%s9983_s4 + $0x138] sm:$0xff] }
 0x1ae   :  { %v581_v21 = vld [vmem:[%s9983_s4 + $0x538] sm:$0xff] }
 0x1af   :  { %2169 = vmatpush1.bf16.msra.mxu0 %v5961_v41  ;;  %v620_v41 = vld [vmem:[%s9983_s4 + $0x670] sm:$0xff] }
 0x1b0   :  { %2210 = vmatpush1.bf16.msra.mxu1 %v6089_v42  ;;  %2170 = vmatprep.subr.bf16.mxu0 %v5954_v43  ;;  %v6033_v42 = vcombine.low %v496_v26, %v500_v27  ;;  %v6161_v43 = vcombine.low %v624_v32, %v628_v33  ;;  %v6154_v45 = vcombine.high %v616_v40, %v620_v41  ;;  %v445_v26 = vld [vmem:[%s9983_s4 + $0xf8] sm:$0xff] }
 0x1b1   :  { %2211 = vmatprep.subr.bf16.mxu1 %v6082_v44  ;;  %v6026_v44 = vcombine.high %v488_v38, %v492_v39  ;;  %v569_v27 = vld [vmem:[%s9983_s4 + $0x4d8] sm:$0xff]  ;;  %v5987_v33 = vcombine.low %v449_v19, %v453_v20 }
 0x1b2   :  { %v573_v32 = vld [vmem:[%s9983_s4 + $0x4f8] sm:$0xff] }
 0x1b3   :  { %2171 = vmatpush1.bf16.msra.mxu0 %v5953_v49  ;;  %v612_v49 = vld [vmem:[%s9983_s4 + $0x630] sm:$0xff] }
 0x1b4   :  { %2212 = vmatpush1.bf16.msra.mxu1 %v6081_v50  ;;  %2172 = vmatprep.subr.bf16.mxu0 %v6074_v51  ;;  %v6025_v50 = vcombine.low %v488_v38, %v492_v39  ;;  %v6153_v51 = vcombine.low %v616_v40, %v620_v41  ;;  %v6146_v54 = vcombine.high %v608_v48, %v612_v49  ;;  %v437_v38 = vld [vmem:[%s9983_s4 + $0xb8] sm:$0xff] }
 0x1b5   :  { %2213 = vmatprep.subr.bf16.mxu1 %v6202_v53  ;;  %v6018_v53 = vcombine.high %v480_v46, %v484_v47  ;;  %v561_v39 = vld [vmem:[%s9983_s4 + $0x498] sm:$0xff] }
 0x1b6   :  { %v565_v40 = vld [vmem:[%s9983_s4 + $0x4b8] sm:$0xff] }
 0x1b7   :  { %2173 = vmatpush2.bf16.msra.mxu0 %v6073_v58  ;;  %v605_v58 = vld [vmem:[%s9983_s4 + $0x5f8] sm:$0xff] }
 0x1b8   :  { %2214 = vmatpush2.bf16.msra.mxu1 %v6201_v59  ;;  %2174 = vmatprep.subr.bf16.mxu0 %v6066_v60  ;;  %v6017_v59 = vcombine.low %v480_v46, %v484_v47  ;;  %v6145_v60 = vcombine.low %v608_v48, %v612_v49  ;;  %v6140_v62 = vcombine.high %v601_v57, %v605_v58  ;;  %v429_v46 = vld [vmem:[%s9983_s4 + $0x78] sm:$0xff] }
 0x1b9   :  { %2215 = vmatprep.subr.bf16.mxu1 %v6194_v61  ;;  %v6012_v61 = vcombine.high %v473_v55, %v477_v56  ;;  %v553_v47 = vld [vmem:[%s9983_s4 + $0x458] sm:$0xff] }
 0x1ba   :  { %v557_v48 = vld [vmem:[%s9983_s4 + $0x478] sm:$0xff] }
 0x1bb   :  { %2175 = vmatpush2.bf16.msra.mxu0 %v6065_v6  ;;  %v593_v6 = vld [vmem:[%s9983_s4 + $0x598] sm:$0xff] }
 0x1bc   :  { %2216 = vmatpush2.bf16.msra.mxu1 %v6193_v7  ;;  %2176 = vmatprep.subr.bf16.mxu0 %v6058_v8  ;;  %v597_v7 = vld [vmem:[%s9983_s4 + $0x5b8] sm:$0xff]  ;;  %v6139_v8 = vcombine.low %v601_v57, %v605_v58 }
 0x1bd   :  { %2217 = vmatprep.subr.bf16.mxu1 %v6186_v9  ;;  %v6004_v9 = vcombine.high %v465_v2, %v469_v5  ;;  %v6132_v12 = vcombine.high %v593_v6, %v597_v7  ;;  %v421_v55 = vld [vmem:[%s9983_s4 + $0x38] sm:$0xff] }
 0x1be   :  { %v545_v56 = vld [vmem:[%s9983_s4 + $0x418] sm:$0xff] }
 0x1bf   :  { %2177 = vmatpush2.bf16.msra.mxu0 %v6057_v14  ;;  %v589_v14 = vld [vmem:[%s9983_s4 + $0x578] sm:$0xff] }
 0x1c0   :  { %2218 = vmatpush2.bf16.msra.mxu1 %v6185_v15  ;;  %2178 = vmatprep.subr.bf16.mxu0 %v6050_v16  ;;  %v6003_v15 = vcombine.low %v465_v2, %v469_v5  ;;  %v6131_v16 = vcombine.low %v593_v6, %v597_v7  ;;  %v6124_v18 = vcombine.high %v585_v13, %v589_v14  ;;  %v549_v57 = vld [vmem:[%s9983_s4 + $0x438] sm:$0xff] }
 0x1c1   :  { %2219 = vmatprep.subr.bf16.mxu1 %v6178_v17  ;;  %v5996_v17 = vcombine.high %v457_v10, %v461_v11  ;;  %v541_v2 = vld [vmem:[%s9983_s4 + $0x3f8] sm:$0xff]  ;;  %v6083_v7 = vcombine.low %v545_v56, %v549_v57 }
 0x1c2   :  { %v665_v5 = vld [vmem:[%s9983_s4 + $0x7d8] sm:$0xff] }
 0x1c3   :  { %2179 = vmatpush2.bf16.msra.mxu0 %v6049_v22  ;;  %v6123_v22 = vcombine.low %v585_v13, %v589_v14  ;;  %v661_v13 = vld [vmem:[%s9983_s4 + $0x7b8] sm:$0xff] }
 0x1c4   :  { %2220 = vmatpush2.bf16.msra.mxu1 %v6177_v23  ;;  %2180 = vmatprep.subr.bf16.mxu0 %v6042_v24  ;;  %v5988_v23 = vcombine.high %v449_v19, %v453_v20  ;;  %v525_v19 = vld [vmem:[%s9983_s4 + $0x378] sm:$0xff] }
 0x1c5   :  { %2221 = vmatprep.subr.bf16.mxu1 %v6170_v25  ;;  %v441_v25 = vld [vmem:[%s9983_s4 + $0xd8] sm:$0xff] }
 0x1c6   :  { %v5979_v41 = vcombine.low %v441_v25, %v445_v26  ;;  %v649_v20 = vld [vmem:[%s9983_s4 + $0x758] sm:$0xff] }
 0x1c7   :  { %2181 = vmatpush2.bf16.msra.mxu0 %v6041_v34 }
 0x1c8   :  { %2222 = vmatpush2.bf16.msra.mxu1 %v6169_v35  ;;  %2182 = vmatprep.subr.bf16.mxu0 %v6034_v36  ;;  %v5980_v35 = vcombine.high %v441_v25, %v445_v26  ;;  %v6108_v36 = vcombine.high %v569_v27, %v573_v32  ;;  %v517_v25 = vld [vmem:[%s9983_s4 + $0x338] sm:$0xff] }
 0x1c9   :  { %2223 = vmatprep.subr.bf16.mxu1 %v6162_v37  ;;  %v433_v37 = vld [vmem:[%s9983_s4 + $0x98] sm:$0xff] }
 0x1ca   :  { %v5971_v49 = vcombine.low %v433_v37, %v437_v38  ;;  %v641_v26 = vld [vmem:[%s9983_s4 + $0x718] sm:$0xff] }
 0x1cb   :  { %2183 = vmatpush2.bf16.msra.mxu0 %v6033_v42  ;;  %v6107_v42 = vcombine.low %v569_v27, %v573_v32  ;;  %v645_v27 = vld [vmem:[%s9983_s4 + $0x738] sm:$0xff] }
 0x1cc   :  { %2224 = vmatpush2.bf16.msra.mxu1 %v6161_v43  ;;  %2184 = vmatprep.subr.bf16.mxu0 %v6026_v44  ;;  %v5972_v43 = vcombine.high %v433_v37, %v437_v38  ;;  %v6100_v44 = vcombine.high %v561_v39, %v565_v40  ;;  %v509_v37 = vld [vmem:[%s9983_s4 + $0x2f8] sm:$0xff] }
 0x1cd   :  { %2225 = vmatprep.subr.bf16.mxu1 %v6154_v45  ;;  %v425_v45 = vld [vmem:[%s9983_s4 + $0x58] sm:$0xff] }
 0x1ce   :  { %v5963_v58 = vcombine.low %v425_v45, %v429_v46  ;;  %v633_v38 = vld [vmem:[%s9983_s4 + $0x6d8] sm:$0xff] }
 0x1cf   :  { %2185 = vmatpush2.bf16.msra.mxu0 %v6025_v50  ;;  %v6099_v50 = vcombine.low %v561_v39, %v565_v40  ;;  %v637_v39 = vld [vmem:[%s9983_s4 + $0x6f8] sm:$0xff] }
 0x1d0   :  { %2226 = vmatpush2.bf16.msra.mxu1 %v6153_v51  ;;  %2186 = vmatprep.subr.bf16.mxu0 %v6018_v53  ;;  %v5964_v51 = vcombine.high %v425_v45, %v429_v46  ;;  %v6092_v53 = vcombine.high %v553_v47, %v557_v48  ;;  %v501_v45 = vld [vmem:[%s9983_s4 + $0x2b8] sm:$0xff] }
 0x1d1   :  { %2227 = vmatprep.subr.bf16.mxu1 %v6146_v54  ;;  %v417_v54 = vld [vmem:[%s9983_s4 + $0x18] sm:$0xff] }
 0x1d2   :  { %v5955_v6 = vcombine.low %v417_v54, %v421_v55  ;;  %v625_v46 = vld [vmem:[%s9983_s4 + $0x698] sm:$0xff] }
 0x1d3   :  { %2187 = vmatpush2.bf16.msra.mxu0 %v6017_v59  ;;  %v6091_v59 = vcombine.low %v553_v47, %v557_v48  ;;  %v629_v47 = vld [vmem:[%s9983_s4 + $0x6b8] sm:$0xff] }
 0x1d4   :  { %2228 = vmatpush2.bf16.msra.mxu1 %v6145_v60  ;;  %2238 = vmatprep.subr.bf16.mxu0 %v6012_v61  ;;  %v5956_v60 = vcombine.high %v417_v54, %v421_v55  ;;  %v6084_v61 = vcombine.high %v545_v56, %v549_v57  ;;  %v493_v54 = vld [vmem:[%s9983_s4 + $0x278] sm:$0xff] }
 0x1d5   :  { %2279 = vmatprep.subr.bf16.mxu1 %v6140_v62  ;;  %v537_v62 = vld [vmem:[%s9983_s4 + $0x3d8] sm:$0xff] }
 0x1d6   :  { %2189 = vmatmul.mubr.bf16.vlgmr.msra.gmra.mxu0 %v7926_v30  ;;  %v6075_v14 = vcombine.low %v537_v62, %v541_v2  ;;  %v617_v55 = vld [vmem:[%s9983_s4 + $0x658] sm:$0xff] }
 0x1d7   :  { %2230 = vmatmul.mubr.bf16.vlgmr.msra.gmra.mxu1 %v7928_v31  ;;  %2239 = vmatpush1.bf16.msra.mxu0 %v6011_v52  ;;  %v669_v52 = vld [vmem:[%s9983_s4 + $0x7f8] sm:$0xff] }
 0x1d8   :  { %2270 = vmatprep.mubr.bf16.mxu0 %v7922_v28  ;;  %2280 = vmatpush1.bf16.msra.mxu1 %v6139_v8  ;;  %v577_v28 = vld [vmem:[%s9983_s4 + $0x518] sm:$0xff]  ;;  %v6076_v8 = vcombine.high %v537_v62, %v541_v2 }
 0x1d9   :  { %2311 = vmatprep.mubr.bf16.mxu1 %v7924_v29  ;;  %2240 = vmatprep.subr.bf16.mxu0 %v6004_v9  ;;  %v5995_v29 = vcombine.low %v457_v10, %v461_v11  ;;  %v6116_v24 = vcombine.high %v577_v28, %v581_v21  ;;  %v6115_v34 = vcombine.low %v577_v28, %v581_v21  ;;  %v529_v10 = vld [vmem:[%s9983_s4 + $0x398] sm:$0xff] }
 0x1da   :  { %2281 = vmatprep.subr.bf16.mxu1 %v6132_v12  ;;  %v6204_v9 = vcombine.high %v665_v5, %v669_v52  ;;  %v533_v11 = vld [vmem:[%s9983_s4 + $0x3b8] sm:$0xff] }
 0x1db   :  { %2241 = vmatpush1.bf16.msra.mxu0 %v6003_v15  ;;  %v657_v12 = vld [vmem:[%s9983_s4 + $0x798] sm:$0xff]  ;;  %v6203_v15 = vcombine.low %v665_v5, %v669_v52  ;;  %v6067_v21 = vcombine.low %v529_v10, %v533_v11 }
 0x1dc   :  { %2282 = vmatpush1.bf16.msra.mxu1 %v6131_v16  ;;  %2242 = vmatprep.subr.bf16.mxu0 %v5996_v17  ;;  %v6068_v16 = vcombine.high %v529_v10, %v533_v11  ;;  %v6196_v17 = vcombine.high %v657_v12, %v661_v13  ;;  %v653_v28 = vld [vmem:[%s9983_s4 + $0x778] sm:$0xff]  ;;  %v6813_v11 = vld [vmem:[%s9985_s6 + $0x18c] ss:$28 sps:$4 sm:$0xff]  }
 0x1dd   :  { %2283 = vmatprep.subr.bf16.mxu1 %v6124_v18  ;;  %v521_v18 = vld [vmem:[%s9983_s4 + $0x358] sm:$0xff] }
 0x1de   :  { %v6059_v32 = vcombine.low %v521_v18, %v525_v19  ;;  %v621_v56 = vld [vmem:[%s9983_s4 + $0x678] sm:$0xff] }
 0x1df   :  { %2243 = vmatpush1.bf16.msra.mxu0 %v5995_v29  ;;  %v6195_v29 = vcombine.low %v657_v12, %v661_v13  ;;  %v485_v62 = vld [vmem:[%s9983_s4 + $0x238] sm:$0xff]  ;;  %v6825_v12 = vld [vmem:[%s9985_s6 + $0x50c] ss:$28 sps:$4 sm:$0xff]  }
 0x1e0   :  { %2284 = vmatpush1.bf16.msra.mxu1 %v6123_v22  ;;  %2244 = vmatprep.subr.bf16.mxu0 %v5988_v23  ;;  %v6060_v22 = vcombine.high %v521_v18, %v525_v19  ;;  %v6188_v23 = vcombine.high %v649_v20, %v653_v28  ;;  %v609_v2 = vld [vmem:[%s9983_s4 + $0x618] sm:$0xff]  ;;  %v6811_v13 = vld [vmem:[%s9985_s6 + $0x188] ss:$28 sps:$4 sm:$0xff]   ;;  %v6831_v18 = vld [vmem:[%s9985_s6 + $0x4d4] ss:$28 sps:$4 sm:$0xff]  }
 0x1e1   :  { %2285 = vmatprep.subr.bf16.mxu1 %v6116_v24  ;;  %v513_v24 = vld [vmem:[%s9983_s4 + $0x318] sm:$0xff] }
 0x1e2   :  { %v6051_v40 = vcombine.low %v513_v24, %v517_v25  ;;  %v613_v5 = vld [vmem:[%s9983_s4 + $0x638] sm:$0xff] }
 0x1e3   :  { %2245 = vmatpush1.bf16.msra.mxu0 %v5987_v33  ;;  %v6187_v33 = vcombine.low %v649_v20, %v653_v28  ;;  %v6147_v10 = vcombine.low %v609_v2, %v613_v5  ;;  %v6814_v28 = vld [vmem:[%s9985_s6 + $0x150] ss:$28 sps:$4 sm:$0xff]  }
 0x1e4   :  { %2286 = vmatpush1.bf16.msra.mxu1 %v6115_v34  ;;  %2246 = vmatprep.subr.bf16.mxu0 %v5980_v35  ;;  %v6052_v34 = vcombine.high %v513_v24, %v517_v25  ;;  %v6180_v35 = vcombine.high %v641_v26, %v645_v27 }
 0x1e5   :  { %2287 = vmatprep.subr.bf16.mxu1 %v6108_v36  ;;  %v505_v36 = vld [vmem:[%s9983_s4 + $0x2d8] sm:$0xff] }
 0x1e6   :  { %v6043_v48 = vcombine.low %v505_v36, %v509_v37 }
 0x1e7   :  { %2247 = vmatpush1.bf16.msra.mxu0 %v5979_v41  ;;  %v6179_v41 = vcombine.low %v641_v26, %v645_v27  ;;  %v6817_v27 = vld [vmem:[%s9985_s6 + $0x118] ss:$28 sps:$4 sm:$0xff]  }
 0x1e8   :  { %2288 = vmatpush1.bf16.msra.mxu1 %v6107_v42  ;;  %2248 = vmatprep.subr.bf16.mxu0 %v5972_v43  ;;  %v6044_v42 = vcombine.high %v505_v36, %v509_v37  ;;  %v6172_v43 = vcombine.high %v633_v38, %v637_v39  ;;  %v6843_v37 = vld [vmem:[%s9985_s6 + $0x464] ss:$28 sps:$4 sm:$0xff]  }
 0x1e9   :  { %2289 = vmatprep.subr.bf16.mxu1 %v6100_v44  ;;  %v497_v44 = vld [vmem:[%s9983_s4 + $0x298] sm:$0xff] }
 0x1ea   :  { %v6035_v57 = vcombine.low %v497_v44, %v501_v45 }
 0x1eb   :  { %2249 = vmatpush1.bf16.msra.mxu0 %v5971_v49  ;;  %v6171_v49 = vcombine.low %v633_v38, %v637_v39  ;;  %v6820_v39 = vld [vmem:[%s9985_s6 + $0xe0] ss:$28 sps:$4 sm:$0xff]  }
 0x1ec   :  { %2290 = vmatpush1.bf16.msra.mxu1 %v6099_v50  ;;  %2250 = vmatprep.subr.bf16.mxu0 %v5964_v51  ;;  %v6036_v50 = vcombine.high %v497_v44, %v501_v45  ;;  %v6164_v51 = vcombine.high %v625_v46, %v629_v47  ;;  %v6834_v44 = vld [vmem:[%s9985_s6 + $0x74] ss:$28 sps:$4 sm:$0xff]   ;;  %v6847_v45 = vld [vmem:[%s9985_s6 + $0x428] ss:$28 sps:$4 sm:$0xff]  }
 0x1ed   :  { %2291 = vmatprep.subr.bf16.mxu1 %v6092_v53  ;;  %v489_v53 = vld [vmem:[%s9983_s4 + $0x258] sm:$0xff] }
 0x1ee   :  { %v6027_v52 = vcombine.low %v489_v53, %v493_v54 }
 0x1ef   :  { %2251 = vmatpush1.bf16.msra.mxu0 %v5963_v58  ;;  %v6163_v58 = vcombine.low %v625_v46, %v629_v47  ;;  %v6855_v46 = vld [vmem:[%s9985_s6 + $0x3f4] ss:$28 sps:$4 sm:$0xff]  }
 0x1f0   :  { %2292 = vmatpush1.bf16.msra.mxu1 %v6091_v59  ;;  %2252 = vmatprep.subr.bf16.mxu0 %v5956_v60  ;;  %v6028_v59 = vcombine.high %v489_v53, %v493_v54  ;;  %v6156_v60 = vcombine.high %v617_v55, %v621_v56  ;;  %v6832_v47 = vld [vmem:[%s9985_s6 + $0x70] ss:$28 sps:$4 sm:$0xff]   ;;  %v6846_v53 = vld [vmem:[%s9985_s6 + $0x4] ss:$28 sps:$4 sm:$0xff]   ;;  %v6859_v54 = vld [vmem:[%s9985_s6 + $0x3b8] ss:$28 sps:$4 sm:$0xff]  }
 0x1f1   :  { %2293 = vmatprep.subr.bf16.mxu1 %v6084_v61  ;;  %v481_v61 = vld [vmem:[%s9983_s4 + $0x218] sm:$0xff] }
 0x1f3   :  { %2253 = vmatpush1.bf16.msra.mxu0 %v5955_v6  ;;  %v6155_v6 = vcombine.low %v617_v55, %v621_v56  ;;  %v6867_v55 = vld [vmem:[%s9985_s6 + $0x384] ss:$28 sps:$4 sm:$0xff]  }
 0x1f4   :  { %2294 = vmatpush1.bf16.msra.mxu1 %v6083_v7  ;;  %2254 = vmatprep.subr.bf16.mxu0 %v6076_v8  ;;  %v6020_v7 = vcombine.high %v481_v61, %v485_v62  ;;  %v6148_v8 = vcombine.high %v609_v2, %v613_v5  ;;  %v6844_v56 = vld [vmem:[%s9985_s6] ss:$28 sps:$4 sm:$0xff]   ;;  %v6879_v2 = vld [vmem:[%s9985_s6 + $0x694] ss:$28 sps:$4 sm:$0xff]  }
 0x1f5   :  { %2295 = vmatprep.subr.bf16.mxu1 %v6204_v9  ;;  %v6019_v9 = vcombine.low %v481_v61, %v485_v62  ;;  %v6858_v61 = vld [vmem:[%s9985_s6 + $0x314] ss:$28 sps:$4 sm:$0xff]   ;;  %v6871_v62 = vld [vmem:[%s9985_s6 + $0x6c8] ss:$28 sps:$4 sm:$0xff]  }
 0x1f6   :  { %v6856_v5 = vld [vmem:[%s9985_s6 + $0x310] ss:$28 sps:$4 sm:$0xff]  }
 0x1f7   :  { %2255 = vmatpush2.bf16.msra.mxu0 %v6075_v14  ;;  %v8508_v14 = vld [vmem:[%s9984_s5] sm:$0xff] }
 0x1f8   :  { %2296 = vmatpush2.bf16.msra.mxu1 %v6203_v15  ;;  %2256 = vmatprep.subr.bf16.mxu0 %v6068_v16  ;;  %v6816_v15 = vld [vmem:[%s9985_s6 + $0x154] ss:$28 sps:$4 sm:$0xff]   ;;  %v6823_v16 = vld [vmem:[%s9985_s6 + $0x508] ss:$28 sps:$4 sm:$0xff]  }
 0x1f9   :  { %2297 = vmatprep.subr.bf16.mxu1 %v6196_v17  ;;  %v679_v17 = vrot.slane %v8508_v14, %v7901_v3 }
 0x1fb   :  { %2257 = vmatpush2.bf16.msra.mxu0 %v6067_v21 }
 0x1fc   :  { %2298 = vmatpush2.bf16.msra.mxu1 %v6195_v29  ;;  %2258 = vmatprep.subr.bf16.mxu0 %v6060_v22  ;;  %v6819_v22 = vld [vmem:[%s9985_s6 + $0x11c] ss:$28 sps:$4 sm:$0xff]  }
 0x1fd   :  { %2299 = vmatprep.subr.bf16.mxu1 %v6188_v23 }
 0x1ff   :  { %2259 = vmatpush2.bf16.msra.mxu0 %v6059_v32 }
 0x200   :  { %2300 = vmatpush2.bf16.msra.mxu1 %v6187_v33  ;;  %2260 = vmatprep.subr.bf16.mxu0 %v6052_v34  ;;  %v6822_v34 = vld [vmem:[%s9985_s6 + $0xe4] ss:$28 sps:$4 sm:$0xff]  }
 0x201   :  { %2301 = vmatprep.subr.bf16.mxu1 %v6180_v35  ;;  %v6835_v35 = vld [vmem:[%s9985_s6 + $0x498] ss:$28 sps:$4 sm:$0xff]  }
 0x203   :  { %2261 = vmatpush2.bf16.msra.mxu0 %v6051_v40  ;;  %v6828_v40 = vld [vmem:[%s9985_s6 + $0xac] ss:$28 sps:$4 sm:$0xff]  }
 0x204   :  { %2302 = vmatpush2.bf16.msra.mxu1 %v6179_v41  ;;  %2262 = vmatprep.subr.bf16.mxu0 %v6044_v42  ;;  %v6841_v41 = vld [vmem:[%s9985_s6 + $0x460] ss:$28 sps:$4 sm:$0xff]   ;;  %v6849_v42 = vld [vmem:[%s9985_s6 + $0x42c] ss:$28 sps:$4 sm:$0xff]  }
 0x205   :  { %2303 = vmatprep.subr.bf16.mxu1 %v6172_v43  ;;  %v6826_v43 = vld [vmem:[%s9985_s6 + $0xa8] ss:$28 sps:$4 sm:$0xff]  }
 0x207   :  { %2263 = vmatpush2.bf16.msra.mxu0 %v6043_v48  ;;  %v6840_v48 = vld [vmem:[%s9985_s6 + $0x3c] ss:$28 sps:$4 sm:$0xff]  }
 0x208   :  { %2304 = vmatpush2.bf16.msra.mxu1 %v6171_v49  ;;  %2264 = vmatprep.subr.bf16.mxu0 %v6036_v50  ;;  %v6853_v49 = vld [vmem:[%s9985_s6 + $0x3f0] ss:$28 sps:$4 sm:$0xff]   ;;  %v6861_v50 = vld [vmem:[%s9985_s6 + $0x3bc] ss:$28 sps:$4 sm:$0xff]  }
 0x209   :  { %2305 = vmatprep.subr.bf16.mxu1 %v6164_v51  ;;  %v6838_v51 = vld [vmem:[%s9985_s6 + $0x38] ss:$28 sps:$4 sm:$0xff]  }
 0x20b   :  { %2265 = vmatpush2.bf16.msra.mxu0 %v6035_v57  ;;  %v6852_v57 = vld [vmem:[%s9985_s6 + $0x34c] ss:$28 sps:$4 sm:$0xff]  }
 0x20c   :  { %2306 = vmatpush2.bf16.msra.mxu1 %v6163_v58  ;;  %2266 = vmatprep.subr.bf16.mxu0 %v6028_v59  ;;  %v6865_v58 = vld [vmem:[%s9985_s6 + $0x380] ss:$28 sps:$4 sm:$0xff]   ;;  %v6873_v59 = vld [vmem:[%s9985_s6 + $0x6cc] ss:$28 sps:$4 sm:$0xff]  }
 0x20d   :  { %2307 = vmatprep.subr.bf16.mxu1 %v6156_v60  ;;  %v6850_v60 = vld [vmem:[%s9985_s6 + $0x348] ss:$28 sps:$4 sm:$0xff]  }
 0x20f   :  { %2267 = vmatpush2.bf16.msra.mxu0 %v6027_v52  ;;  %v6864_v52 = vld [vmem:[%s9985_s6 + $0x2dc] ss:$28 sps:$4 sm:$0xff]  }
 0x210   :  { %2308 = vmatpush2.bf16.msra.mxu1 %v6155_v6  ;;  %2268 = vmatprep.subr.bf16.mxu0 %v6020_v7  ;;  %v6877_v6 = vld [vmem:[%s9985_s6 + $0x690] ss:$28 sps:$4 sm:$0xff]   ;;  %v6885_v7 = vld [vmem:[%s9985_s6 + $0x65c] ss:$28 sps:$4 sm:$0xff]  }
 0x211   :  { %2309 = vmatprep.subr.bf16.mxu1 %v6148_v8  ;;  %v6862_v8 = vld [vmem:[%s9985_s6 + $0x2d8] ss:$28 sps:$4 sm:$0xff]  }
 0x213   :  { %2269 = vmatpush2.bf16.msra.mxu0 %v6019_v9  ;;  %v6870_v9 = vld [vmem:[%s9985_s6 + $0x2a4] ss:$28 sps:$4 sm:$0xff]  }
 0x214   :  { %2310 = vmatpush2.bf16.msra.mxu1 %v6147_v10  ;;  %5189 = vmatprep.subr.bf16.mxu0 %v6813_v11  ;;  %v6883_v10 = vld [vmem:[%s9985_s6 + $0x658] ss:$28 sps:$4 sm:$0xff]   ;;  %v6891_v11 = vld [vmem:[%s9985_s6 + $0x624] ss:$28 sps:$4 sm:$0xff]  }
 0x215   :  { %5230 = vmatprep.subr.bf16.mxu1 %v6825_v12  ;;  %v6868_v12 = vld [vmem:[%s9985_s6 + $0x2a0] ss:$28 sps:$4 sm:$0xff]  }
 0x216   :  { %2271 = vmatmul.mubr.bf16.vlgmr.msra.gmra.mxu0 %v7926_v30  ;;  %v8522_v19 = vpop.f32.mrf.mxu0  ;;  %v8524_v20 = vpop.f32.mrf.mxu1  ;;  %v6829_v30 = vld [vmem:[%s9985_s6 + $0x4d0] ss:$28 sps:$4 sm:$0xff]  }
 0x217   :  { %2312 = vmatmul.mubr.bf16.vlgmr.msra.gmra.mxu1 %v7928_v31  ;;  %5190 = vmatpush1.bf16.msra.mxu0 %v6811_v13  ;;  %v6837_v31 = vld [vmem:[%s9985_s6 + $0x49c] ss:$28 sps:$4 sm:$0xff]   ;;  %v6876_v13 = vld [vmem:[%s9985_s6 + $0x26c] ss:$28 sps:$4 sm:$0xff]  }
 0x218   :  { %v2028_v21 = vpop.f32.mrf.mxu0  ;;  %v2069_v29 = vpop.f32.mrf.mxu1  ;;  %5191 = vmatprep.subr.bf16.mxu0 %v6816_v15  ;;  %5231 = vmatpush1.bf16.msra.mxu1 %v6823_v16  ;;  %v6889_v15 = vld [vmem:[%s9985_s6 + $0x620] ss:$28 sps:$4 sm:$0xff]   ;;  %v6897_v16 = vld [vmem:[%s9985_s6 + $0x5ec] ss:$28 sps:$4 sm:$0xff]  }
 0x219   :  { %v2029_v23 = vadd.f32 %v2028_v21, %v679_v17  ;;  %5232 = vmatprep.subr.bf16.mxu1 %v6831_v18  ;;  %v6874_v17 = vld [vmem:[%s9985_s6 + $0x268] ss:$28 sps:$4 sm:$0xff]   ;;  %v675_v18 = vrot.slane %v8508_v14, %v7892_v0 }
 0x21a   :  { %v2030_v24 = vpop.f32.mrf.mxu0  ;;  %v2071_v25 = vpop.f32.mrf.mxu1  ;;  %v6895_v21 = vld [vmem:[%s9985_s6 + $0x5e8] ss:$28 sps:$4 sm:$0xff]  }
 0x21b   :  { %v2070_v26 = vadd.f32 %v2069_v29, %v2029_v23  ;;  %5192 = vmatpush1.bf16.msra.mxu0 %v6814_v28  ;;  %v6882_v28 = vld [vmem:[%s9985_s6 + $0x234] ss:$28 sps:$4 sm:$0xff]   ;;  %v6888_v23 = vld [vmem:[%s9985_s6 + $0x1fc] ss:$28 sps:$4 sm:$0xff]  }
 0x21c   :  { %v2031_v32 = vpop.f32.mrf.mxu0  ;;  %v2072_v33 = vpop.f32.mrf.mxu1  ;;  %5193 = vmatprep.subr.bf16.mxu0 %v6819_v22  ;;  %5233 = vmatpush1.bf16.msra.mxu1 %v6829_v30  ;;  %v6900_v29 = vld [vmem:[%s9985_s6 + $0x5b4] ss:$28 sps:$4 sm:$0xff]   ;;  %v2027_v30 = vadd.f32 %v8522_v19, %v675_v18  ;;  %v6903_v24 = vld [vmem:[%s9985_s6 + $0x57c] ss:$28 sps:$4 sm:$0xff]  }
 0x21d   :  { %v2321_v36 = vmax.f32 %v2070_v26, 0.0  ;;  %5234 = vmatprep.subr.bf16.mxu1 %v6837_v31  ;;  %v6880_v22 = vld [vmem:[%s9985_s6 + $0x230] ss:$28 sps:$4 sm:$0xff]   ;;  %v6886_v19 = vld [vmem:[%s9985_s6 + $0x1f8] ss:$28 sps:$4 sm:$0xff]  }
 0x21e   :  { %v6898_v31 = vld [vmem:[%s9985_s6 + $0x5b0] ss:$28 sps:$4 sm:$0xff]   ;;  %v2068_v25 = vadd.f32 %v8524_v20, %v2027_v30  ;;  %v6894_v26 = vld [vmem:[%s9985_s6 + $0x1c4] ss:$28 sps:$4 sm:$0xff]  }
 0x21f   :  { %v8551_v38 = vpack.c.bf16 %v2321_v36, %v2321_v36  ;;  %5194 = vmatpush1.bf16.msra.mxu0 %v6817_v27  ;;  %v6901_v27 = vld [vmem:[%s9985_s6 + $0x578] ss:$28 sps:$4 sm:$0xff]   ;;  %v6906_v32 = vld [vmem:[%s9985_s6 + $0x544] ss:$28 sps:$4 sm:$0xff]   ;;  %v6957_v36 = vld [vmem:[%s9985_s6 + $0xc0c] ss:$28 sps:$4 sm:$0xff]  }
 0x220   :  { %5195 = vmatprep.subr.bf16.mxu0 %v6822_v34  ;;  %5235 = vmatpush1.bf16.msra.mxu1 %v6835_v35  ;;  %v6892_v20 = vld [vmem:[%s9985_s6 + $0x1c0] ss:$28 sps:$4 sm:$0xff]   ;;  %v2320_v33 = vmax.f32 %v2068_v25, 0.0  ;;  %v6909_v35 = vld [vmem:[%s9985_s6 + $0x88c] ss:$28 sps:$4 sm:$0xff]  }
 0x221   :  { %5221 = vmatprep.mubr.bf16.mxu0 %v8551_v38  ;;  %5236 = vmatprep.subr.bf16.mxu1 %v6843_v37  ;;  %v6904_v34 = vld [vmem:[%s9985_s6 + $0x540] ss:$28 sps:$4 sm:$0xff]   ;;  %v683_v37 = vrot.slane %v8508_v14, %v7895_v1  ;;  %v6933_v30 = vld [vmem:[%s9985_s6 + $0xa4c] ss:$28 sps:$4 sm:$0xff]  }
 0x222   :  { %v6973_v18 = vld [vmem:[%s9985_s6 + $0xb60] ss:$28 sps:$4 sm:$0xff]  }
 0x223   :  { %5196 = vmatpush1.bf16.msra.mxu0 %v6820_v39  ;;  %v6907_v39 = vld [vmem:[%s9985_s6 + $0x888] ss:$28 sps:$4 sm:$0xff]   ;;  %v6993_v25 = vld [vmem:[%s9985_s6 + $0xabc] ss:$28 sps:$4 sm:$0xff]  }
 0x224   :  { %5197 = vmatprep.subr.bf16.mxu0 %v6828_v40  ;;  %5237 = vmatpush1.bf16.msra.mxu1 %v6841_v41  ;;  %v8719_v40 = vpack.c.bf16 %v2320_v33, %v2320_v33  ;;  %v6912_v41 = vld [vmem:[%s9985_s6 + $0x854] ss:$28 sps:$4 sm:$0xff]  }
 0x225   :  { %5238 = vmatprep.subr.bf16.mxu1 %v6849_v42  ;;  %v687_v42 = vrot.slane %v8508_v14, %v7904_v4  ;;  %v6937_v33 = vld [vmem:[%s9985_s6 + $0x9d8] ss:$28 sps:$4 sm:$0xff]  }
 0x227   :  { %5198 = vmatpush1.bf16.msra.mxu0 %v6826_v43 }
 0x228   :  { %5199 = vmatprep.subr.bf16.mxu0 %v6834_v44  ;;  %5239 = vmatpush1.bf16.msra.mxu1 %v6847_v45 }
 0x229   :  { %5240 = vmatprep.subr.bf16.mxu1 %v6855_v46  ;;  %v6910_v46 = vld [vmem:[%s9985_s6 + $0x850] ss:$28 sps:$4 sm:$0xff]  }
 0x22b   :  { %5200 = vmatpush1.bf16.msra.mxu0 %v6832_v47 }
 0x22c   :  { %5201 = vmatprep.subr.bf16.mxu0 %v6840_v48  ;;  %5241 = vmatpush1.bf16.msra.mxu1 %v6853_v49  ;;  %v6915_v49 = vld [vmem:[%s9985_s6 + $0x81c] ss:$28 sps:$4 sm:$0xff]  }
 0x22d   :  { %5242 = vmatprep.subr.bf16.mxu1 %v6861_v50 }
 0x22f   :  { %5202 = vmatpush1.bf16.msra.mxu0 %v6838_v51 }
 0x230   :  { %5203 = vmatprep.subr.bf16.mxu0 %v6846_v53  ;;  %5243 = vmatpush1.bf16.msra.mxu1 %v6859_v54 }
 0x231   :  { %5244 = vmatprep.subr.bf16.mxu1 %v6867_v55 }
 0x233   :  { %5204 = vmatpush1.bf16.msra.mxu0 %v6844_v56  ;;  %v6913_v56 = vld [vmem:[%s9985_s6 + $0x818] ss:$28 sps:$4 sm:$0xff]  }
 0x234   :  { %5205 = vmatprep.subr.bf16.mxu0 %v6852_v57  ;;  %5245 = vmatpush1.bf16.msra.mxu1 %v6865_v58 }
 0x235   :  { %5246 = vmatprep.subr.bf16.mxu1 %v6873_v59 }
 0x237   :  { %5206 = vmatpush2.bf16.msra.mxu0 %v6850_v60  ;;  %v6918_v60 = vld [vmem:[%s9985_s6 + $0x7e4] ss:$28 sps:$4 sm:$0xff]  }
 0x238   :  { %5207 = vmatprep.subr.bf16.mxu0 %v6858_v61  ;;  %5247 = vmatpush2.bf16.msra.mxu1 %v6871_v62 }
 0x239   :  { %5248 = vmatprep.subr.bf16.mxu1 %v6879_v2  ;;  %v6916_v2 = vld [vmem:[%s9985_s6 + $0x7e0] ss:$28 sps:$4 sm:$0xff]  }
 0x23b   :  { %5208 = vmatpush2.bf16.msra.mxu0 %v6856_v5  ;;  %v6955_v5 = vld [vmem:[%s9985_s6 + $0xc08] ss:$28 sps:$4 sm:$0xff]  }
 0x23c   :  { %5209 = vmatprep.subr.bf16.mxu0 %v6864_v52  ;;  %5249 = vmatpush2.bf16.msra.mxu1 %v6877_v6  ;;  %v6921_v6 = vld [vmem:[%s9985_s6 + $0x7ac] ss:$28 sps:$4 sm:$0xff]  }
 0x23d   :  { %5250 = vmatprep.subr.bf16.mxu1 %v6885_v7  ;;  %v6963_v7 = vld [vmem:[%s9985_s6 + $0xbd4] ss:$28 sps:$4 sm:$0xff]  }
 0x23f   :  { %5210 = vmatpush2.bf16.msra.mxu0 %v6862_v8  ;;  %v6919_v8 = vld [vmem:[%s9985_s6 + $0x7a8] ss:$28 sps:$4 sm:$0xff]  }
 0x240   :  { %5211 = vmatprep.subr.bf16.mxu0 %v6870_v9  ;;  %5251 = vmatpush2.bf16.msra.mxu1 %v6883_v10  ;;  %v6961_v9 = vld [vmem:[%s9985_s6 + $0xbd0] ss:$28 sps:$4 sm:$0xff]  }
 0x241   :  { %5252 = vmatprep.subr.bf16.mxu1 %v6891_v11  ;;  %v6924_v10 = vld [vmem:[%s9985_s6 + $0x774] ss:$28 sps:$4 sm:$0xff]   ;;  %v6969_v11 = vld [vmem:[%s9985_s6 + $0xb9c] ss:$28 sps:$4 sm:$0xff]  }
 0x243   :  { %5212 = vmatpush2.bf16.msra.mxu0 %v6868_v12  ;;  %v6922_v12 = vld [vmem:[%s9985_s6 + $0x770] ss:$28 sps:$4 sm:$0xff]  }
 0x244   :  { %5213 = vmatprep.subr.bf16.mxu0 %v6876_v13  ;;  %5253 = vmatpush2.bf16.msra.mxu1 %v6889_v15  ;;  %v6967_v13 = vld [vmem:[%s9985_s6 + $0xb98] ss:$28 sps:$4 sm:$0xff]  }
 0x245   :  { %5254 = vmatprep.subr.bf16.mxu1 %v6897_v16  ;;  %v6927_v15 = vld [vmem:[%s9985_s6 + $0x73c] ss:$28 sps:$4 sm:$0xff]   ;;  %v6975_v16 = vld [vmem:[%s9985_s6 + $0xb64] ss:$28 sps:$4 sm:$0xff]  }
 0x247   :  { %5214 = vmatpush2.bf16.msra.mxu0 %v6874_v17  ;;  %v6925_v17 = vld [vmem:[%s9985_s6 + $0x738] ss:$28 sps:$4 sm:$0xff]  }
 0x248   :  { %5215 = vmatprep.subr.bf16.mxu0 %v6882_v28  ;;  %5255 = vmatpush2.bf16.msra.mxu1 %v6895_v21  ;;  %v6930_v28 = vld [vmem:[%s9985_s6 + $0x704] ss:$28 sps:$4 sm:$0xff]   ;;  %v6981_v21 = vld [vmem:[%s9985_s6 + $0xb2c] ss:$28 sps:$4 sm:$0xff]  }
 0x249   :  { %5256 = vmatprep.subr.bf16.mxu1 %v6900_v29  ;;  %v6928_v29 = vld [vmem:[%s9985_s6 + $0x700] ss:$28 sps:$4 sm:$0xff]  }
 0x24b   :  { %5216 = vmatpush2.bf16.msra.mxu0 %v6880_v22  ;;  %v6979_v22 = vld [vmem:[%s9985_s6 + $0xb28] ss:$28 sps:$4 sm:$0xff]  }
 0x24c   :  { %5217 = vmatprep.subr.bf16.mxu0 %v6888_v23  ;;  %5257 = vmatpush2.bf16.msra.mxu1 %v6898_v31  ;;  %v6987_v23 = vld [vmem:[%s9985_s6 + $0xaf4] ss:$28 sps:$4 sm:$0xff]   ;;  %v6931_v31 = vld [vmem:[%s9985_s6 + $0xa48] ss:$28 sps:$4 sm:$0xff]  }
 0x24d   :  { %5258 = vmatprep.subr.bf16.mxu1 %v6903_v24  ;;  %v6985_v24 = vld [vmem:[%s9985_s6 + $0xaf0] ss:$28 sps:$4 sm:$0xff]  }
 0x24f   :  { %5218 = vmatpush2.bf16.msra.mxu0 %v6886_v19  ;;  %v6936_v19 = vld [vmem:[%s9985_s6 + $0xa14] ss:$28 sps:$4 sm:$0xff]  }
 0x250   :  { %5219 = vmatprep.subr.bf16.mxu0 %v6894_v26  ;;  %5259 = vmatpush2.bf16.msra.mxu1 %v6901_v27  ;;  %v6934_v26 = vld [vmem:[%s9985_s6 + $0xa10] ss:$28 sps:$4 sm:$0xff]   ;;  %v6991_v27 = vld [vmem:[%s9985_s6 + $0xab8] ss:$28 sps:$4 sm:$0xff]  }
 0x251   :  { %5260 = vmatprep.subr.bf16.mxu1 %v6906_v32  ;;  %v6939_v32 = vld [vmem:[%s9985_s6 + $0x9dc] ss:$28 sps:$4 sm:$0xff]  }
 0x253   :  { %5220 = vmatpush2.bf16.msra.mxu0 %v6892_v20  ;;  %v6999_v20 = vld [vmem:[%s9985_s6 + $0xa84] ss:$28 sps:$4 sm:$0xff]  }
 0x254   :  { %5261 = vmatpush2.bf16.msra.mxu1 %v6904_v34  ;;  %5271 = vmatprep.subr.bf16.mxu0 %v6909_v35  ;;  %v6997_v34 = vld [vmem:[%s9985_s6 + $0xa80] ss:$28 sps:$4 sm:$0xff]  }
 0x255   :  { %5312 = vmatprep.subr.bf16.mxu1 %v6957_v36  ;;  %v6942_v35 = vld [vmem:[%s9985_s6 + $0x9a4] ss:$28 sps:$4 sm:$0xff]   ;;  %v7005_v36 = vld [vmem:[%s9985_s6 + $0xdcc] ss:$28 sps:$4 sm:$0xff]  }
 0x256   :  { %v2108_v43 = vpop.f32.mrf.mxu0  ;;  %v2149_v44 = vpop.f32.mrf.mxu1  ;;  %5222 = vmatmul.mubr.bf16.vlgmr.msra.gmra.mxu0 %v8719_v40 }
 0x257   :  { %v2109_v45 = vadd.f32 %v2108_v43, %v683_v37  ;;  %5272 = vmatpush1.bf16.msra.mxu0 %v6907_v39  ;;  %v6940_v37 = vld [vmem:[%s9985_s6 + $0x9a0] ss:$28 sps:$4 sm:$0xff]   ;;  %v7003_v39 = vld [vmem:[%s9985_s6 + $0xdc8] ss:$28 sps:$4 sm:$0xff]  }
 0x258   :  { %v2110_v47 = vpop.f32.mrf.mxu0  ;;  %v2151_v48 = vpop.f32.mrf.mxu1  ;;  %5273 = vmatprep.subr.bf16.mxu0 %v6912_v41  ;;  %v6945_v41 = vld [vmem:[%s9985_s6 + $0x96c] ss:$28 sps:$4 sm:$0xff]  }
 0x259   :  { %v2150_v50 = vadd.f32 %v2149_v44, %v2109_v45  ;;  %v2111_v51 = vadd.f32 %v2110_v47, %v687_v42  ;;  %v7011_v42 = vld [vmem:[%s9985_s6 + $0xd94] ss:$28 sps:$4 sm:$0xff]   ;;  %v6943_v43 = vld [vmem:[%s9985_s6 + $0x968] ss:$28 sps:$4 sm:$0xff]  }
 0x25a   :  { %v2112_v53 = vpop.f32.mrf.mxu0  ;;  %v2153_v54 = vpop.f32.mrf.mxu1  ;;  %v7009_v44 = vld [vmem:[%s9985_s6 + $0xd90] ss:$28 sps:$4 sm:$0xff]  }
 0x25b   :  { %v2152_v55 = vadd.f32 %v2151_v48, %v2111_v51  ;;  %5274 = vmatpush1.bf16.msra.mxu0 %v6910_v46  ;;  %v2322_v57 = vmax.f32 %v2150_v50, 0.0  ;;  %v6948_v45 = vld [vmem:[%s9985_s6 + $0x934] ss:$28 sps:$4 sm:$0xff]   ;;  %v7017_v46 = vld [vmem:[%s9985_s6 + $0xd5c] ss:$28 sps:$4 sm:$0xff]  }
 0x25c   :  { %v2113_v58 = vpop.f32.mrf.mxu0  ;;  %v2154_v59 = vpop.f32.mrf.mxu1  ;;  %5275 = vmatprep.subr.bf16.mxu0 %v6915_v49  ;;  %v6946_v47 = vld [vmem:[%s9985_s6 + $0x930] ss:$28 sps:$4 sm:$0xff]   ;;  %v7015_v48 = vld [vmem:[%s9985_s6 + $0xd58] ss:$28 sps:$4 sm:$0xff]   ;;  %v7023_v50 = vld [vmem:[%s9985_s6 + $0xd24] ss:$28 sps:$4 sm:$0xff]  }
 0x25d   :  { %v2323_v61 = vmax.f32 %v2152_v55, 0.0  ;;  %v8747_v52 = vpack.c.bf16 %v2322_v57, %v2322_v57  ;;  %v6951_v49 = vld [vmem:[%s9985_s6 + $0x8fc] ss:$28 sps:$4 sm:$0xff]   ;;  %v6954_v54 = vld [vmem:[%s9985_s6 + $0x8c4] ss:$28 sps:$4 sm:$0xff]  }
 0x25e   :  { %v6949_v51 = vld [vmem:[%s9985_s6 + $0x8f8] ss:$28 sps:$4 sm:$0xff]   ;;  %v7021_v53 = vld [vmem:[%s9985_s6 + $0xd20] ss:$28 sps:$4 sm:$0xff]   ;;  %v7029_v55 = vld [vmem:[%s9985_s6 + $0xcec] ss:$28 sps:$4 sm:$0xff]  }
 0x25f   :  { %v8739_v62 = vpack.c.bf16 %v2323_v61, %v2323_v61  ;;  %5276 = vmatpush1.bf16.msra.mxu0 %v6913_v56  ;;  %v690_v56 = vsub.s32 4, %v7889_v63  ;;  %v6952_v57 = vld [vmem:[%s9985_s6 + $0x8c0] ss:$28 sps:$4 sm:$0xff]   ;;  %v7027_v58 = vld [vmem:[%s9985_s6 + $0xce8] ss:$28 sps:$4 sm:$0xff]   ;;  %v694_v61 = vsub.s32 5, %v7889_v63 }
 0x260   :  { %5277 = vmatprep.subr.bf16.mxu0 %v6918_v60  ;;  %v6960_v59 = vld [vmem:[%s9985_s6 + $0x194] ss:$28 sps:$4 sm:$0xff]  }
 0x261   :  { %5262 = vmatprep.mubr.bf16.mxu1 %v8739_v62  ;;  %v7035_v60 = vld [vmem:[%s9985_s6 + $0xcb4] ss:$28 sps:$4 sm:$0xff]  }
 0x262   :  { %5263 = vmatmul.mubr.bf16.vlgmr.msra.gmra.mxu1 %v8747_v52 }
 0x263   :  { %5278 = vmatpush1.bf16.msra.mxu0 %v6916_v2  ;;  %5313 = vmatpush1.bf16.msra.mxu1 %v6955_v5  ;;  %v691_v2 = vrot.slane %v8508_v14, %v690_v56  ;;  %v7033_v5 = vld [vmem:[%s9985_s6 + $0xcb0] ss:$28 sps:$4 sm:$0xff]  }
 0x264   :  { %5279 = vmatprep.subr.bf16.mxu0 %v6921_v6  ;;  %5314 = vmatprep.subr.bf16.mxu1 %v6963_v7  ;;  %v7041_v6 = vld [vmem:[%s9985_s6 + $0xc7c] ss:$28 sps:$4 sm:$0xff]   ;;  %v695_v7 = vrot.slane %v8508_v14, %v694_v61 }
 0x267   :  { %5280 = vmatpush1.bf16.msra.mxu0 %v6919_v8  ;;  %5315 = vmatpush1.bf16.msra.mxu1 %v6961_v9 }
 0x268   :  { %5281 = vmatprep.subr.bf16.mxu0 %v6924_v10  ;;  %5316 = vmatprep.subr.bf16.mxu1 %v6969_v11  ;;  %v7039_v11 = vld [vmem:[%s9985_s6 + $0xc78] ss:$28 sps:$4 sm:$0xff]  }
 0x26b   :  { %5282 = vmatpush1.bf16.msra.mxu0 %v6922_v12  ;;  %5317 = vmatpush1.bf16.msra.mxu1 %v6967_v13  ;;  %v7047_v13 = vld [vmem:[%s9985_s6 + $0xc44] ss:$28 sps:$4 sm:$0xff]  }
 0x26c   :  { %5283 = vmatprep.subr.bf16.mxu0 %v6927_v15  ;;  %5318 = vmatprep.subr.bf16.mxu1 %v6975_v16 }
 0x26f   :  { %5284 = vmatpush1.bf16.msra.mxu0 %v6925_v17  ;;  %5319 = vmatpush1.bf16.msra.mxu1 %v6973_v18 }
 0x270   :  { %5285 = vmatprep.subr.bf16.mxu0 %v6930_v28  ;;  %5320 = vmatprep.subr.bf16.mxu1 %v6981_v21 }
 0x273   :  { %5286 = vmatpush1.bf16.msra.mxu0 %v6928_v29  ;;  %5321 = vmatpush1.bf16.msra.mxu1 %v6979_v22  ;;  %v7045_v29 = vld [vmem:[%s9985_s6 + $0xc40] ss:$28 sps:$4 sm:$0xff]  }
 0x274   :  { %5287 = vmatprep.subr.bf16.mxu0 %v6933_v30  ;;  %5322 = vmatprep.subr.bf16.mxu1 %v6987_v23  ;;  %v7053_v23 = vld [vmem:[%s9985_s6 + $0x514] ss:$28 sps:$4 sm:$0xff]  }
 0x277   :  { %5288 = vmatpush2.bf16.msra.mxu0 %v6931_v31  ;;  %5323 = vmatpush1.bf16.msra.mxu1 %v6985_v24 }
 0x278   :  { %5289 = vmatprep.subr.bf16.mxu0 %v6936_v19  ;;  %5324 = vmatprep.subr.bf16.mxu1 %v6993_v25  ;;  %v6958_v25 = vld [vmem:[%s9985_s6 + $0x190] ss:$28 sps:$4 sm:$0xff]  }
 0x27b   :  { %5290 = vmatpush2.bf16.msra.mxu0 %v6934_v26  ;;  %5325 = vmatpush1.bf16.msra.mxu1 %v6991_v27  ;;  %v6966_v27 = vld [vmem:[%s9985_s6 + $0x15c] ss:$28 sps:$4 sm:$0xff]  }
 0x27c   :  { %5291 = vmatprep.subr.bf16.mxu0 %v6939_v32  ;;  %5326 = vmatprep.subr.bf16.mxu1 %v6999_v20  ;;  %v6964_v32 = vld [vmem:[%s9985_s6 + $0x158] ss:$28 sps:$4 sm:$0xff]   ;;  %v6972_v20 = vld [vmem:[%s9985_s6 + $0x124] ss:$28 sps:$4 sm:$0xff]  }
 0x27f   :  { %5292 = vmatpush2.bf16.msra.mxu0 %v6937_v33  ;;  %5327 = vmatpush1.bf16.msra.mxu1 %v6997_v34  ;;  %v6970_v33 = vld [vmem:[%s9985_s6 + $0x120] ss:$28 sps:$4 sm:$0xff]   ;;  %v6978_v34 = vld [vmem:[%s9985_s6 + $0xec] ss:$28 sps:$4 sm:$0xff]  }
 0x280   :  { %5293 = vmatprep.subr.bf16.mxu0 %v6942_v35  ;;  %5328 = vmatprep.subr.bf16.mxu1 %v7005_v36  ;;  %v6976_v35 = vld [vmem:[%s9985_s6 + $0xe8] ss:$28 sps:$4 sm:$0xff]   ;;  %v6984_v36 = vld [vmem:[%s9985_s6 + $0xb4] ss:$28 sps:$4 sm:$0xff]  }
 0x283   :  { %5294 = vmatpush2.bf16.msra.mxu0 %v6940_v37  ;;  %5329 = vmatpush2.bf16.msra.mxu1 %v7003_v39  ;;  %v6982_v37 = vld [vmem:[%s9985_s6 + $0xb0] ss:$28 sps:$4 sm:$0xff]   ;;  %v6990_v39 = vld [vmem:[%s9985_s6 + $0x7c] ss:$28 sps:$4 sm:$0xff]  }
 0x284   :  { %5295 = vmatprep.subr.bf16.mxu0 %v6945_v41  ;;  %5330 = vmatprep.subr.bf16.mxu1 %v7011_v42  ;;  %v6988_v41 = vld [vmem:[%s9985_s6 + $0x78] ss:$28 sps:$4 sm:$0xff]   ;;  %v6996_v42 = vld [vmem:[%s9985_s6 + $0x44] ss:$28 sps:$4 sm:$0xff]  }
 0x287   :  { %5296 = vmatpush2.bf16.msra.mxu0 %v6943_v43  ;;  %5331 = vmatpush2.bf16.msra.mxu1 %v7009_v44  ;;  %v6994_v43 = vld [vmem:[%s9985_s6 + $0x40] ss:$28 sps:$4 sm:$0xff]   ;;  %v7002_v44 = vld [vmem:[%s9985_s6 + $0xc] ss:$28 sps:$4 sm:$0xff]  }
 0x288   :  { %5297 = vmatprep.subr.bf16.mxu0 %v6948_v45  ;;  %5332 = vmatprep.subr.bf16.mxu1 %v7017_v46  ;;  %v7000_v45 = vld [vmem:[%s9985_s6 + $0x8] ss:$28 sps:$4 sm:$0xff]   ;;  %v7008_v46 = vld [vmem:[%s9985_s6 + $0x354] ss:$28 sps:$4 sm:$0xff]  }
 0x28b   :  { %5298 = vmatpush2.bf16.msra.mxu0 %v6946_v47  ;;  %5333 = vmatpush2.bf16.msra.mxu1 %v7015_v48  ;;  %v7006_v47 = vld [vmem:[%s9985_s6 + $0x350] ss:$28 sps:$4 sm:$0xff]   ;;  %v7014_v48 = vld [vmem:[%s9985_s6 + $0x31c] ss:$28 sps:$4 sm:$0xff]  }
 0x28c   :  { %5299 = vmatprep.subr.bf16.mxu0 %v6951_v49  ;;  %5334 = vmatprep.subr.bf16.mxu1 %v7023_v50  ;;  %v7012_v49 = vld [vmem:[%s9985_s6 + $0x318] ss:$28 sps:$4 sm:$0xff]   ;;  %v7020_v50 = vld [vmem:[%s9985_s6 + $0x2e4] ss:$28 sps:$4 sm:$0xff]  }
 0x28f   :  { %5300 = vmatpush2.bf16.msra.mxu0 %v6949_v51  ;;  %5335 = vmatpush2.bf16.msra.mxu1 %v7021_v53  ;;  %v7018_v51 = vld [vmem:[%s9985_s6 + $0x2e0] ss:$28 sps:$4 sm:$0xff]   ;;  %v7026_v53 = vld [vmem:[%s9985_s6 + $0x2ac] ss:$28 sps:$4 sm:$0xff]  }
 0x290   :  { %5301 = vmatprep.subr.bf16.mxu0 %v6954_v54  ;;  %5336 = vmatprep.subr.bf16.mxu1 %v7029_v55  ;;  %v7024_v54 = vld [vmem:[%s9985_s6 + $0x2a8] ss:$28 sps:$4 sm:$0xff]   ;;  %v7032_v55 = vld [vmem:[%s9985_s6 + $0x274] ss:$28 sps:$4 sm:$0xff]  }
 0x293   :  { %5302 = vmatpush2.bf16.msra.mxu0 %v6952_v57  ;;  %5337 = vmatpush2.bf16.msra.mxu1 %v7027_v58  ;;  %v7030_v57 = vld [vmem:[%s9985_s6 + $0x270] ss:$28 sps:$4 sm:$0xff]   ;;  %v698_v58 = vsub.s32 6, %v7889_v63 }
 0x294   :  { %5353 = vmatprep.subr.bf16.mxu0 %v6960_v59  ;;  %5338 = vmatprep.subr.bf16.mxu1 %v7035_v60  ;;  %v7038_v59 = vld [vmem:[%s9985_s6 + $0x23c] ss:$28 sps:$4 sm:$0xff]   ;;  %v702_v60 = vsub.s32 7, %v7889_v63 }
 0x296   :  { %v2190_v8 = vpop.f32.mrf.mxu0 }
 0x297   :  { %v2191_v9 = vadd.f32 %v2190_v8, %v691_v2  ;;  %v2231_v10 = vpop.f32.mrf.mxu1  ;;  %5339 = vmatpush2.bf16.msra.mxu1 %v7033_v5  ;;  %v7036_v2 = vld [vmem:[%s9985_s6 + $0x238] ss:$28 sps:$4 sm:$0xff]   ;;  %v699_v5 = vrot.slane %v8508_v14, %v698_v58 }
 0x298   :  { %v2192_v12 = vpop.f32.mrf.mxu0  ;;  %5340 = vmatprep.subr.bf16.mxu1 %v7041_v6  ;;  %v7044_v6 = vld [vmem:[%s9985_s6 + $0x204] ss:$28 sps:$4 sm:$0xff]  }
 0x299   :  { %v2232_v15 = vadd.f32 %v2231_v10, %v2191_v9  ;;  %v2193_v16 = vadd.f32 %v2192_v12, %v695_v7  ;;  %v2233_v17 = vpop.f32.mrf.mxu1  ;;  %v703_v7 = vrot.slane %v8508_v14, %v702_v60  ;;  %v7090_v60 = vld [vmem:[%s9985_s6 + $0x740] ss:$28 sps:$4 sm:$0xff]  }
 0x29a   :  { %v2194_v18 = vpop.f32.mrf.mxu0 }
 0x29b   :  { %v2234_v28 = vadd.f32 %v2233_v17, %v2193_v16  ;;  %v2235_v21 = vpop.f32.mrf.mxu1  ;;  %5341 = vmatpush2.bf16.msra.mxu1 %v7039_v11  ;;  %v2324_v22 = vmax.f32 %v2232_v15, 0.0  ;;  %v7042_v11 = vld [vmem:[%s9985_s6 + $0x200] ss:$28 sps:$4 sm:$0xff]  }
 0x29c   :  { %v2195_v30 = vpop.f32.mrf.mxu0  ;;  %5342 = vmatprep.subr.bf16.mxu1 %v7047_v13  ;;  %v7050_v13 = vld [vmem:[%s9985_s6 + $0x1cc] ss:$28 sps:$4 sm:$0xff]  }
 0x29d   :  { %v2325_v31 = vmax.f32 %v2234_v28, 0.0  ;;  %v2236_v24 = vpop.f32.mrf.mxu1  ;;  %v8932_v26 = vpack.c.bf16 %v2324_v22, %v2324_v22  ;;  %v7048_v21 = vld [vmem:[%s9985_s6 + $0x1c8] ss:$28 sps:$4 sm:$0xff]   ;;  %v7056_v30 = vld [vmem:[%s9985_s6 + $0x894] ss:$28 sps:$4 sm:$0xff]  }
 0x29f   :  { %v8927_v19 = vpack.c.bf16 %v2325_v31, %v2325_v31  ;;  %5343 = vmatpush2.bf16.msra.mxu1 %v7045_v29 }
 0x2a0   :  { %5394 = vmatprep.subr.bf16.mxu1 %v7053_v23 }
 0x2a1   :  { %5303 = vmatprep.mubr.bf16.mxu0 %v8927_v19 }
 0x2a2   :  { %5304 = vmatmul.mubr.bf16.vlgmr.msra.gmra.mxu0 %v8932_v26 }
 0x2a3   :  { %5354 = vmatpush1.bf16.msra.mxu0 %v6958_v25  ;;  %5385 = vmatprep.mubr.bf16.mxu0 %v8551_v38  ;;  %v7051_v25 = vld [vmem:[%s9985_s6 + $0x510] ss:$28 sps:$4 sm:$0xff]  }
 0x2a4   :  { %5355 = vmatprep.subr.bf16.mxu0 %v6966_v27  ;;  %v7054_v27 = vld [vmem:[%s9985_s6 + $0x890] ss:$28 sps:$4 sm:$0xff]  }
 0x2a7   :  { %5356 = vmatpush1.bf16.msra.mxu0 %v6964_v32 }
 0x2a8   :  { %5357 = vmatprep.subr.bf16.mxu0 %v6972_v20  ;;  %v7059_v20 = vld [vmem:[%s9985_s6 + $0x4dc] ss:$28 sps:$4 sm:$0xff]  }
 0x2ab   :  { %5358 = vmatpush1.bf16.msra.mxu0 %v6970_v33  ;;  %v7062_v33 = vld [vmem:[%s9985_s6 + $0x85c] ss:$28 sps:$4 sm:$0xff]  }
 0x2ac   :  { %5359 = vmatprep.subr.bf16.mxu0 %v6978_v34  ;;  %v7057_v34 = vld [vmem:[%s9985_s6 + $0x4d8] ss:$28 sps:$4 sm:$0xff]  }
 0x2af   :  { %5360 = vmatpush1.bf16.msra.mxu0 %v6976_v35  ;;  %v7060_v35 = vld [vmem:[%s9985_s6 + $0x858] ss:$28 sps:$4 sm:$0xff]  }
 0x2b0   :  { %5361 = vmatprep.subr.bf16.mxu0 %v6984_v36  ;;  %v7065_v36 = vld [vmem:[%s9985_s6 + $0x4a4] ss:$28 sps:$4 sm:$0xff]  }
 0x2b3   :  { %5362 = vmatpush1.bf16.msra.mxu0 %v6982_v37  ;;  %v7068_v37 = vld [vmem:[%s9985_s6 + $0x824] ss:$28 sps:$4 sm:$0xff]  }
 0x2b4   :  { %5363 = vmatprep.subr.bf16.mxu0 %v6990_v39  ;;  %v7063_v39 = vld [vmem:[%s9985_s6 + $0x4a0] ss:$28 sps:$4 sm:$0xff]  }
 0x2b7   :  { %5364 = vmatpush1.bf16.msra.mxu0 %v6988_v41  ;;  %v7066_v41 = vld [vmem:[%s9985_s6 + $0x820] ss:$28 sps:$4 sm:$0xff]  }
 0x2b8   :  { %5365 = vmatprep.subr.bf16.mxu0 %v6996_v42  ;;  %v7071_v42 = vld [vmem:[%s9985_s6 + $0x46c] ss:$28 sps:$4 sm:$0xff]  }
 0x2bb   :  { %5366 = vmatpush1.bf16.msra.mxu0 %v6994_v43  ;;  %v7074_v43 = vld [vmem:[%s9985_s6 + $0x7ec] ss:$28 sps:$4 sm:$0xff]  }
 0x2bc   :  { %5367 = vmatprep.subr.bf16.mxu0 %v7002_v44  ;;  %v7069_v44 = vld [vmem:[%s9985_s6 + $0x468] ss:$28 sps:$4 sm:$0xff]  }
 0x2bf   :  { %5368 = vmatpush1.bf16.msra.mxu0 %v7000_v45  ;;  %v7072_v45 = vld [vmem:[%s9985_s6 + $0x7e8] ss:$28 sps:$4 sm:$0xff]  }
 0x2c0   :  { %5369 = vmatprep.subr.bf16.mxu0 %v7008_v46  ;;  %v7077_v46 = vld [vmem:[%s9985_s6 + $0x434] ss:$28 sps:$4 sm:$0xff]  }
 0x2c3   :  { %5370 = vmatpush2.bf16.msra.mxu0 %v7006_v47  ;;  %v7080_v47 = vld [vmem:[%s9985_s6 + $0x7b4] ss:$28 sps:$4 sm:$0xff]  }
 0x2c4   :  { %5371 = vmatprep.subr.bf16.mxu0 %v7014_v48  ;;  %v7075_v48 = vld [vmem:[%s9985_s6 + $0x430] ss:$28 sps:$4 sm:$0xff]  }
 0x2c7   :  { %5372 = vmatpush2.bf16.msra.mxu0 %v7012_v49  ;;  %v7078_v49 = vld [vmem:[%s9985_s6 + $0x7b0] ss:$28 sps:$4 sm:$0xff]  }
 0x2c8   :  { %5373 = vmatprep.subr.bf16.mxu0 %v7020_v50  ;;  %v7083_v50 = vld [vmem:[%s9985_s6 + $0x3fc] ss:$28 sps:$4 sm:$0xff]  }
 0x2cb   :  { %5374 = vmatpush2.bf16.msra.mxu0 %v7018_v51  ;;  %v7086_v51 = vld [vmem:[%s9985_s6 + $0x77c] ss:$28 sps:$4 sm:$0xff]  }
 0x2cc   :  { %5375 = vmatprep.subr.bf16.mxu0 %v7026_v53  ;;  %v7081_v53 = vld [vmem:[%s9985_s6 + $0x3f8] ss:$28 sps:$4 sm:$0xff]  }
 0x2cf   :  { %5376 = vmatpush2.bf16.msra.mxu0 %v7024_v54  ;;  %v7084_v54 = vld [vmem:[%s9985_s6 + $0x778] ss:$28 sps:$4 sm:$0xff]  }
 0x2d0   :  { %5377 = vmatprep.subr.bf16.mxu0 %v7032_v55  ;;  %v7089_v55 = vld [vmem:[%s9985_s6 + $0x3c4] ss:$28 sps:$4 sm:$0xff]  }
 0x2d3   :  { %5378 = vmatpush2.bf16.msra.mxu0 %v7030_v57  ;;  %v7092_v57 = vld [vmem:[%s9985_s6 + $0x744] ss:$28 sps:$4 sm:$0xff]  }
 0x2d4   :  { %5379 = vmatprep.subr.bf16.mxu0 %v7038_v59  ;;  %v7087_v59 = vld [vmem:[%s9985_s6 + $0x3c0] ss:$28 sps:$4 sm:$0xff]  }
 0x2d6   :  { %v2272_v8 = vpop.f32.mrf.mxu0 }
 0x2d7   :  { %v2273_v9 = vadd.f32 %v2272_v8, %v699_v5  ;;  %v2313_v10 = vpop.f32.mrf.mxu1  ;;  %5380 = vmatpush2.bf16.msra.mxu0 %v7036_v2  ;;  %v7095_v2 = vld [vmem:[%s9985_s6 + $0x38c] ss:$28 sps:$4 sm:$0xff]   ;;  %v7101_v8 = vld [vmem:[%s9985_s6 + $0x6d4] ss:$28 sps:$4 sm:$0xff]  }
 0x2d8   :  { %v2274_v12 = vpop.f32.mrf.mxu0  ;;  %5381 = vmatprep.subr.bf16.mxu0 %v7044_v6  ;;  %v7098_v5 = vld [vmem:[%s9985_s6 + $0x70c] ss:$28 sps:$4 sm:$0xff]  }
 0x2d9   :  { %v2314_v15 = vadd.f32 %v2313_v10, %v2273_v9  ;;  %v2275_v16 = vadd.f32 %v2274_v12, %v703_v7  ;;  %v2315_v17 = vpop.f32.mrf.mxu1  ;;  %v7093_v6 = vld [vmem:[%s9985_s6 + $0x388] ss:$28 sps:$4 sm:$0xff]   ;;  %v7104_v9 = vld [vmem:[%s9985_s6 + $0xa54] ss:$28 sps:$4 sm:$0xff]   ;;  %v7107_v12 = vld [vmem:[%s9985_s6 + $0x69c] ss:$28 sps:$4 sm:$0xff]  }
 0x2da   :  { %v2276_v18 = vpop.f32.mrf.mxu0  ;;  %v7096_v7 = vld [vmem:[%s9985_s6 + $0x708] ss:$28 sps:$4 sm:$0xff]   ;;  %v7099_v10 = vld [vmem:[%s9985_s6 + $0x6d0] ss:$28 sps:$4 sm:$0xff]  }
 0x2db   :  { %v2316_v28 = vadd.f32 %v2315_v17, %v2275_v16  ;;  %v2317_v14 = vpop.f32.mrf.mxu1  ;;  %5382 = vmatpush2.bf16.msra.mxu0 %v7042_v11  ;;  %v2326_v29 = vmax.f32 %v2314_v15, 0.0  ;;  %v7102_v11 = vld [vmem:[%s9985_s6 + $0xa50] ss:$28 sps:$4 sm:$0xff]   ;;  %v7105_v15 = vld [vmem:[%s9985_s6 + $0x698] ss:$28 sps:$4 sm:$0xff]  }
 0x2dc   :  { %v2277_v22 = vpop.f32.mrf.mxu0  ;;  %5383 = vmatprep.subr.bf16.mxu0 %v7050_v13  ;;  %v7110_v13 = vld [vmem:[%s9985_s6 + $0xa1c] ss:$28 sps:$4 sm:$0xff]   ;;  %v7113_v17 = vld [vmem:[%s9985_s6 + $0x664] ss:$28 sps:$4 sm:$0xff]  }
 0x2dd   :  { %v2327_v23 = vmax.f32 %v2316_v28, 0.0  ;;  %v2318_v31 = vpop.f32.mrf.mxu1  ;;  %v9044_v32 = vpack.c.bf16 %v2326_v29, %v2326_v29  ;;  %v7108_v16 = vld [vmem:[%s9985_s6 + $0xa18] ss:$28 sps:$4 sm:$0xff]   ;;  %v7116_v18 = vld [vmem:[%s9985_s6 + $0x9e4] ss:$28 sps:$4 sm:$0xff]  }
 0x2de   :  { %v7111_v28 = vld [vmem:[%s9985_s6 + $0x660] ss:$28 sps:$4 sm:$0xff]   ;;  %v7122_v29 = vld [vmem:[%s9985_s6 + $0x9ac] ss:$28 sps:$4 sm:$0xff]   ;;  %v7128_v31 = vld [vmem:[%s9985_s6 + $0x974] ss:$28 sps:$4 sm:$0xff]  }
 0x2df   :  { %v9036_v24 = vpack.c.bf16 %v2327_v23, %v2327_v23  ;;  %5384 = vmatpush2.bf16.msra.mxu0 %v7048_v21  ;;  %v7114_v14 = vld [vmem:[%s9985_s6 + $0x9e0] ss:$28 sps:$4 sm:$0xff]   ;;  %v7119_v21 = vld [vmem:[%s9985_s6 + $0x62c] ss:$28 sps:$4 sm:$0xff]   ;;  %v7125_v23 = vld [vmem:[%s9985_s6 + $0x5f4] ss:$28 sps:$4 sm:$0xff]  }
 0x2e0   :  { %5435 = vmatprep.subr.bf16.mxu0 %v7056_v30  ;;  %v7117_v22 = vld [vmem:[%s9985_s6 + $0x628] ss:$28 sps:$4 sm:$0xff]  }
 0x2e1   :  { %5344 = vmatprep.mubr.bf16.mxu1 %v9036_v24  ;;  %v7120_v30 = vld [vmem:[%s9985_s6 + $0x9a8] ss:$28 sps:$4 sm:$0xff]  }
 0x2e2   :  { %5386 = vmatmul.mubr.bf16.vlgmr.msra.gmra.mxu0 %v8719_v40  ;;  %5345 = vmatmul.mubr.bf16.vlgmr.msra.gmra.mxu1 %v9044_v32 }
 0x2e3   :  { %5395 = vmatpush1.bf16.msra.mxu1 %v7051_v25  ;;  %5436 = vmatpush1.bf16.msra.mxu0 %v7054_v27  ;;  %v7123_v25 = vld [vmem:[%s9985_s6 + $0x5f0] ss:$28 sps:$4 sm:$0xff]  }
 0x2e4   :  { %5467 = vmatprep.mubr.bf16.mxu0 %v8927_v19  ;;  %5426 = vmatprep.mubr.bf16.mxu1 %v8739_v62  ;;  %v7126_v27 = vld [vmem:[%s9985_s6 + $0x970] ss:$28 sps:$4 sm:$0xff]  }
 0x2e5   :  { %5396 = vmatprep.subr.bf16.mxu1 %v7059_v20  ;;  %5437 = vmatprep.subr.bf16.mxu0 %v7062_v33  ;;  %v7131_v20 = vld [vmem:[%s9985_s6 + $0x5bc] ss:$28 sps:$4 sm:$0xff]  }
 0x2e6   :  { %v7134_v33 = vld [vmem:[%s9985_s6 + $0x93c] ss:$28 sps:$4 sm:$0xff]  }
 0x2e7   :  { %5397 = vmatpush1.bf16.msra.mxu1 %v7057_v34  ;;  %5438 = vmatpush1.bf16.msra.mxu0 %v7060_v35  ;;  %v7129_v34 = vld [vmem:[%s9985_s6 + $0x5b8] ss:$28 sps:$4 sm:$0xff]  }
 0x2e8   :  { %5398 = vmatprep.subr.bf16.mxu1 %v7065_v36  ;;  %5439 = vmatprep.subr.bf16.mxu0 %v7068_v37  ;;  %v7132_v35 = vld [vmem:[%s9985_s6 + $0x938] ss:$28 sps:$4 sm:$0xff]   ;;  %v7137_v36 = vld [vmem:[%s9985_s6 + $0x584] ss:$28 sps:$4 sm:$0xff]  }
 0x2e9   :  { %v7140_v37 = vld [vmem:[%s9985_s6 + $0x904] ss:$28 sps:$4 sm:$0xff]  }
 0x2eb   :  { %5399 = vmatpush1.bf16.msra.mxu1 %v7063_v39  ;;  %5440 = vmatpush1.bf16.msra.mxu0 %v7066_v41  ;;  %v7135_v41 = vld [vmem:[%s9985_s6 + $0x580] ss:$28 sps:$4 sm:$0xff]  }
 0x2ec   :  { %5400 = vmatprep.subr.bf16.mxu1 %v7071_v42  ;;  %5441 = vmatprep.subr.bf16.mxu0 %v7074_v43  ;;  %v7138_v42 = vld [vmem:[%s9985_s6 + $0x900] ss:$28 sps:$4 sm:$0xff]  }
 0x2ef   :  { %5401 = vmatpush1.bf16.msra.mxu1 %v7069_v44  ;;  %5442 = vmatpush1.bf16.msra.mxu0 %v7072_v45  ;;  %v7143_v44 = vld [vmem:[%s9985_s6 + $0x54c] ss:$28 sps:$4 sm:$0xff]  }
 0x2f0   :  { %5402 = vmatprep.subr.bf16.mxu1 %v7077_v46  ;;  %5443 = vmatprep.subr.bf16.mxu0 %v7080_v47  ;;  %v7146_v45 = vld [vmem:[%s9985_s6 + $0x8cc] ss:$28 sps:$4 sm:$0xff]   ;;  %v2848_v46 = vld [vmem:[%s9986_s7] sm:$0x7f] }
 0x2f3   :  { %5403 = vmatpush1.bf16.msra.mxu1 %v7075_v48  ;;  %5444 = vmatpush1.bf16.msra.mxu0 %v7078_v49  ;;  %v7141_v48 = vld [vmem:[%s9985_s6 + $0x548] ss:$28 sps:$4 sm:$0xff]  }
 0x2f4   :  { %5404 = vmatprep.subr.bf16.mxu1 %v7083_v50  ;;  %5445 = vmatprep.subr.bf16.mxu0 %v7086_v51  ;;  %v7144_v49 = vld [vmem:[%s9985_s6 + $0x8c8] ss:$28 sps:$4 sm:$0xff]   ;;  %v7149_v51 = vld [vmem:[%s9985_s6 + $0xc14] ss:$28 sps:$4 sm:$0xff]  }
 0x2f7   :  { %5405 = vmatpush1.bf16.msra.mxu1 %v7081_v53  ;;  %5446 = vmatpush1.bf16.msra.mxu0 %v7084_v54  ;;  %v7152_v53 = vld [vmem:[%s9985_s6 + $0x19c] ss:$28 sps:$4 sm:$0xff]   ;;  %v2853_v54 = vrot.slane %v2848_v46, %v7892_v0  ;;  %v7158_v0 = vld [vmem:[%s9985_s6 + $0x164] ss:$28 sps:$4 sm:$0xff]  }
 0x2f8   :  { %5406 = vmatprep.subr.bf16.mxu1 %v7089_v55  ;;  %5447 = vmatprep.subr.bf16.mxu0 %v7092_v57  ;;  %v2857_v55 = vrot.slane %v2848_v46, %v7901_v3  ;;  %v7147_v57 = vld [vmem:[%s9985_s6 + $0xc10] ss:$28 sps:$4 sm:$0xff]   ;;  %v7198_v46 = vld [vmem:[%s9985_s6 + $0x358] ss:$28 sps:$4 sm:$0xff]  }
 0x2fb   :  { %5407 = vmatpush1.bf16.msra.mxu1 %v7087_v59  ;;  %5448 = vmatpush1.bf16.msra.mxu0 %v7090_v60  ;;  %v7150_v59 = vld [vmem:[%s9985_s6 + $0x198] ss:$28 sps:$4 sm:$0xff]  }
 0x2fc   :  { %5408 = vmatprep.subr.bf16.mxu1 %v7095_v2  ;;  %5449 = vmatprep.subr.bf16.mxu0 %v7098_v5  ;;  %v7155_v2 = vld [vmem:[%s9985_s6 + $0xbdc] ss:$28 sps:$4 sm:$0xff]  }
 0x2ff   :  { %5409 = vmatpush1.bf16.msra.mxu1 %v7093_v6  ;;  %5450 = vmatpush1.bf16.msra.mxu0 %v7096_v7  ;;  %v7153_v7 = vld [vmem:[%s9985_s6 + $0xbd8] ss:$28 sps:$4 sm:$0xff]  }
 0x300   :  { %5410 = vmatprep.subr.bf16.mxu1 %v7101_v8  ;;  %5451 = vmatprep.subr.bf16.mxu0 %v7104_v9  ;;  %v7156_v9 = vld [vmem:[%s9985_s6 + $0x160] ss:$28 sps:$4 sm:$0xff]  }
 0x303   :  { %5411 = vmatpush2.bf16.msra.mxu1 %v7099_v10  ;;  %5452 = vmatpush2.bf16.msra.mxu0 %v7102_v11  ;;  %v7161_v10 = vld [vmem:[%s9985_s6 + $0xba4] ss:$28 sps:$4 sm:$0xff]  }
 0x304   :  { %5412 = vmatprep.subr.bf16.mxu1 %v7107_v12  ;;  %5453 = vmatprep.subr.bf16.mxu0 %v7110_v13  ;;  %v7164_v12 = vld [vmem:[%s9985_s6 + $0x12c] ss:$28 sps:$4 sm:$0xff]  }
 0x307   :  { %5413 = vmatpush2.bf16.msra.mxu1 %v7105_v15  ;;  %5454 = vmatpush2.bf16.msra.mxu0 %v7108_v16  ;;  %v7159_v15 = vld [vmem:[%s9985_s6 + $0xba0] ss:$28 sps:$4 sm:$0xff]  }
 0x308   :  { %5414 = vmatprep.subr.bf16.mxu1 %v7113_v17  ;;  %5455 = vmatprep.subr.bf16.mxu0 %v7116_v18  ;;  %v7162_v17 = vld [vmem:[%s9985_s6 + $0x128] ss:$28 sps:$4 sm:$0xff]  }
 0x309   :  { %v7167_v18 = vld [vmem:[%s9985_s6 + $0xb6c] ss:$28 sps:$4 sm:$0xff]  }
 0x30b   :  { %5415 = vmatpush2.bf16.msra.mxu1 %v7111_v28  ;;  %5456 = vmatpush2.bf16.msra.mxu0 %v7114_v14  ;;  %v7170_v28 = vld [vmem:[%s9985_s6 + $0xf4] ss:$28 sps:$4 sm:$0xff]   ;;  %v7165_v14 = vld [vmem:[%s9985_s6 + $0xb68] ss:$28 sps:$4 sm:$0xff]  }
 0x30c   :  { %5416 = vmatprep.subr.bf16.mxu1 %v7119_v21  ;;  %5457 = vmatprep.subr.bf16.mxu0 %v7122_v29  ;;  %v7168_v21 = vld [vmem:[%s9985_s6 + $0xf0] ss:$28 sps:$4 sm:$0xff]  }
 0x30d   :  { %v7173_v29 = vld [vmem:[%s9985_s6 + $0xb34] ss:$28 sps:$4 sm:$0xff]  }
 0x30f   :  { %5417 = vmatpush2.bf16.msra.mxu1 %v7117_v22  ;;  %5458 = vmatpush2.bf16.msra.mxu0 %v7120_v30  ;;  %v7176_v22 = vld [vmem:[%s9985_s6 + $0xbc] ss:$28 sps:$4 sm:$0xff]   ;;  %v7171_v30 = vld [vmem:[%s9985_s6 + $0xb30] ss:$28 sps:$4 sm:$0xff]  }
 0x310   :  { %5418 = vmatprep.subr.bf16.mxu1 %v7125_v23  ;;  %5459 = vmatprep.subr.bf16.mxu0 %v7128_v31  ;;  %v7174_v23 = vld [vmem:[%s9985_s6 + $0xb8] ss:$28 sps:$4 sm:$0xff]  }
 0x311   :  { %v7179_v31 = vld [vmem:[%s9985_s6 + $0xafc] ss:$28 sps:$4 sm:$0xff]  }
 0x313   :  { %5419 = vmatpush2.bf16.msra.mxu1 %v7123_v25  ;;  %5460 = vmatpush2.bf16.msra.mxu0 %v7126_v27  ;;  %v7182_v25 = vld [vmem:[%s9985_s6 + $0x84] ss:$28 sps:$4 sm:$0xff]   ;;  %v7177_v27 = vld [vmem:[%s9985_s6 + $0xaf8] ss:$28 sps:$4 sm:$0xff]  }
 0x314   :  { %5420 = vmatprep.subr.bf16.mxu1 %v7131_v20  ;;  %5461 = vmatprep.subr.bf16.mxu0 %v7134_v33  ;;  %v7180_v20 = vld [vmem:[%s9985_s6 + $0x80] ss:$28 sps:$4 sm:$0xff]  }
 0x315   :  { %v7185_v33 = vld [vmem:[%s9985_s6 + $0xac4] ss:$28 sps:$4 sm:$0xff]  }
 0x316   :  { %v5223_v39 = vpop.f32.mrf.mxu0 }
 0x317   :  { %5421 = vmatpush2.bf16.msra.mxu1 %v7129_v34  ;;  %5462 = vmatpush2.bf16.msra.mxu0 %v7132_v35  ;;  %v5224_v60 = vadd.f32 %v5223_v39, %v2853_v54  ;;  %v7188_v34 = vld [vmem:[%s9985_s6 + $0x4c] ss:$28 sps:$4 sm:$0xff]   ;;  %v7183_v35 = vld [vmem:[%s9985_s6 + $0xac0] ss:$28 sps:$4 sm:$0xff]   ;;  %v7194_v39 = vld [vmem:[%s9985_s6 + $0x14] ss:$28 sps:$4 sm:$0xff]  }
 0x318   :  { %v5225_v43 = vpop.f32.mrf.mxu0  ;;  %5422 = vmatprep.subr.bf16.mxu1 %v7137_v36  ;;  %5463 = vmatprep.subr.bf16.mxu0 %v7140_v37  ;;  %v7186_v36 = vld [vmem:[%s9985_s6 + $0x48] ss:$28 sps:$4 sm:$0xff]   ;;  %v7207_v54 = vld [vmem:[%s9985_s6 + $0xd60] ss:$28 sps:$4 sm:$0xff]  }
 0x319   :  { %v5226_v5 = vadd.f32 %v5225_v43, %v2857_v55  ;;  %v7191_v37 = vld [vmem:[%s9985_s6 + $0xa8c] ss:$28 sps:$4 sm:$0xff]   ;;  %v7197_v43 = vld [vmem:[%s9985_s6 + $0xdd4] ss:$28 sps:$4 sm:$0xff]  }
 0x31a   :  { %v5227_v47 = vpop.f32.mrf.mxu0  ;;  %v7210_v55 = vld [vmem:[%s9985_s6 + $0x2e8] ss:$28 sps:$4 sm:$0xff]  }
 0x31b   :  { %5423 = vmatpush2.bf16.msra.mxu1 %v7135_v41  ;;  %5464 = vmatpush2.bf16.msra.mxu0 %v7138_v42  ;;  %v7189_v41 = vld [vmem:[%s9985_s6 + $0xa88] ss:$28 sps:$4 sm:$0xff]   ;;  %v7192_v42 = vld [vmem:[%s9985_s6 + $0x10] ss:$28 sps:$4 sm:$0xff]   ;;  %v7203_v47 = vld [vmem:[%s9985_s6 + $0xd9c] ss:$28 sps:$4 sm:$0xff]  }
 0x31c   :  { %v5228_v50 = vpop.f32.mrf.mxu0  ;;  %5424 = vmatprep.subr.bf16.mxu1 %v7143_v44  ;;  %5465 = vmatprep.subr.bf16.mxu0 %v7146_v45  ;;  %v7200_v44 = vld [vmem:[%s9985_s6 + $0x35c] ss:$28 sps:$4 sm:$0xff]   ;;  %v7195_v45 = vld [vmem:[%s9985_s6 + $0xdd0] ss:$28 sps:$4 sm:$0xff]  }
 0x31d   :  { %v7204_v50 = vld [vmem:[%s9985_s6 + $0x320] ss:$28 sps:$4 sm:$0xff]  }
 0x31f   :  { %5425 = vmatpush2.bf16.msra.mxu1 %v7141_v48  ;;  %5466 = vmatpush2.bf16.msra.mxu0 %v7144_v49  ;;  %v7206_v48 = vld [vmem:[%s9985_s6 + $0x324] ss:$28 sps:$4 sm:$0xff]   ;;  %v7201_v49 = vld [vmem:[%s9985_s6 + $0xd98] ss:$28 sps:$4 sm:$0xff]  }
 0x320   :  { %5476 = vmatprep.subr.bf16.mxu1 %v7149_v51  ;;  %5517 = vmatprep.subr.bf16.mxu0 %v7152_v53  ;;  %v7209_v51 = vld [vmem:[%s9985_s6 + $0xd64] ss:$28 sps:$4 sm:$0xff]   ;;  %v7212_v53 = vld [vmem:[%s9985_s6 + $0x2ec] ss:$28 sps:$4 sm:$0xff]  }
 0x322   :  { %5427 = vmatmul.mubr.bf16.vlgmr.msra.gmra.mxu1 %v8747_v52  ;;  %5468 = vmatmul.mubr.bf16.vlgmr.msra.gmra.mxu0 %v8932_v26  ;;  %v5264_v3 = vpop.f32.mrf.mxu1 }
 0x323   :  { %v9256_v6 = vadd.f32 %v5264_v3, %v5224_v60  ;;  %5477 = vmatpush1.bf16.msra.mxu1 %v7147_v57  ;;  %5508 = vmatprep.mubr.bf16.mxu1 %v9036_v24  ;;  %v7215_v57 = vld [vmem:[%s9985_s6 + $0xd2c] ss:$28 sps:$4 sm:$0xff]   ;;  %v7224_v3 = vld [vmem:[%s9985_s6 + $0x27c] ss:$28 sps:$4 sm:$0xff]  }
 0x324   :  { %5518 = vmatpush1.bf16.msra.mxu0 %v7150_v59  ;;  %5549 = vmatprep.mubr.bf16.mxu0 %v8551_v38  ;;  %v5266_v8 = vpop.f32.mrf.mxu1  ;;  %v7218_v59 = vld [vmem:[%s9985_s6 + $0x2b4] ss:$28 sps:$4 sm:$0xff]   ;;  %v7213_v60 = vld [vmem:[%s9985_s6 + $0xd28] ss:$28 sps:$4 sm:$0xff]  }
 0x325   :  { %v9269_v11 = vadd.f32 %v5266_v8, %v5226_v5  ;;  %5478 = vmatprep.subr.bf16.mxu1 %v7155_v2  ;;  %5519 = vmatprep.subr.bf16.mxu0 %v7158_v0  ;;  %v7216_v2 = vld [vmem:[%s9985_s6 + $0x2b0] ss:$28 sps:$4 sm:$0xff]   ;;  %v7227_v8 = vld [vmem:[%s9985_s6 + $0xcbc] ss:$28 sps:$4 sm:$0xff]  }
 0x326   :  { %v5268_v13 = vpop.f32.mrf.mxu1  ;;  %v7221_v0 = vld [vmem:[%s9985_s6 + $0xcf4] ss:$28 sps:$4 sm:$0xff]  }
 0x327   :  { %5479 = vmatpush1.bf16.msra.mxu1 %v7153_v7  ;;  %v7219_v5 = vld [vmem:[%s9985_s6 + $0xcf0] ss:$28 sps:$4 sm:$0xff]   ;;  %v7222_v7 = vld [vmem:[%s9985_s6 + $0x278] ss:$28 sps:$4 sm:$0xff]   ;;  %v7233_v13 = vld [vmem:[%s9985_s6 + $0xc84] ss:$28 sps:$4 sm:$0xff]  }
 0x328   :  { %5520 = vmatpush1.bf16.msra.mxu0 %v7156_v9  ;;  %v5269_v16 = vpop.f32.mrf.mxu1  ;;  %5480 = vmatprep.subr.bf16.mxu1 %v7161_v10  ;;  %v7230_v9 = vld [vmem:[%s9985_s6 + $0x244] ss:$28 sps:$4 sm:$0xff]   ;;  %v7225_v10 = vld [vmem:[%s9985_s6 + $0xcb8] ss:$28 sps:$4 sm:$0xff]  }
 0x329   :  { %5521 = vmatprep.subr.bf16.mxu0 %v7164_v12  ;;  %v7228_v12 = vld [vmem:[%s9985_s6 + $0x240] ss:$28 sps:$4 sm:$0xff]  }
 0x32a   :  { %v7231_v16 = vld [vmem:[%s9985_s6 + $0xc80] ss:$28 sps:$4 sm:$0xff]  }
 0x32b   :  { %5481 = vmatpush1.bf16.msra.mxu1 %v7159_v15  ;;  %v7236_v15 = vld [vmem:[%s9985_s6 + $0x20c] ss:$28 sps:$4 sm:$0xff]  }
 0x32c   :  { %5522 = vmatpush1.bf16.msra.mxu0 %v7162_v17  ;;  %5482 = vmatprep.subr.bf16.mxu1 %v7167_v18  ;;  %v7234_v17 = vld [vmem:[%s9985_s6 + $0x208] ss:$28 sps:$4 sm:$0xff]  }
 0x32d   :  { %5523 = vmatprep.subr.bf16.mxu0 %v7170_v28  ;;  %v7239_v18 = vld [vmem:[%s9985_s6 + $0xc4c] ss:$28 sps:$4 sm:$0xff]   ;;  %v7242_v28 = vld [vmem:[%s9985_s6 + $0x1d4] ss:$28 sps:$4 sm:$0xff]  }
 0x32f   :  { %5483 = vmatpush1.bf16.msra.mxu1 %v7165_v14  ;;  %v7237_v14 = vld [vmem:[%s9985_s6 + $0xc48] ss:$28 sps:$4 sm:$0xff]  }
 0x330   :  { %5524 = vmatpush1.bf16.msra.mxu0 %v7168_v21  ;;  %5484 = vmatprep.subr.bf16.mxu1 %v7173_v29  ;;  %v7240_v21 = vld [vmem:[%s9985_s6 + $0x1d0] ss:$28 sps:$4 sm:$0xff]   ;;  %v7245_v29 = vld [vmem:[%s9985_s6 + $0x51c] ss:$28 sps:$4 sm:$0xff]  }
 0x331   :  { %5525 = vmatprep.subr.bf16.mxu0 %v7176_v22  ;;  %v7248_v22 = vld [vmem:[%s9985_s6 + $0x89c] ss:$28 sps:$4 sm:$0xff]  }
 0x333   :  { %5485 = vmatpush1.bf16.msra.mxu1 %v7171_v30  ;;  %v7243_v30 = vld [vmem:[%s9985_s6 + $0x518] ss:$28 sps:$4 sm:$0xff]  }
 0x334   :  { %5526 = vmatpush1.bf16.msra.mxu0 %v7174_v23  ;;  %5486 = vmatprep.subr.bf16.mxu1 %v7179_v31  ;;  %v7246_v23 = vld [vmem:[%s9985_s6 + $0x898] ss:$28 sps:$4 sm:$0xff]   ;;  %v7251_v31 = vld [vmem:[%s9985_s6 + $0x4e4] ss:$28 sps:$4 sm:$0xff]  }
 0x335   :  { %5527 = vmatprep.subr.bf16.mxu0 %v7182_v25 }
 0x337   :  { %5487 = vmatpush1.bf16.msra.mxu1 %v7177_v27  ;;  %v7254_v27 = vld [vmem:[%s9985_s6 + $0x864] ss:$28 sps:$4 sm:$0xff]  }
 0x338   :  { %5528 = vmatpush1.bf16.msra.mxu0 %v7180_v20  ;;  %5488 = vmatprep.subr.bf16.mxu1 %v7185_v33  ;;  %v7249_v20 = vld [vmem:[%s9985_s6 + $0x4e0] ss:$28 sps:$4 sm:$0xff]  }
 0x339   :  { %5529 = vmatprep.subr.bf16.mxu0 %v7188_v34  ;;  %v7252_v34 = vld [vmem:[%s9985_s6 + $0x860] ss:$28 sps:$4 sm:$0xff]  }
 0x33b   :  { %5489 = vmatpush1.bf16.msra.mxu1 %v7183_v35  ;;  %v7257_v35 = vld [vmem:[%s9985_s6 + $0x4ac] ss:$28 sps:$4 sm:$0xff]  }
 0x33c   :  { %5530 = vmatpush1.bf16.msra.mxu0 %v7186_v36  ;;  %5490 = vmatprep.subr.bf16.mxu1 %v7191_v37  ;;  %v7260_v36 = vld [vmem:[%s9985_s6 + $0x82c] ss:$28 sps:$4 sm:$0xff]  }
 0x33d   :  { %5531 = vmatprep.subr.bf16.mxu0 %v7194_v39  ;;  %v7255_v39 = vld [vmem:[%s9985_s6 + $0x4a8] ss:$28 sps:$4 sm:$0xff]  }
 0x33f   :  { %5491 = vmatpush1.bf16.msra.mxu1 %v7189_v41 }
 0x340   :  { %5532 = vmatpush1.bf16.msra.mxu0 %v7192_v42  ;;  %5492 = vmatprep.subr.bf16.mxu1 %v7197_v43  ;;  %v7258_v42 = vld [vmem:[%s9985_s6 + $0x828] ss:$28 sps:$4 sm:$0xff]   ;;  %v7263_v43 = vld [vmem:[%s9985_s6 + $0x474] ss:$28 sps:$4 sm:$0xff]  }
 0x341   :  { %5533 = vmatprep.subr.bf16.mxu0 %v7200_v44  ;;  %v7266_v44 = vld [vmem:[%s9985_s6 + $0x7f4] ss:$28 sps:$4 sm:$0xff]  }
 0x343   :  { %5493 = vmatpush2.bf16.msra.mxu1 %v7195_v45  ;;  %v7261_v45 = vld [vmem:[%s9985_s6 + $0x470] ss:$28 sps:$4 sm:$0xff]  }
 0x344   :  { %5534 = vmatpush2.bf16.msra.mxu0 %v7198_v46  ;;  %5494 = vmatprep.subr.bf16.mxu1 %v7203_v47  ;;  %v7264_v46 = vld [vmem:[%s9985_s6 + $0x7f0] ss:$28 sps:$4 sm:$0xff]   ;;  %v7269_v47 = vld [vmem:[%s9985_s6 + $0x43c] ss:$28 sps:$4 sm:$0xff]  }
 0x345   :  { %5535 = vmatprep.subr.bf16.mxu0 %v7206_v48  ;;  %v7272_v48 = vld [vmem:[%s9985_s6 + $0x7bc] ss:$28 sps:$4 sm:$0xff]  }
 0x347   :  { %5495 = vmatpush2.bf16.msra.mxu1 %v7201_v49  ;;  %v7267_v49 = vld [vmem:[%s9985_s6 + $0x438] ss:$28 sps:$4 sm:$0xff]  }
 0x348   :  { %5536 = vmatpush2.bf16.msra.mxu0 %v7204_v50  ;;  %5496 = vmatprep.subr.bf16.mxu1 %v7209_v51  ;;  %v7270_v50 = vld [vmem:[%s9985_s6 + $0x7b8] ss:$28 sps:$4 sm:$0xff]   ;;  %v7275_v51 = vld [vmem:[%s9985_s6 + $0x404] ss:$28 sps:$4 sm:$0xff]  }
 0x349   :  { %5537 = vmatprep.subr.bf16.mxu0 %v7212_v53  ;;  %v7278_v53 = vld [vmem:[%s9985_s6 + $0x784] ss:$28 sps:$4 sm:$0xff]  }
 0x34b   :  { %5497 = vmatpush2.bf16.msra.mxu1 %v7207_v54  ;;  %v7273_v54 = vld [vmem:[%s9985_s6 + $0x400] ss:$28 sps:$4 sm:$0xff]  }
 0x34c   :  { %5538 = vmatpush2.bf16.msra.mxu0 %v7210_v55  ;;  %5498 = vmatprep.subr.bf16.mxu1 %v7215_v57  ;;  %v7276_v55 = vld [vmem:[%s9985_s6 + $0x780] ss:$28 sps:$4 sm:$0xff]   ;;  %v7281_v57 = vld [vmem:[%s9985_s6 + $0x3cc] ss:$28 sps:$4 sm:$0xff]  }
 0x34d   :  { %5539 = vmatprep.subr.bf16.mxu0 %v7218_v59  ;;  %v7284_v59 = vld [vmem:[%s9985_s6 + $0x74c] ss:$28 sps:$4 sm:$0xff]  }
 0x34f   :  { %5499 = vmatpush2.bf16.msra.mxu1 %v7213_v60  ;;  %v7279_v60 = vld [vmem:[%s9985_s6 + $0x3c8] ss:$28 sps:$4 sm:$0xff]  }
 0x350   :  { %5540 = vmatpush2.bf16.msra.mxu0 %v7216_v2  ;;  %5500 = vmatprep.subr.bf16.mxu1 %v7221_v0  ;;  %v7282_v2 = vld [vmem:[%s9985_s6 + $0x748] ss:$28 sps:$4 sm:$0xff]   ;;  %v7287_v0 = vld [vmem:[%s9985_s6 + $0x394] ss:$28 sps:$4 sm:$0xff]  }
 0x351   :  { %5541 = vmatprep.subr.bf16.mxu0 %v7224_v3  ;;  %v7290_v3 = vld [vmem:[%s9985_s6 + $0x714] ss:$28 sps:$4 sm:$0xff]  }
 0x353   :  { %5501 = vmatpush2.bf16.msra.mxu1 %v7219_v5  ;;  %v7285_v5 = vld [vmem:[%s9985_s6 + $0x390] ss:$28 sps:$4 sm:$0xff]  }
 0x354   :  { %5542 = vmatpush2.bf16.msra.mxu0 %v7222_v7  ;;  %5502 = vmatprep.subr.bf16.mxu1 %v7227_v8  ;;  %v7288_v7 = vld [vmem:[%s9985_s6 + $0x710] ss:$28 sps:$4 sm:$0xff]   ;;  %v7293_v8 = vld [vmem:[%s9985_s6 + $0x6dc] ss:$28 sps:$4 sm:$0xff]  }
 0x355   :  { %5543 = vmatprep.subr.bf16.mxu0 %v7230_v9  ;;  %v7296_v9 = vld [vmem:[%s9985_s6 + $0xa5c] ss:$28 sps:$4 sm:$0xff]  }
 0x357   :  { %5503 = vmatpush2.bf16.msra.mxu1 %v7225_v10  ;;  %v7291_v10 = vld [vmem:[%s9985_s6 + $0x6d8] ss:$28 sps:$4 sm:$0xff]  }
 0x358   :  { %5544 = vmatpush2.bf16.msra.mxu0 %v7228_v12  ;;  %5504 = vmatprep.subr.bf16.mxu1 %v7233_v13  ;;  %v7294_v12 = vld [vmem:[%s9985_s6 + $0xa58] ss:$28 sps:$4 sm:$0xff]   ;;  %v7299_v13 = vld [vmem:[%s9985_s6 + $0x6a4] ss:$28 sps:$4 sm:$0xff]  }
 0x359   :  { %5545 = vmatprep.subr.bf16.mxu0 %v7236_v15  ;;  %v7302_v15 = vld [vmem:[%s9985_s6 + $0xa24] ss:$28 sps:$4 sm:$0xff]  }
 0x35b   :  { %5505 = vmatpush2.bf16.msra.mxu1 %v7231_v16  ;;  %v7297_v16 = vld [vmem:[%s9985_s6 + $0x6a0] ss:$28 sps:$4 sm:$0xff]  }
 0x35c   :  { %5546 = vmatpush2.bf16.msra.mxu0 %v7234_v17  ;;  %5506 = vmatprep.subr.bf16.mxu1 %v7239_v18  ;;  %v7300_v17 = vld [vmem:[%s9985_s6 + $0xa20] ss:$28 sps:$4 sm:$0xff]   ;;  %v7305_v18 = vld [vmem:[%s9985_s6 + $0x66c] ss:$28 sps:$4 sm:$0xff]  }
 0x35d   :  { %5547 = vmatprep.subr.bf16.mxu0 %v7242_v28  ;;  %v7308_v28 = vld [vmem:[%s9985_s6 + $0x9ec] ss:$28 sps:$4 sm:$0xff]  }
 0x35f   :  { %5507 = vmatpush2.bf16.msra.mxu1 %v7237_v14  ;;  %v7303_v14 = vld [vmem:[%s9985_s6 + $0x668] ss:$28 sps:$4 sm:$0xff]  }
 0x360   :  { %5548 = vmatpush2.bf16.msra.mxu0 %v7240_v21  ;;  %5558 = vmatprep.subr.bf16.mxu1 %v7245_v29  ;;  %v7306_v21 = vld [vmem:[%s9985_s6 + $0x9e8] ss:$28 sps:$4 sm:$0xff]   ;;  %v7311_v29 = vld [vmem:[%s9985_s6 + $0x634] ss:$28 sps:$4 sm:$0xff]  }
 0x361   :  { %5599 = vmatprep.subr.bf16.mxu0 %v7248_v22  ;;  %v7314_v22 = vld [vmem:[%s9985_s6 + $0x9b4] ss:$28 sps:$4 sm:$0xff]  }
 0x362   :  { %5509 = vmatmul.mubr.bf16.vlgmr.msra.gmra.mxu1 %v9044_v32  ;;  %v9452_v25 = vpop.f32.mrf.mxu0 }
 0x363   :  { %5550 = vmatmul.mubr.bf16.vlgmr.msra.gmra.mxu0 %v8719_v40  ;;  %5559 = vmatpush1.bf16.msra.mxu1 %v7243_v30  ;;  %v7309_v30 = vld [vmem:[%s9985_s6 + $0x630] ss:$28 sps:$4 sm:$0xff]  }
 0x364   :  { %5590 = vmatprep.mubr.bf16.mxu1 %v8739_v62  ;;  %5600 = vmatpush1.bf16.msra.mxu0 %v7246_v23  ;;  %v9462_v33 = vpop.f32.mrf.mxu0  ;;  %v7312_v23 = vld [vmem:[%s9985_s6 + $0x9b0] ss:$28 sps:$4 sm:$0xff]  }
 0x365   :  { %5631 = vmatprep.mubr.bf16.mxu0 %v8927_v19  ;;  %5560 = vmatprep.subr.bf16.mxu1 %v7251_v31  ;;  %v7317_v31 = vld [vmem:[%s9985_s6 + $0x5fc] ss:$28 sps:$4 sm:$0xff]  }
 0x366   :  { %5601 = vmatprep.subr.bf16.mxu0 %v7254_v27  ;;  %v5309_v37 = vpop.f32.mrf.mxu0  ;;  %v7320_v27 = vld [vmem:[%s9985_s6 + $0x97c] ss:$28 sps:$4 sm:$0xff]  }
 0x367   :  { %5561 = vmatpush1.bf16.msra.mxu1 %v7249_v20  ;;  %v7315_v20 = vld [vmem:[%s9985_s6 + $0x5f8] ss:$28 sps:$4 sm:$0xff]   ;;  %v7321_v37 = vld [vmem:[%s9985_s6 + $0x5c0] ss:$28 sps:$4 sm:$0xff]  }
 0x368   :  { %5602 = vmatpush1.bf16.msra.mxu0 %v7252_v34  ;;  %v5310_v41 = vpop.f32.mrf.mxu0  ;;  %5562 = vmatprep.subr.bf16.mxu1 %v7257_v35  ;;  %v7318_v34 = vld [vmem:[%s9985_s6 + $0x978] ss:$28 sps:$4 sm:$0xff]   ;;  %v7323_v35 = vld [vmem:[%s9985_s6 + $0x5c4] ss:$28 sps:$4 sm:$0xff]  }
 0x369   :  { %5603 = vmatprep.subr.bf16.mxu0 %v7260_v36  ;;  %v7326_v36 = vld [vmem:[%s9985_s6 + $0x944] ss:$28 sps:$4 sm:$0xff]   ;;  %v7329_v41 = vld [vmem:[%s9985_s6 + $0x58c] ss:$28 sps:$4 sm:$0xff]  }
 0x36b   :  { %5563 = vmatpush1.bf16.msra.mxu1 %v7255_v39  ;;  %v7324_v39 = vld [vmem:[%s9985_s6 + $0x940] ss:$28 sps:$4 sm:$0xff]  }
 0x36c   :  { %5604 = vmatpush1.bf16.msra.mxu0 %v7258_v42  ;;  %5564 = vmatprep.subr.bf16.mxu1 %v7263_v43  ;;  %v7332_v42 = vld [vmem:[%s9985_s6 + $0x90c] ss:$28 sps:$4 sm:$0xff]  }
 0x36d   :  { %5605 = vmatprep.subr.bf16.mxu0 %v7266_v44  ;;  %v7327_v43 = vld [vmem:[%s9985_s6 + $0x588] ss:$28 sps:$4 sm:$0xff]  }
 0x36e   :  { %v7330_v44 = vld [vmem:[%s9985_s6 + $0x908] ss:$28 sps:$4 sm:$0xff]  }
 0x36f   :  { %5565 = vmatpush1.bf16.msra.mxu1 %v7261_v45  ;;  %v7335_v45 = vld [vmem:[%s9985_s6 + $0x554] ss:$28 sps:$4 sm:$0xff]  }
 0x370   :  { %5606 = vmatpush1.bf16.msra.mxu0 %v7264_v46  ;;  %5566 = vmatprep.subr.bf16.mxu1 %v7269_v47  ;;  %v7338_v46 = vld [vmem:[%s9985_s6 + $0x8d4] ss:$28 sps:$4 sm:$0xff]  }
 0x371   :  { %5607 = vmatprep.subr.bf16.mxu0 %v7272_v48  ;;  %v7333_v47 = vld [vmem:[%s9985_s6 + $0x550] ss:$28 sps:$4 sm:$0xff]  }
 0x372   :  { %v7336_v48 = vld [vmem:[%s9985_s6 + $0x8d0] ss:$28 sps:$4 sm:$0xff]  }
 0x373   :  { %5567 = vmatpush1.bf16.msra.mxu1 %v7267_v49  ;;  %v7341_v49 = vld [vmem:[%s9985_s6 + $0xc1c] ss:$28 sps:$4 sm:$0xff]  }
 0x374   :  { %5608 = vmatpush1.bf16.msra.mxu0 %v7270_v50  ;;  %5568 = vmatprep.subr.bf16.mxu1 %v7275_v51  ;;  %v7342_v50 = vld [vmem:[%s9985_s6 + $0x360] ss:$28 sps:$4 sm:$0xff]   ;;  %v7339_v51 = vld [vmem:[%s9985_s6 + $0xc18] ss:$28 sps:$4 sm:$0xff]  }
 0x375   :  { %5609 = vmatprep.subr.bf16.mxu0 %v7278_v53  ;;  %v7343_v53 = vld [vmem:[%s9985_s6 + $0x1a0] ss:$28 sps:$4 sm:$0xff]  }
 0x377   :  { %5569 = vmatpush1.bf16.msra.mxu1 %v7273_v54  ;;  %v5306_v54 = vadd.f32 %v9452_v25, %v9256_v6  ;;  %v7344_v25 = vld [vmem:[%s9985_s6 + $0xbe0] ss:$28 sps:$4 sm:$0xff]  }
 0x378   :  { %5610 = vmatpush1.bf16.msra.mxu0 %v7276_v55  ;;  %5570 = vmatprep.subr.bf16.mxu1 %v7281_v57  ;;  %v7346_v55 = vld [vmem:[%s9985_s6 + $0xbe4] ss:$28 sps:$4 sm:$0xff]  }
 0x379   :  { %5611 = vmatprep.subr.bf16.mxu0 %v7284_v59 }
 0x37b   :  { %5571 = vmatpush1.bf16.msra.mxu1 %v7279_v60  ;;  %v7347_v60 = vld [vmem:[%s9985_s6 + $0x328] ss:$28 sps:$4 sm:$0xff]  }
 0x37c   :  { %5612 = vmatpush1.bf16.msra.mxu0 %v7282_v2  ;;  %5572 = vmatprep.subr.bf16.mxu1 %v7287_v0  ;;  %v5308_v2 = vadd.f32 %v9462_v33, %v9269_v11  ;;  %v7351_v11 = vld [vmem:[%s9985_s6 + $0xbac] ss:$28 sps:$4 sm:$0xff]  }
 0x37d   :  { %5613 = vmatprep.subr.bf16.mxu0 %v7290_v3 }
 0x37f   :  { %5573 = vmatpush1.bf16.msra.mxu1 %v7285_v5  ;;  %v7348_v5 = vld [vmem:[%s9985_s6 + $0x168] ss:$28 sps:$4 sm:$0xff]  }
 0x380   :  { %5614 = vmatpush1.bf16.msra.mxu0 %v7288_v7  ;;  %5574 = vmatprep.subr.bf16.mxu1 %v7293_v8  ;;  %v7352_v8 = vld [vmem:[%s9985_s6 + $0x2f0] ss:$28 sps:$4 sm:$0xff]  }
 0x381   :  { %5615 = vmatprep.subr.bf16.mxu0 %v7296_v9 }
 0x383   :  { %5575 = vmatpush2.bf16.msra.mxu1 %v7291_v10 }
 0x384   :  { %5616 = vmatpush2.bf16.msra.mxu0 %v7294_v12  ;;  %5576 = vmatprep.subr.bf16.mxu1 %v7299_v13  ;;  %v7349_v13 = vld [vmem:[%s9985_s6 + $0xba8] ss:$28 sps:$4 sm:$0xff]  }
 0x385   :  { %5617 = vmatprep.subr.bf16.mxu0 %v7302_v15 }
 0x387   :  { %5577 = vmatpush2.bf16.msra.mxu1 %v7297_v16 }
 0x388   :  { %5618 = vmatpush2.bf16.msra.mxu0 %v7300_v17  ;;  %5578 = vmatprep.subr.bf16.mxu1 %v7305_v18  ;;  %v7356_v17 = vld [vmem:[%s9985_s6 + $0xb74] ss:$28 sps:$4 sm:$0xff]  }
 0x389   :  { %5619 = vmatprep.subr.bf16.mxu0 %v7308_v28  ;;  %v7357_v18 = vld [vmem:[%s9985_s6 + $0x2b8] ss:$28 sps:$4 sm:$0xff]   ;;  %v7354_v28 = vld [vmem:[%s9985_s6 + $0xb70] ss:$28 sps:$4 sm:$0xff]  }
 0x38b   :  { %5579 = vmatpush2.bf16.msra.mxu1 %v7303_v14  ;;  %v7358_v14 = vld [vmem:[%s9985_s6 + $0xf8] ss:$28 sps:$4 sm:$0xff]  }
 0x38c   :  { %5620 = vmatpush2.bf16.msra.mxu0 %v7306_v21  ;;  %5580 = vmatprep.subr.bf16.mxu1 %v7311_v29  ;;  %v7361_v21 = vld [vmem:[%s9985_s6 + $0xb3c] ss:$28 sps:$4 sm:$0xff]  }
 0x38d   :  { %5621 = vmatprep.subr.bf16.mxu0 %v7314_v22  ;;  %v7362_v29 = vld [vmem:[%s9985_s6 + $0x280] ss:$28 sps:$4 sm:$0xff]   ;;  %v7359_v22 = vld [vmem:[%s9985_s6 + $0xb38] ss:$28 sps:$4 sm:$0xff]  }
 0x38f   :  { %5581 = vmatpush2.bf16.msra.mxu1 %v7309_v30  ;;  %v7363_v30 = vld [vmem:[%s9985_s6 + $0xc0] ss:$28 sps:$4 sm:$0xff]  }
 0x390   :  { %5622 = vmatpush2.bf16.msra.mxu0 %v7312_v23  ;;  %5582 = vmatprep.subr.bf16.mxu1 %v7317_v31  ;;  %v7366_v23 = vld [vmem:[%s9985_s6 + $0xb04] ss:$28 sps:$4 sm:$0xff]  }
 0x391   :  { %5623 = vmatprep.subr.bf16.mxu0 %v7320_v27  ;;  %v7367_v31 = vld [vmem:[%s9985_s6 + $0x248] ss:$28 sps:$4 sm:$0xff]   ;;  %v7364_v27 = vld [vmem:[%s9985_s6 + $0xb00] ss:$28 sps:$4 sm:$0xff]  }
 0x393   :  { %5583 = vmatpush2.bf16.msra.mxu1 %v7315_v20 }
 0x394   :  { %5624 = vmatpush2.bf16.msra.mxu0 %v7318_v34  ;;  %5584 = vmatprep.subr.bf16.mxu1 %v7323_v35  ;;  %v7368_v34 = vld [vmem:[%s9985_s6 + $0x88] ss:$28 sps:$4 sm:$0xff]  }
 0x395   :  { %5625 = vmatprep.subr.bf16.mxu0 %v7326_v36  ;;  %v7371_v35 = vld [vmem:[%s9985_s6 + $0xacc] ss:$28 sps:$4 sm:$0xff]  }
 0x397   :  { %5585 = vmatpush2.bf16.msra.mxu1 %v7321_v37  ;;  %v7372_v37 = vld [vmem:[%s9985_s6 + $0x210] ss:$28 sps:$4 sm:$0xff]  }
 0x398   :  { %5626 = vmatpush2.bf16.msra.mxu0 %v7324_v39  ;;  %5586 = vmatprep.subr.bf16.mxu1 %v7329_v41 }
 0x399   :  { %5627 = vmatprep.subr.bf16.mxu0 %v7332_v42  ;;  %v7369_v42 = vld [vmem:[%s9985_s6 + $0xac8] ss:$28 sps:$4 sm:$0xff]  }
 0x39b   :  { %5587 = vmatpush2.bf16.msra.mxu1 %v7327_v43  ;;  %v7373_v43 = vld [vmem:[%s9985_s6 + $0x50] ss:$28 sps:$4 sm:$0xff]  }
 0x39c   :  { %5628 = vmatpush2.bf16.msra.mxu0 %v7330_v44  ;;  %5588 = vmatprep.subr.bf16.mxu1 %v7335_v45  ;;  %v7376_v44 = vld [vmem:[%s9985_s6 + $0xa94] ss:$28 sps:$4 sm:$0xff]  }
 0x39d   :  { %5629 = vmatprep.subr.bf16.mxu0 %v7338_v46  ;;  %v7377_v45 = vld [vmem:[%s9985_s6 + $0x1d8] ss:$28 sps:$4 sm:$0xff]   ;;  %v7374_v46 = vld [vmem:[%s9985_s6 + $0xa90] ss:$28 sps:$4 sm:$0xff]  }
 0x39f   :  { %5589 = vmatpush2.bf16.msra.mxu1 %v7333_v47  ;;  %v7378_v47 = vld [vmem:[%s9985_s6 + $0x18] ss:$28 sps:$4 sm:$0xff]  }
 0x3a0   :  { %5630 = vmatpush2.bf16.msra.mxu0 %v7336_v48  ;;  %5640 = vmatprep.subr.bf16.mxu1 %v7341_v49  ;;  %v7381_v48 = vld [vmem:[%s9985_s6 + $0xddc] ss:$28 sps:$4 sm:$0xff]  }
 0x3a1   :  { %6660 = vmatprep.subr.bf16.mxu0 %v7342_v50  ;;  %v7382_v49 = vld [vmem:[%s9985_s6 + $0xa60] ss:$28 sps:$4 sm:$0xff]   ;;  %v7379_v50 = vld [vmem:[%s9985_s6 + $0xdd8] ss:$28 sps:$4 sm:$0xff]  }
 0x3a2   :  { %v9653_v57 = vpop.f32.mrf.mxu0  ;;  %5591 = vmatmul.mubr.bf16.vlgmr.msra.gmra.mxu1 %v8747_v52  ;;  %v5346_v59 = vpop.f32.mrf.mxu1 }
 0x3a3   :  { %5632 = vmatmul.mubr.bf16.vlgmr.msra.gmra.mxu0 %v8932_v26  ;;  %v5347_v6 = vadd.f32 %v5346_v59, %v5306_v54  ;;  %5641 = vmatpush1.bf16.msra.mxu1 %v7339_v51  ;;  %v7383_v51 = vld [vmem:[%s9985_s6 + $0x8a0] ss:$28 sps:$4 sm:$0xff]   ;;  %v7387_v54 = vld [vmem:[%s9985_s6 + $0xa28] ss:$28 sps:$4 sm:$0xff]  }
 0x3a4   :  { %5672 = vmatprep.mubr.bf16.mxu1 %v9036_v24  ;;  %6661 = vmatpush3.bf16.msra.mxu0 %v7343_v53  ;;  %v9666_v0 = vpop.f32.mrf.mxu0  ;;  %v5348_v3 = vpop.f32.mrf.mxu1  ;;  %v7386_v53 = vld [vmem:[%s9985_s6 + $0xda4] ss:$28 sps:$4 sm:$0xff]  }
 0x3a5   :  { %v6653_v33 = vmul.f32 -1.442695, %v5347_v6  ;;  %5713 = vmatprep.mubr.bf16.mxu0 %v8551_v38  ;;  %v5349_v7 = vadd.f32 %v5348_v3, %v5308_v2  ;;  %5642 = vmatprep.subr.bf16.mxu1 %v7346_v55  ;;  %v7353_v38 = vld [vmem:[%s9985_s6 + $0x130] ss:$28 sps:$4 sm:$0xff]   ;;  %v7384_v55 = vld [vmem:[%s9985_s6 + $0xda0] ss:$28 sps:$4 sm:$0xff]  }
 0x3a6   :  { %v5391_v9 = vpop.f32.mrf.mxu0  ;;  %6662 = vmatprep.subr.bf16.mxu0 %v7347_v60  ;;  %v5350_v10 = vpop.f32.mrf.mxu1  ;;  %v7388_v60 = vld [vmem:[%s9985_s6 + $0x868] ss:$28 sps:$4 sm:$0xff]   ;;  %v7396_v3 = vld [vmem:[%s9985_s6 + $0xd34] ss:$28 sps:$4 sm:$0xff]  }
 0x3a7   :  { %7451 = vpow2.f32 %v6653_v33  ;;  %v6654_v12 = vmul.f32 -1.442695, %v5349_v7  ;;  %5643 = vmatpush1.bf16.msra.mxu1 %v7344_v25  ;;  %v7391_v2 = vld [vmem:[%s9985_s6 + $0xd6c] ss:$28 sps:$4 sm:$0xff]   ;;  %v7398_v33 = vld [vmem:[%s9985_s6 + $0x7f8] ss:$28 sps:$4 sm:$0xff]  }
 0x3a8   :  { %6663 = vmatpush3.bf16.msra.mxu0 %v7348_v5  ;;  %v5392_v15 = vpop.f32.mrf.mxu0  ;;  %v5351_v16 = vpop.f32.mrf.mxu1  ;;  %5644 = vmatprep.subr.bf16.mxu1 %v7351_v11  ;;  %v7393_v25 = vld [vmem:[%s9985_s6 + $0x830] ss:$28 sps:$4 sm:$0xff]   ;;  %v7397_v5 = vld [vmem:[%s9985_s6 + $0x9b8] ss:$28 sps:$4 sm:$0xff]   ;;  %v7403_v10 = vld [vmem:[%s9985_s6 + $0x7c0] ss:$28 sps:$4 sm:$0xff]  }
 0x3a9   :  { %7453 = vpow2.f32 %v6654_v12  ;;  %6664 = vmatprep.subr.bf16.mxu0 %v7352_v8  ;;  %v7394_v11 = vld [vmem:[%s9985_s6 + $0xd30] ss:$28 sps:$4 sm:$0xff]   ;;  %v7401_v7 = vld [vmem:[%s9985_s6 + $0xcfc] ss:$28 sps:$4 sm:$0xff]   ;;  %v7406_v12 = vld [vmem:[%s9985_s6 + $0xcc4] ss:$28 sps:$4 sm:$0xff]  }
 0x3aa   :  { %v7402_v8 = vld [vmem:[%s9985_s6 + $0x980] ss:$28 sps:$4 sm:$0xff]   ;;  %v7399_v9 = vld [vmem:[%s9985_s6 + $0xcf8] ss:$28 sps:$4 sm:$0xff]   ;;  %v7408_v16 = vld [vmem:[%s9985_s6 + $0x788] ss:$28 sps:$4 sm:$0xff]  }
 0x3ab   :  { %5645 = vmatpush1.bf16.msra.mxu1 %v7349_v13  ;;  %v7407_v13 = vld [vmem:[%s9985_s6 + $0x948] ss:$28 sps:$4 sm:$0xff]   ;;  %v7404_v15 = vld [vmem:[%s9985_s6 + $0xcc0] ss:$28 sps:$4 sm:$0xff]  }
 0x3ac   :  { %6665 = vmatpush3.bf16.msra.mxu0 %v7353_v38  ;;  %5646 = vmatprep.subr.bf16.mxu1 %v7356_v17  ;;  %v7411_v38 = vld [vmem:[%s9985_s6 + $0xc8c] ss:$28 sps:$4 sm:$0xff]  }
 0x3ad   :  { %6666 = vmatprep.subr.bf16.mxu0 %v7357_v18  ;;  %v7412_v17 = vld [vmem:[%s9985_s6 + $0x910] ss:$28 sps:$4 sm:$0xff]   ;;  %v7409_v18 = vld [vmem:[%s9985_s6 + $0xc88] ss:$28 sps:$4 sm:$0xff]  }
 0x3af   :  { %5647 = vmatpush1.bf16.msra.mxu1 %v7354_v28  ;;  %v7413_v28 = vld [vmem:[%s9985_s6 + $0x750] ss:$28 sps:$4 sm:$0xff]  }
 0x3b0   :  { %6667 = vmatpush3.bf16.msra.mxu0 %v7358_v14  ;;  %5648 = vmatprep.subr.bf16.mxu1 %v7361_v21  ;;  %v7416_v14 = vld [vmem:[%s9985_s6 + $0xc54] ss:$28 sps:$4 sm:$0xff]  }
 0x3b1   :  { %6668 = vmatprep.subr.bf16.mxu0 %v7362_v29  ;;  %v7417_v21 = vld [vmem:[%s9985_s6 + $0x8d8] ss:$28 sps:$4 sm:$0xff]   ;;  %v7414_v29 = vld [vmem:[%s9985_s6 + $0xc50] ss:$28 sps:$4 sm:$0xff]  }
 0x3b3   :  { %5649 = vmatpush1.bf16.msra.mxu1 %v7359_v22  ;;  %v7418_v22 = vld [vmem:[%s9985_s6 + $0x718] ss:$28 sps:$4 sm:$0xff]  }
 0x3b4   :  { %v7452_v20 = vpop.eup %7451  ;;  %6669 = vmatpush3.bf16.msra.mxu0 %v7363_v30  ;;  %5650 = vmatprep.subr.bf16.mxu1 %v7366_v23  ;;  %v7419_v30 = vld [vmem:[%s9985_s6 + $0x6e0] ss:$28 sps:$4 sm:$0xff]  }
 0x3b5   :  { %v5862_v36 = vadd.f32 1.0, %v7452_v20  ;;  %6670 = vmatprep.subr.bf16.mxu0 %v7367_v31  ;;  %v7420_v23 = vld [vmem:[%s9985_s6 + $0x520] ss:$28 sps:$4 sm:$0xff]   ;;  %v7421_v31 = vld [vmem:[%s9985_s6 + $0x6a8] ss:$28 sps:$4 sm:$0xff]  }
 0x3b6   :  { %v7454_v39 = vpop.eup %7453 }
 0x3b7   :  { %7455 = vrcp.f32 %v5862_v36  ;;  %v5863_v41 = vadd.f32 1.0, %v7454_v39  ;;  %5651 = vmatpush1.bf16.msra.mxu1 %v7364_v27 }
 0x3b8   :  { %6671 = vmatpush3.bf16.msra.mxu0 %v7368_v34  ;;  %5652 = vmatprep.subr.bf16.mxu1 %v7371_v35  ;;  %v7422_v34 = vld [vmem:[%s9985_s6 + $0x4e8] ss:$28 sps:$4 sm:$0xff]  }
 0x3b9   :  { %7457 = vrcp.f32 %v5863_v41  ;;  %6672 = vmatprep.subr.bf16.mxu0 %v7372_v37  ;;  %v7423_v37 = vld [vmem:[%s9985_s6 + $0x670] ss:$28 sps:$4 sm:$0xff]  }
 0x3bb   :  { %5653 = vmatpush1.bf16.msra.mxu1 %v7369_v42 }
 0x3bc   :  { %6673 = vmatpush3.bf16.msra.mxu0 %v7373_v43  ;;  %5654 = vmatprep.subr.bf16.mxu1 %v7376_v44  ;;  %v7426_v44 = vld [vmem:[%s9985_s6 + $0x478] ss:$28 sps:$4 sm:$0xff]  }
 0x3bd   :  { %6674 = vmatprep.subr.bf16.mxu0 %v7377_v45  ;;  %v7427_v45 = vld [vmem:[%s9985_s6 + $0x600] ss:$28 sps:$4 sm:$0xff]  }
 0x3bf   :  { %5655 = vmatpush1.bf16.msra.mxu1 %v7374_v46  ;;  %v7428_v46 = vld [vmem:[%s9985_s6 + $0x440] ss:$28 sps:$4 sm:$0xff]  }
 0x3c0   :  { %6675 = vmatpush3.bf16.msra.mxu0 %v7378_v47  ;;  %5656 = vmatprep.subr.bf16.mxu1 %v7381_v48  ;;  %v7429_v47 = vld [vmem:[%s9985_s6 + $0x5c8] ss:$28 sps:$4 sm:$0xff]  }
 0x3c1   :  { %6704 = vmatprep.subr.bf16.mxu0 %v7382_v49  ;;  %v7430_v48 = vld [vmem:[%s9985_s6 + $0x408] ss:$28 sps:$4 sm:$0xff]   ;;  %v7431_v49 = vld [vmem:[%s9985_s6 + $0x590] ss:$28 sps:$4 sm:$0xff]  }
 0x3c3   :  { %5714 = vmatmul.mubr.bf16.vlgmr.msra.gmra.mxu0 %v8719_v40  ;;  %5657 = vmatpush2.bf16.msra.mxu1 %v7379_v50  ;;  %v7392_v40 = vld [vmem:[%s9985_s6 + $0x9f0] ss:$28 sps:$4 sm:$0xff]  }
 0x3c4   :  { %v7456_v59 = vpop.eup %7455  ;;  %6705 = vmatpush3.bf16.msra.mxu0 %v7383_v51  ;;  %5793 = vmatprep.mubr.bf16.mxu0 %v8927_v19  ;;  %v7389_v19 = vld [vmem:[%s9985_s6 + $0xd68] ss:$28 sps:$4 sm:$0xff]   ;;  %v7432_v50 = vld [vmem:[%s9985_s6 + $0x3d0] ss:$28 sps:$4 sm:$0xff]   ;;  %v7433_v51 = vld [vmem:[%s9985_s6 + $0x558] ss:$28 sps:$4 sm:$0xff]  }
 0x3c5   :  { %5883 = vst [vmem:[#allocation2] sm:$0xff] %v7456_v59  ;;  %5658 = vmatprep.subr.bf16.mxu1 %v7386_v53  ;;  %6706 = vmatprep.subr.bf16.mxu0 %v7387_v54  ;;  %v7434_v53 = vld [vmem:[%s9985_s6 + $0x398] ss:$28 sps:$4 sm:$0xff]   ;;  %v7435_v54 = vld [vmem:[%s9985_s6 + $0xde0] ss:$28 sps:$4 sm:$0xff]  }
 0x3c6   :  { %v7458_v6 = vpop.eup %7457  ;;  %v7437_v59 = vld [vmem:[%s9985_s6 + $0xda8] ss:$28 sps:$4 sm:$0xff]  }
 0x3c7   :  { %5884 = vst [vmem:[#allocation2 + $0x8] sm:$0xff] %v7458_v6  ;;  %5659 = vmatpush2.bf16.msra.mxu1 %v7384_v55  ;;  %v7436_v55 = vld [vmem:[%s9985_s6 + $0xc20] ss:$28 sps:$4 sm:$0xff]  }
 0x3c8   :  { %6707 = vmatpush3.bf16.msra.mxu0 %v7388_v60  ;;  %5660 = vmatprep.subr.bf16.mxu1 %v7391_v2  ;;  %v7438_v60 = vld [vmem:[%s9985_s6 + $0xbe8] ss:$28 sps:$4 sm:$0xff]   ;;  %v7439_v2 = vld [vmem:[%s9985_s6 + $0xd70] ss:$28 sps:$4 sm:$0xff]   ;;  %v7443_v6 = vld [vmem:[%s9985_s6 + $0xd00] ss:$28 sps:$4 sm:$0xff]  }
 0x3c9   :  { %6708 = vmatprep.subr.bf16.mxu0 %v7392_v40  ;;  %v7440_v40 = vld [vmem:[%s9985_s6 + $0xbb0] ss:$28 sps:$4 sm:$0xff]  }
 0x3cb   :  { %5661 = vmatpush2.bf16.msra.mxu1 %v7389_v19  ;;  %v7444_v19 = vld [vmem:[%s9985_s6 + $0xb40] ss:$28 sps:$4 sm:$0xff]  }
 0x3cc   :  { %6709 = vmatpush3.bf16.msra.mxu0 %v7393_v25  ;;  %5662 = vmatprep.subr.bf16.mxu1 %v7396_v3  ;;  %v7445_v25 = vld [vmem:[%s9985_s6 + $0xcc8] ss:$28 sps:$4 sm:$0xff]  }
 0x3cd   :  { %6710 = vmatprep.subr.bf16.mxu0 %v7397_v5  ;;  %v7446_v3 = vld [vmem:[%s9985_s6 + $0xb08] ss:$28 sps:$4 sm:$0xff]   ;;  %v7447_v5 = vld [vmem:[%s9985_s6 + $0xc90] ss:$28 sps:$4 sm:$0xff]  }
 0x3cf   :  { %5663 = vmatpush2.bf16.msra.mxu1 %v7394_v11  ;;  %v9945_v11 = vld [vmem:[%s9986_s7] sm:$0x7f] }
 0x3d0   :  { %6711 = vmatpush3.bf16.msra.mxu0 %v7398_v33  ;;  %5664 = vmatprep.subr.bf16.mxu1 %v7401_v7  ;;  %v2861_v33 = vrot.slane %v9945_v11, %v7895_v1  ;;  %v7448_v7 = vld [vmem:[%s9985_s6 + $0xad0] ss:$28 sps:$4 sm:$0xff]   ;;  %v7450_v1 = vld [vmem:[%s9985_s6 + $0xa98] ss:$28 sps:$4 sm:$0xff]  }
 0x3d1   :  { %6712 = vmatprep.subr.bf16.mxu0 %v7402_v8  ;;  %v7449_v8 = vld [vmem:[%s9985_s6 + $0xc58] ss:$28 sps:$4 sm:$0xff]  }
 0x3d3   :  { %5665 = vmatpush2.bf16.msra.mxu1 %v7399_v9  ;;  %v2865_v9 = vrot.slane %v9945_v11, %v7904_v4 }
 0x3d4   :  { %6713 = vmatpush3.bf16.msra.mxu0 %v7403_v10  ;;  %5666 = vmatprep.subr.bf16.mxu1 %v7406_v12  ;;  %v5388_v10 = vadd.f32 %v9653_v57, %v2861_v33 }
 0x3d5   :  { %6714 = vmatprep.subr.bf16.mxu0 %v7407_v13  ;;  %v5390_v12 = vadd.f32 %v9666_v0, %v2865_v9 }
 0x3d7   :  { %5667 = vmatpush2.bf16.msra.mxu1 %v7404_v15 }
 0x3d8   :  { %6715 = vmatpush3.bf16.msra.mxu0 %v7408_v16  ;;  %5668 = vmatprep.subr.bf16.mxu1 %v7411_v38 }
 0x3d9   :  { %6716 = vmatprep.subr.bf16.mxu0 %v7412_v17 }
 0x3db   :  { %5669 = vmatpush2.bf16.msra.mxu1 %v7409_v18 }
 0x3dc   :  { %6717 = vmatpush3.bf16.msra.mxu0 %v7413_v28  ;;  %5670 = vmatprep.subr.bf16.mxu1 %v7416_v14 }
 0x3dd   :  { %6718 = vmatprep.subr.bf16.mxu0 %v7417_v21 }
 0x3df   :  { %5671 = vmatpush2.bf16.msra.mxu1 %v7414_v29 }
 0x3e0   :  { %6719 = vmatpush3.bf16.msra.mxu0 %v7418_v22  ;;  %6682 = vmatprep.subr.bf16.mxu1 %v7419_v30 }
 0x3e2   :  { %v9851_v27 = vpop.f32.mrf.mxu1  ;;  %v9853_v20 = vpop.f32.mrf.mxu0  ;;  %5673 = vmatmul.mubr.bf16.vlgmr.msra.gmra.mxu1 %v9044_v32 }
 0x3e3   :  { %5794 = vmatmul.mubr.bf16.vlgmr.msra.gmra.mxu0 %v8932_v26  ;;  %6683 = vmatpush3.bf16.msra.mxu1 %v7420_v23  ;;  %v7424_v26 = vld [vmem:[%s9985_s6 + $0x4b0] ss:$28 sps:$4 sm:$0xff]   ;;  %v5429_v13 = vadd.f32 %v9851_v27, %v5388_v10 }
 0x3e4   :  { %5753 = vmatprep.mubr.bf16.mxu1 %v8739_v62  ;;  %v9861_v35 = vpop.f32.mrf.mxu1  ;;  %v9863_v36 = vpop.f32.mrf.mxu0  ;;  %6684 = vmatprep.subr.bf16.mxu1 %v7421_v31  ;;  %v7425_v62 = vld [vmem:[%s9985_s6 + $0x638] ss:$28 sps:$4 sm:$0xff]  }
 0x3e5   :  { %v5431_v15 = vadd.f32 %v9861_v35, %v5390_v12  ;;  %v5470_v16 = vadd.f32 %v9853_v20, %v5429_v13 }
 0x3e6   :  { %v5432_v39 = vpop.f32.mrf.mxu1  ;;  %v5473_v41 = vpop.f32.mrf.mxu0 }
 0x3e7   :  { %6685 = vmatpush3.bf16.msra.mxu1 %v7422_v34  ;;  %v5472_v4 = vadd.f32 %v9863_v36, %v5431_v15 }
 0x3e8   :  { %v5433_v42 = vpop.f32.mrf.mxu1  ;;  %v5474_v43 = vpop.f32.mrf.mxu0  ;;  %6686 = vmatprep.subr.bf16.mxu1 %v7423_v37 }
 0x3eb   :  { %6687 = vmatpush3.bf16.msra.mxu1 %v7424_v26 }
 0x3ec   :  { %6688 = vmatprep.subr.bf16.mxu1 %v7425_v62 }
 0x3ef   :  { %6689 = vmatpush3.bf16.msra.mxu1 %v7426_v44 }
 0x3f0   :  { %6690 = vmatprep.subr.bf16.mxu1 %v7427_v45 }
 0x3f3   :  { %6691 = vmatpush3.bf16.msra.mxu1 %v7428_v46 }
 0x3f4   :  { %6692 = vmatprep.subr.bf16.mxu1 %v7429_v47 }
 0x3f7   :  { %6693 = vmatpush3.bf16.msra.mxu1 %v7430_v48 }
 0x3f8   :  { %6694 = vmatprep.subr.bf16.mxu1 %v7431_v49  ;;  %v2869_v49 = vrot.slane %v9945_v11, %v690_v56 }
 0x3fb   :  { %6695 = vmatpush3.bf16.msra.mxu1 %v7432_v50  ;;  %v2873_v50 = vrot.slane %v9945_v11, %v694_v61 }
 0x3fc   :  { %6696 = vmatprep.subr.bf16.mxu1 %v7433_v51 }
 0x3ff   :  { %6697 = vmatpush3.bf16.msra.mxu1 %v7434_v53 }
 0x400   :  { %6726 = vmatprep.subr.bf16.mxu1 %v7435_v54 }
 0x402   :  { %5754 = vmatmul.mubr.bf16.vlgmr.msra.gmra.mxu1 %v8747_v52  ;;  %v7441_v52 = vld [vmem:[%s9985_s6 + $0xd38] ss:$28 sps:$4 sm:$0xff]  }
 0x403   :  { %6727 = vmatpush3.bf16.msra.mxu1 %v7436_v55  ;;  %5833 = vmatprep.mubr.bf16.mxu1 %v9036_v24  ;;  %v7442_v24 = vld [vmem:[%s9985_s6 + $0xb78] ss:$28 sps:$4 sm:$0xff]   ;;  %s7503_s6 = smov [#allocation2]  }
 0x404   :  { %6728 = vmatprep.subr.bf16.mxu1 %v7437_v59  ;;  %s5897_s22 = sshll.u32 %s7503_s6, 4  ;;  %s5898_s22 = int_to_ptr.vmem [resolvable:$true] %s5897_s22 }
 0x405   :  { %s7480_s23 = scalar_lea.vmem %s5898_s22, 896  ;;  %p7485_p1 = scmp.lt.s32.totalorder %s5898_s22, %s5898_s22 }
 0x406   :  { %p7481_p0 = scmp.ne.s32.totalorder %s5898_s22, %s7480_s23  ;;  %p7486_p2 = scmp.lt.s32.totalorder %s7480_s23, %s7480_s23 }
 0x407   :  { %6729 = vmatpush3.bf16.msra.mxu1 %v7438_v60 }
 0x408   :  { %6730 = vmatprep.subr.bf16.mxu1 %v7439_v2  ;;  %p7487_p3 = por %p7486_p2, %p7485_p1 }
 0x40a   :  { %p7488_p4 = pnand %p7487_p3, %p7481_p0 }
 0x40b   :  { %6731 = vmatpush3.bf16.msra.mxu1 %v7440_v40 }
 0x40c   :  { %6732 = vmatprep.subr.bf16.mxu1 %v7441_v52 }
 0x40f   :  { %6733 = vmatpush3.bf16.msra.mxu1 %v7442_v24 }
 0x410   :  { %6734 = vmatprep.subr.bf16.mxu1 %v7443_v6 }
 0x413   :  { %6735 = vmatpush3.bf16.msra.mxu1 %v7444_v19 }
 0x414   :  { %6736 = vmatprep.subr.bf16.mxu1 %v7445_v25 }
 0x417   :  { %6737 = vmatpush3.bf16.msra.mxu1 %v7446_v3 }
 0x418   :  { %6738 = vmatprep.subr.bf16.mxu1 %v7447_v5 }
 0x41b   :  { %6739 = vmatpush3.bf16.msra.mxu1 %v7448_v7 }
 0x41c   :  { %6740 = vmatprep.subr.bf16.mxu1 %v7449_v8 }
 0x41f   :  { %6741 = vmatpush3.bf16.msra.mxu1 %v7450_v1 }
 0x422   :  { %v5510_v38 = vpop.f32.mrf.mxu1  ;;  %5834 = vmatmul.mubr.bf16.vlgmr.msra.gmra.mxu1 %v9044_v32 }
 0x423   :  { %v5511_v57 = vadd.f32 %v5510_v38, %v5470_v16  ;;  %v5551_v17 = vpop.f32.mrf.mxu0 }
 0x424   :  { %v5512_v18 = vpop.f32.mrf.mxu1  ;;  %v5552_v51 = vadd.f32 %v5551_v17, %v2869_v49 }
 0x425   :  { %v6655_v28 = vmul.f32 -1.442695, %v5511_v57  ;;  %v5513_v14 = vadd.f32 %v5512_v18, %v5472_v4  ;;  %v5553_v21 = vpop.f32.mrf.mxu0  ;;  %v2877_v4 = vrot.slane %v9945_v11, %v698_v58 }
 0x426   :  { %v5514_v29 = vpop.f32.mrf.mxu1  ;;  %v5554_v53 = vadd.f32 %v5553_v21, %v2873_v50 }
 0x427   :  { %7459 = vpow2.f32 %v6655_v28  ;;  %v6656_v0 = vmul.f32 -1.442695, %v5513_v14  ;;  %v5555_v22 = vpop.f32.mrf.mxu0 }
 0x428   :  { %v5515_v30 = vpop.f32.mrf.mxu1 }
 0x429   :  { %7461 = vpow2.f32 %v6656_v0  ;;  %v5556_v23 = vpop.f32.mrf.mxu0 }
 0x434   :  { %v7460_v31 = vpop.eup %7459 }
 0x435   :  { %v5864_v27 = vadd.f32 1.0, %v7460_v31 }
 0x436   :  { %v7462_v20 = vpop.eup %7461 }
 0x437   :  { %7463 = vrcp.f32 %v5864_v27  ;;  %v5865_v32 = vadd.f32 1.0, %v7462_v20 }
 0x439   :  { %7465 = vrcp.f32 %v5865_v32 }
 0x444   :  { %v7464_v34 = vpop.eup %7463 }
 0x445   :  { %5885 = vst [vmem:[#allocation2 + $0x10] sm:$0xff] %v7464_v34 }
 0x446   :  { %v7466_v35 = vpop.eup %7465 }
 0x447   :  { %5886 = vst [vmem:[#allocation2 + $0x18] sm:$0xff] %v7466_v35 }
 0x462   :  { %v5592_v36 = vpop.f32.mrf.mxu1 }
 0x463   :  { %v5633_v37 = vpop.f32.mrf.mxu0  ;;  %v5593_v54 = vadd.f32 %v5592_v36, %v5552_v51 }
 0x464   :  { %v5594_v39 = vpop.f32.mrf.mxu1 }
 0x465   :  { %v5635_v41 = vpop.f32.mrf.mxu0  ;;  %v5595_v55 = vadd.f32 %v5594_v39, %v5554_v53  ;;  %v5634_v59 = vadd.f32 %v5633_v37, %v5593_v54 }
 0x466   :  { %v5596_v26 = vpop.f32.mrf.mxu1 }
 0x467   :  { %v5637_v42 = vpop.f32.mrf.mxu0  ;;  %v5636_v2 = vadd.f32 %v5635_v41, %v5595_v55 }
 0x468   :  { %v5597_v43 = vpop.f32.mrf.mxu1 }
 0x469   :  { %v5638_v62 = vpop.f32.mrf.mxu0 }
 0x483   :  { %v6676_v44 = vpop.f32.mrf.mxu0 }
 0x485   :  { %v6677_v45 = vpop.f32.mrf.mxu0 }
 0x486   :  { %v6678_v46 = vadd.f32 %v6677_v45, %v6676_v44 }
 0x487   :  { %v6679_v47 = vpop.f32.mrf.mxu0 }
 0x488   :  { %v5716_v17 = vadd.f32 %v6678_v46, %v2877_v4 }
 0x489   :  { %v6680_v48 = vpop.f32.mrf.mxu0 }
 0x4a2   :  { %v5674_v60 = vpop.f32.mrf.mxu1 }
 0x4a3   :  { %v5675_v40 = vadd.f32 %v5674_v60, %v5634_v59  ;;  %v6720_v52 = vpop.f32.mrf.mxu0 }
 0x4a4   :  { %v5676_v24 = vpop.f32.mrf.mxu1 }
 0x4a5   :  { %v6657_v6 = vmul.f32 -1.442695, %v5675_v40  ;;  %v5677_v19 = vadd.f32 %v5676_v24, %v5636_v2  ;;  %v6721_v25 = vpop.f32.mrf.mxu0 }
 0x4a6   :  { %v5678_v3 = vpop.f32.mrf.mxu1  ;;  %v6722_v14 = vadd.f32 %v6721_v25, %v6720_v52 }
 0x4a7   :  { %7467 = vpow2.f32 %v6657_v6  ;;  %v6658_v56 = vmul.f32 -1.442695, %v5677_v19  ;;  %v6723_v5 = vpop.f32.mrf.mxu0 }
 0x4a8   :  { %v5679_v33 = vpop.f32.mrf.mxu1 }
 0x4a9   :  { %7469 = vpow2.f32 %v6658_v56  ;;  %v6724_v61 = vpop.f32.mrf.mxu0 }
 0x4b4   :  { %v7468_v7 = vpop.eup %7467 }
 0x4b5   :  { %v5866_v8 = vadd.f32 1.0, %v7468_v7 }
 0x4b6   :  { %v7470_v9 = vpop.eup %7469 }
 0x4b7   :  { %7471 = vrcp.f32 %v5866_v8  ;;  %v5867_v10 = vadd.f32 1.0, %v7470_v9 }
 0x4b9   :  { %7473 = vrcp.f32 %v5867_v10 }
 0x4c2   :  { %v6698_v1 = vpop.f32.mrf.mxu1 }
 0x4c4   :  { %v7472_v12 = vpop.eup %7471  ;;  %v6699_v13 = vpop.f32.mrf.mxu1 }
 0x4c5   :  { %5887 = vst [vmem:[#allocation2 + $0x20] sm:$0xff] %v7472_v12  ;;  %v6700_v57 = vadd.f32 %v6699_v13, %v6698_v1 }
 0x4c6   :  { %v7474_v15 = vpop.eup %7473  ;;  %v6701_v16 = vpop.f32.mrf.mxu1 }
 0x4c7   :  { %5888 = vst [vmem:[#allocation2 + $0x28] sm:$0xff] %v7474_v15  ;;  %v5756_v18 = vadd.f32 %v6700_v57, %v5716_v17 }
 0x4c8   :  { %v6702_v38 = vpop.f32.mrf.mxu1 }
 0x4c9   :  { %v5796_v29 = vadd.f32 %v6722_v14, %v5756_v18 }
 0x4e2   :  { %v6742_v28 = vpop.f32.mrf.mxu1 }
 0x4e4   :  { %v6743_v21 = vpop.f32.mrf.mxu1 }
 0x4e5   :  { %v6744_v0 = vadd.f32 %v6743_v21, %v6742_v28 }
 0x4e6   :  { %v6745_v22 = vpop.f32.mrf.mxu1 }
 0x4e7   :  { %v5836_v30 = vadd.f32 %v6744_v0, %v5796_v29 }
 0x4e8   :  { %v6746_v23 = vpop.f32.mrf.mxu1 }
 0x4e9   :  { %v6659_v31 = vmul.f32 -1.442695, %v5836_v30 }
 0x4eb   :  { %7475 = vpow2.f32 %v6659_v31 }
 0x4f8   :  { %v7476_v27 = vpop.eup %7475 }
 0x4f9   :  { %v5868_v20 = vadd.f32 1.0, %v7476_v27 }
 0x4fb   :  { %7477 = vrcp.f32 %v5868_v20 }
 0x508   :  { %v7478_v63 = vpop.eup %7477 }
 0x509   :  { %5890 = vst.msk [vmem:[#allocation2 + $0x30] sm:$0xff] %vm5889_vm8, %v7478_v63 }
 0x50a   :  { %7491 = shalt.err (!%p7488_p4)
}
 0x50b   :  { %5900 = dma.vmem_to_hbm [thread:$0]  %s5898_s22, 896, %s9987_s8, [#allocation3]  }
 0x50c   :  { %7500 = dma.done.wait [#allocation3], 896  }
 0x50d   :  { %7501 = vsyncadd [#allocation3], 4294966400 }
 0x50e   :  { %5904 = vsyncpa [#allocation3], 1 }

</bundles_post_ra>
